<compile_context>
chip_gen: v5e
topology: v5e:2x2
jax: 0.10.0
libtpu: 0.0.40
codegen_flags: <defaults>
</compile_context>

<pallas_src>
import functools

import jax
import jax.numpy as jnp
import numpy as np
from jax.experimental import pallas as pl
from jax.experimental.pallas import tpu as pltpu

EPS = 1e-5      # nn.BatchNorm2d default eps
CPAD = 128      # lane-dense channel padding


def _lflb_kernel(x_ref, mask_ref, w_ref, g_ref, beta_ref, o_ref,
                 stats_ref, ss_ref, z_ref, *,
                 cin, kh, kw, wp, kph, kpw, s_pool,
                 n_valid, eps, r_rows, hout, wout):
    p = pl.program_id(0)          # 0 = stats pass, 1 = apply pass
    t = pl.program_id(1)          # image index within the batch

    # ---- conv as in-kernel im2col: kh*kw shifted-slice contractions ----------
    # y[q, co] = sum_{c,i,j} x[q + i*Wp + j, c] * W[i*kw+j, c, co]
    # where q = h*Wp + w is the flat padded-row position.  Columns w >= Wc are
    # "wrap" garbage; they are masked out of the BN stats and never pooled.
    y = jnp.zeros((r_rows, CPAD), jnp.float32)
    for i in range(kh):
        for j in range(kw):
            off = i * wp + j
            tap = i * kw + j
            xs = x_ref[0, off:off + r_rows, :]            # (R, Cin) f32
            wq = w_ref[tap]                               # (Cin, 128) bf16
            if cin == 1:
                # degenerate contraction: pure VPU broadcast FMA (kept in f32)
                y = y + xs * wq.astype(jnp.float32)
            else:
                y = y + jnp.dot(xs.astype(jnp.bfloat16), wq,
                                preferred_element_type=jnp.float32)

    # ---- pass 0: accumulate masked per-channel sum / sum-of-squares ----------
    @pl.when(jnp.logical_and(p == 0, t == 0))
    def _zero_stats():
        stats_ref[...] = jnp.zeros_like(stats_ref)

    @pl.when(p == 0)
    def _stats():
        ym = y * mask_ref[...]                            # (R,1) mask -> lanes
        stats_ref[0:1, :] += jnp.sum(ym, axis=0, keepdims=True)
        stats_ref[1:2, :] += jnp.sum(ym * ym, axis=0, keepdims=True)

    # ---- pass 1: finalize fused BN scale/shift once, then apply + pool -------
    @pl.when(jnp.logical_and(p == 1, t == 0))
    def _finalize():
        inv_n = 1.0 / float(n_valid)
        mu = stats_ref[0:1, :] * inv_n
        var = jnp.maximum(stats_ref[1:2, :] * inv_n - mu * mu, 0.0)
        scale = g_ref[...] * jax.lax.rsqrt(var + eps)
        ss_ref[0:1, :] = scale
        ss_ref[1:2, :] = beta_ref[...] - mu * scale

    @pl.when(p == 1)
    def _apply():
        # BN + ReLU map, staged in VMEM so pooling can use strided sublane loads
        z_ref[...] = jnp.maximum(y * ss_ref[0:1, :] + ss_ref[1:2, :], 0.0)
        # non-overlapping 2x2 max-pool, compacted in width: pooled output row
        # (oh, ow) reads flat rows (s*oh+di)*Wp + (s*ow+dj), all of which are
        # valid conv positions (never wrap-garbage columns, never past R).
        for oh in range(hout):
            base = s_pool * oh * wp
            row = None
            for di in range(kph):
                for dj in range(kpw):
                    phase = z_ref[pl.ds(base + di * wp + dj, wout, s_pool), :]
                    row = phase if row is None else jnp.maximum(row, phase)
            o_ref[0, oh * wout:(oh + 1) * wout, :] = row.astype(o_ref.dtype)


def lflb_forward(x_nhwc, weight, gamma, beta, *, stride_cnn, padding_cnn,
                 kernel_size_pool, stride_pool, padding_pool):
    N, H, W, Cin = x_nhwc.shape
    Cout, Cin_w, kh, kw = weight.shape
    assert Cin_w == Cin and Cout <= CPAD
    sh, sw = stride_cnn
    # TODO(synk): generalize the flat shifted-slice conv to stride_cnn != (1,1).
    assert (sh, sw) == (1, 1)
    ph, pw = padding_cnn
    kph, kpw = kernel_size_pool
    s_pool = stride_pool
    # reference config: non-overlapping pooling with no pool padding
    assert padding_pool == (0, 0) and s_pool == kph == kpw

    Hp, Wp = H + 2 * ph, W + 2 * pw
    Hc, Wc = Hp - kh + 1, Wp - kw + 1
    Hout = (Hc - kph) // s_pool + 1
    Wout = (Wc - kpw) // s_pool + 1

    R = Hc * Wp                 # conv rows per image (incl. wrap-garbage cols)
    QO = Hout * Wout            # compact pooled rows per image
    XR = (Hp + 1) * Wp          # flat input rows (+1 padded row of slack)
    assert (kh - 1) * Wp + (kw - 1) + R <= XR
    # max flat row touched by pooling stays inside the conv map:
    assert (s_pool * (Hout - 1) + kph - 1) * Wp + kpw - 1 + s_pool * (Wout - 1) < R

    # zero-pad spatial, flatten rows: (N, XR, Cin) f32
    xp = jnp.pad(x_nhwc, ((0, 0), (ph, ph), (pw, pw), (0, 0)))
    xf = xp.reshape(N, Hp * Wp, Cin)
    xf = jnp.pad(xf, ((0, 0), (0, XR - Hp * Wp), (0, 0))).astype(jnp.float32)

    # weights -> (kh*kw, Cin, 128) bf16, zero padded on the output-channel lanes
    wt = jnp.transpose(weight, (2, 3, 1, 0)).reshape(kh * kw, Cin, Cout)
    wt = jnp.pad(wt, ((0, 0), (0, 0), (0, CPAD - Cout))).astype(jnp.bfloat16)

    g2 = jnp.pad(gamma.reshape(1, Cout), ((0, 0), (0, CPAD - Cout))).astype(jnp.float32)
    b2 = jnp.pad(beta.reshape(1, Cout), ((0, 0), (0, CPAD - Cout))).astype(jnp.float32)

    # static validity mask over conv rows: valid iff (row mod Wp) < Wc
    col = np.arange(R, dtype=np.int32) % Wp
    mask = jnp.asarray((col < Wc).astype(np.float32).reshape(R, 1))

    n_valid = N * Hc * Wc

    kernel = functools.partial(
        _lflb_kernel, cin=Cin, kh=kh, kw=kw, wp=Wp, kph=kph, kpw=kpw,
        s_pool=s_pool, n_valid=n_valid, eps=EPS,
        r_rows=R, hout=Hout, wout=Wout)

    pooled = pl.pallas_call(
        kernel,
        out_shape=jax.ShapeDtypeStruct((N, QO, CPAD), jnp.float32),
        grid=(2, N),
        in_specs=[
            pl.BlockSpec((1, XR, Cin), lambda p, t: (t, 0, 0)),
            pl.BlockSpec((R, 1), lambda p, t: (0, 0)),
            pl.BlockSpec((kh * kw, Cin, CPAD), lambda p, t: (0, 0, 0)),
            pl.BlockSpec((1, CPAD), lambda p, t: (0, 0)),
            pl.BlockSpec((1, CPAD), lambda p, t: (0, 0)),
        ],
        # pass 0 parks on block 0 (no write, no writeback); pass 1 sweeps blocks
        out_specs=pl.BlockSpec((1, QO, CPAD), lambda p, t: (p * t, 0, 0)),
        scratch_shapes=[
            pltpu.VMEM((2, CPAD), jnp.float32),    # per-channel sum / sumsq
            pltpu.VMEM((2, CPAD), jnp.float32),    # fused BN scale / shift
            pltpu.VMEM((R, CPAD), jnp.float32),    # BN+ReLU map for pooling
        ],
        # both axes sequential: stats accumulate across the batch axis.
        # TODO(synk): for v7x megacore, split the batch per-core with per-core
        # partial stats + a cross-core reduction so this axis can be "parallel".
        compiler_params=pltpu.CompilerParams(
            dimension_semantics=("arbitrary", "arbitrary")),
    )(xf, mask, wt, g2, b2)

    # kernel output is already spatially compact; only slice the real channels
    return pooled.reshape(N, Hout, Wout, CPAD)[:, :, :, :Cout]


@functools.partial(jax.jit, static_argnames=(
    "kernel_size_cnn", "stride_cnn", "kernel_size_pool", "stride_pool"))
def spectrogram_forward(x_nchw, params, *, kernel_size_cnn, stride_cnn,
                        kernel_size_pool, stride_pool):
    kh, kw = kernel_size_cnn
    kph, kpw = kernel_size_pool
    padding_cnn = ((kh - 1) // 2, (kw - 1) // 2)
    padding_pool = ((kph - 1) // 2, (kpw - 1) // 2)
    # module boundary is NCHW (PyTorch); activations stay NHWC between LFLB layers
    x = jnp.transpose(x_nchw, (0, 2, 3, 1))
    for (w, gamma, beta) in params:
        x = lflb_forward(x, w, gamma, beta,
                         stride_cnn=stride_cnn, padding_cnn=padding_cnn,
                         kernel_size_pool=kernel_size_pool,
                         stride_pool=stride_pool, padding_pool=padding_pool)
    n, f, t, c = x.shape
    # torch.flatten(NCHW output, start_dim=1, end_dim=2) -> (N, C*F, T)
    return jnp.transpose(x, (0, 3, 1, 2)).reshape(n, c * f, t).astype(jnp.float32)


def multi_spectrogram_forward(input1, input2, params, cfg):
    # Reference forward only runs branch 0 on input2; input1 is unused.
    del input1
    return spectrogram_forward(
        input2, params,
        kernel_size_cnn=tuple(cfg["kernel_size_cnn"]),
        stride_cnn=tuple(cfg["stride_cnn"]),
        kernel_size_pool=tuple(cfg["kernel_size_pool"]),
        stride_pool=cfg["stride_pool"])


def init_params(key, in_channels, out_channels, kernel_size_cnn):
    # NOTE: no conv bias -- training-mode BatchNorm's batch-mean subtraction
    # cancels it exactly, so it has zero effect on the forward output.
    kh, kw = kernel_size_cnn
    params = []
    cin = in_channels
    for cout in out_channels:
        key, k1, k2, k3 = jax.random.split(key, 4)
        w = 0.1 * jax.random.normal(k1, (cout, cin, kh, kw), jnp.float32)
        gamma = 1.0 + 0.1 * jax.random.normal(k2, (cout,), jnp.float32)
        beta = 0.1 * jax.random.normal(k3, (cout,), jnp.float32)
        params.append((w, gamma, beta))
        cin = cout
    return params


if __name__ == "__main__":
    key = jax.random.PRNGKey(0)

    # MultiSpectrogramModel config (branch index 1 is the one that is used)
    N = 2
    in_channels = 1
    out_channels = [4, 8]
    kernel_size_cnn = [(5, 5), (3, 3)]
    stride_cnn = [(1, 1), (1, 1)]
    kernel_size_pool = [(2, 2), (2, 2)]
    stride_pool = [2, 2]
    nfft = [32, 64]

    cfg = dict(
        kernel_size_cnn=kernel_size_cnn[1],
        stride_cnn=stride_cnn[1],
        kernel_size_pool=kernel_size_pool[1],
        stride_pool=stride_pool[1],
    )

    strideF = nfft[1] // 4          # frequency dim of the spectrogram input
    T = 16                          # time frames

    key, kp, k1, k2 = jax.random.split(key, 4)
    params = init_params(kp, in_channels, out_channels, cfg["kernel_size_cnn"])
    input1 = jax.random.normal(k1, (N, in_channels, strideF, T), jnp.float32)
    input2 = jax.random.normal(k2, (N, in_channels, strideF, T), jnp.float32)

    out = multi_spectrogram_forward(input1, input2, params, cfg)
    out = jax.block_until_ready(out)

    # expected: (N, out_channels[-1] * final_F, final_T) = (2, 8*4, 4)
    assert out.shape == (N, out_channels[-1] * 4, T // 4), out.shape
    assert bool(jnp.all(jnp.isfinite(out)))
    print("KERNEL_OK")
</pallas_src>

<mosaic_0001>
module attributes {stable_mosaic.version = 11 : i64} {
  func.func @_lflb_kernel(%arg0: i32, %arg1: i32, %arg2: memref<1x342x1xf32, #tpu.memory_space<vmem>>, %arg3: memref<288x1xf32, #tpu.memory_space<vmem>>, %arg4: memref<9x1x128xbf16, #tpu.memory_space<vmem>>, %arg5: memref<1x128xf32, #tpu.memory_space<vmem>>, %arg6: memref<1x128xf32, #tpu.memory_space<vmem>>, %arg7: memref<1x64x128xf32, #tpu.memory_space<vmem>>, %arg8: memref<2x128xf32, #tpu.memory_space<vmem>>, %arg9: memref<2x128xf32, #tpu.memory_space<vmem>>, %arg10: memref<288x128xf32, #tpu.memory_space<vmem>>) attributes {dimension_semantics = [#tpu.dimension_semantics<arbitrary>, #tpu.dimension_semantics<arbitrary>], iteration_bounds = array<i64: 2, 2>, scalar_prefetch = 0 : i64, scratch_operands = 3 : i64, tpu.core_type = #tpu.core_type<tc>, window_params = [{transform_indices = @transform_0, window_bounds = array<i64: 1, 342, 1>}, {pipeline_mode = #tpu.pipeline_mode<synchronous>, transform_indices = @transform_1, window_bounds = array<i64: 288, 1>}, {pipeline_mode = #tpu.pipeline_mode<synchronous>, transform_indices = @transform_2, window_bounds = array<i64: 9, 1, 128>}, {pipeline_mode = #tpu.pipeline_mode<synchronous>, transform_indices = @transform_3, window_bounds = array<i64: 1, 128>}, {pipeline_mode = #tpu.pipeline_mode<synchronous>, transform_indices = @transform_4, window_bounds = array<i64: 1, 128>}, {transform_indices = @transform_5, window_bounds = array<i64: 1, 64, 128>}]} {
    %cst = arith.constant 0.000000e+00 : f32
    %0 = vector.broadcast %cst : f32 to vector<288x128xf32>
    %c0 = arith.constant 0 : index
    %c0_0 = arith.constant 0 : index
    %c0_1 = arith.constant 0 : index
    %1 = vector.load %arg2[%c0, %c0_0, %c0_1] : memref<1x342x1xf32, #tpu.memory_space<vmem>>, vector<1x288x1xf32>
    %2 = vector.shape_cast %1 : vector<1x288x1xf32> to vector<288x1xf32>
    %c0_2 = arith.constant 0 : index
    %c0_3 = arith.constant 0 : index
    %c0_4 = arith.constant 0 : index
    %3 = vector.load %arg4[%c0_2, %c0_3, %c0_4] : memref<9x1x128xbf16, #tpu.memory_space<vmem>>, vector<1x1x128xbf16>
    %4 = vector.shape_cast %3 : vector<1x1x128xbf16> to vector<1x128xbf16>
    %5 = arith.extf %4 : vector<1x128xbf16> to vector<1x128xf32>
    %6 = vector.broadcast %2 : vector<288x1xf32> to vector<288x128xf32>
    %7 = vector.broadcast %5 : vector<1x128xf32> to vector<288x128xf32>
    %8 = arith.mulf %6, %7 : vector<288x128xf32>
    %9 = arith.addf %0, %8 : vector<288x128xf32>
    %c0_5 = arith.constant 0 : index
    %c1 = arith.constant 1 : index
    %c0_6 = arith.constant 0 : index
    %10 = vector.load %arg2[%c0_5, %c1, %c0_6] : memref<1x342x1xf32, #tpu.memory_space<vmem>>, vector<1x288x1xf32>
    %11 = vector.shape_cast %10 : vector<1x288x1xf32> to vector<288x1xf32>
    %c1_7 = arith.constant 1 : index
    %c0_8 = arith.constant 0 : index
    %c0_9 = arith.constant 0 : index
    %12 = vector.load %arg4[%c1_7, %c0_8, %c0_9] : memref<9x1x128xbf16, #tpu.memory_space<vmem>>, vector<1x1x128xbf16>
    %13 = vector.shape_cast %12 : vector<1x1x128xbf16> to vector<1x128xbf16>
    %14 = arith.extf %13 : vector<1x128xbf16> to vector<1x128xf32>
    %15 = vector.broadcast %11 : vector<288x1xf32> to vector<288x128xf32>
    %16 = vector.broadcast %14 : vector<1x128xf32> to vector<288x128xf32>
    %17 = arith.mulf %15, %16 : vector<288x128xf32>
    %18 = arith.addf %9, %17 : vector<288x128xf32>
    %c0_10 = arith.constant 0 : index
    %c2 = arith.constant 2 : index
    %c0_11 = arith.constant 0 : index
    %19 = vector.load %arg2[%c0_10, %c2, %c0_11] : memref<1x342x1xf32, #tpu.memory_space<vmem>>, vector<1x288x1xf32>
    %20 = vector.shape_cast %19 : vector<1x288x1xf32> to vector<288x1xf32>
    %c2_12 = arith.constant 2 : index
    %c0_13 = arith.constant 0 : index
    %c0_14 = arith.constant 0 : index
    %21 = vector.load %arg4[%c2_12, %c0_13, %c0_14] : memref<9x1x128xbf16, #tpu.memory_space<vmem>>, vector<1x1x128xbf16>
    %22 = vector.shape_cast %21 : vector<1x1x128xbf16> to vector<1x128xbf16>
    %23 = arith.extf %22 : vector<1x128xbf16> to vector<1x128xf32>
    %24 = vector.broadcast %20 : vector<288x1xf32> to vector<288x128xf32>
    %25 = vector.broadcast %23 : vector<1x128xf32> to vector<288x128xf32>
    %26 = arith.mulf %24, %25 : vector<288x128xf32>
    %27 = arith.addf %18, %26 : vector<288x128xf32>
    %c0_15 = arith.constant 0 : index
    %c18 = arith.constant 18 : index
    %c0_16 = arith.constant 0 : index
    %28 = vector.load %arg2[%c0_15, %c18, %c0_16] : memref<1x342x1xf32, #tpu.memory_space<vmem>>, vector<1x288x1xf32>
    %29 = vector.shape_cast %28 : vector<1x288x1xf32> to vector<288x1xf32>
    %c3 = arith.constant 3 : index
    %c0_17 = arith.constant 0 : index
    %c0_18 = arith.constant 0 : index
    %30 = vector.load %arg4[%c3, %c0_17, %c0_18] : memref<9x1x128xbf16, #tpu.memory_space<vmem>>, vector<1x1x128xbf16>
    %31 = vector.shape_cast %30 : vector<1x1x128xbf16> to vector<1x128xbf16>
    %32 = arith.extf %31 : vector<1x128xbf16> to vector<1x128xf32>
    %33 = vector.broadcast %29 : vector<288x1xf32> to vector<288x128xf32>
    %34 = vector.broadcast %32 : vector<1x128xf32> to vector<288x128xf32>
    %35 = arith.mulf %33, %34 : vector<288x128xf32>
    %36 = arith.addf %27, %35 : vector<288x128xf32>
    %c0_19 = arith.constant 0 : index
    %c19 = arith.constant 19 : index
    %c0_20 = arith.constant 0 : index
    %37 = vector.load %arg2[%c0_19, %c19, %c0_20] : memref<1x342x1xf32, #tpu.memory_space<vmem>>, vector<1x288x1xf32>
    %38 = vector.shape_cast %37 : vector<1x288x1xf32> to vector<288x1xf32>
    %c4 = arith.constant 4 : index
    %c0_21 = arith.constant 0 : index
    %c0_22 = arith.constant 0 : index
    %39 = vector.load %arg4[%c4, %c0_21, %c0_22] : memref<9x1x128xbf16, #tpu.memory_space<vmem>>, vector<1x1x128xbf16>
    %40 = vector.shape_cast %39 : vector<1x1x128xbf16> to vector<1x128xbf16>
    %41 = arith.extf %40 : vector<1x128xbf16> to vector<1x128xf32>
    %42 = vector.broadcast %38 : vector<288x1xf32> to vector<288x128xf32>
    %43 = vector.broadcast %41 : vector<1x128xf32> to vector<288x128xf32>
    %44 = arith.mulf %42, %43 : vector<288x128xf32>
    %45 = arith.addf %36, %44 : vector<288x128xf32>
    %c0_23 = arith.constant 0 : index
    %c20 = arith.constant 20 : index
    %c0_24 = arith.constant 0 : index
    %46 = vector.load %arg2[%c0_23, %c20, %c0_24] : memref<1x342x1xf32, #tpu.memory_space<vmem>>, vector<1x288x1xf32>
    %47 = vector.shape_cast %46 : vector<1x288x1xf32> to vector<288x1xf32>
    %c5 = arith.constant 5 : index
    %c0_25 = arith.constant 0 : index
    %c0_26 = arith.constant 0 : index
    %48 = vector.load %arg4[%c5, %c0_25, %c0_26] : memref<9x1x128xbf16, #tpu.memory_space<vmem>>, vector<1x1x128xbf16>
    %49 = vector.shape_cast %48 : vector<1x1x128xbf16> to vector<1x128xbf16>
    %50 = arith.extf %49 : vector<1x128xbf16> to vector<1x128xf32>
    %51 = vector.broadcast %47 : vector<288x1xf32> to vector<288x128xf32>
    %52 = vector.broadcast %50 : vector<1x128xf32> to vector<288x128xf32>
    %53 = arith.mulf %51, %52 : vector<288x128xf32>
    %54 = arith.addf %45, %53 : vector<288x128xf32>
    %c0_27 = arith.constant 0 : index
    %c36 = arith.constant 36 : index
    %c0_28 = arith.constant 0 : index
    %55 = vector.load %arg2[%c0_27, %c36, %c0_28] : memref<1x342x1xf32, #tpu.memory_space<vmem>>, vector<1x288x1xf32>
    %56 = vector.shape_cast %55 : vector<1x288x1xf32> to vector<288x1xf32>
    %c6 = arith.constant 6 : index
    %c0_29 = arith.constant 0 : index
    %c0_30 = arith.constant 0 : index
    %57 = vector.load %arg4[%c6, %c0_29, %c0_30] : memref<9x1x128xbf16, #tpu.memory_space<vmem>>, vector<1x1x128xbf16>
    %58 = vector.shape_cast %57 : vector<1x1x128xbf16> to vector<1x128xbf16>
    %59 = arith.extf %58 : vector<1x128xbf16> to vector<1x128xf32>
    %60 = vector.broadcast %56 : vector<288x1xf32> to vector<288x128xf32>
    %61 = vector.broadcast %59 : vector<1x128xf32> to vector<288x128xf32>
    %62 = arith.mulf %60, %61 : vector<288x128xf32>
    %63 = arith.addf %54, %62 : vector<288x128xf32>
    %c0_31 = arith.constant 0 : index
    %c37 = arith.constant 37 : index
    %c0_32 = arith.constant 0 : index
    %64 = vector.load %arg2[%c0_31, %c37, %c0_32] : memref<1x342x1xf32, #tpu.memory_space<vmem>>, vector<1x288x1xf32>
    %65 = vector.shape_cast %64 : vector<1x288x1xf32> to vector<288x1xf32>
    %c7 = arith.constant 7 : index
    %c0_33 = arith.constant 0 : index
    %c0_34 = arith.constant 0 : index
    %66 = vector.load %arg4[%c7, %c0_33, %c0_34] : memref<9x1x128xbf16, #tpu.memory_space<vmem>>, vector<1x1x128xbf16>
    %67 = vector.shape_cast %66 : vector<1x1x128xbf16> to vector<1x128xbf16>
    %68 = arith.extf %67 : vector<1x128xbf16> to vector<1x128xf32>
    %69 = vector.broadcast %65 : vector<288x1xf32> to vector<288x128xf32>
    %70 = vector.broadcast %68 : vector<1x128xf32> to vector<288x128xf32>
    %71 = arith.mulf %69, %70 : vector<288x128xf32>
    %72 = arith.addf %63, %71 : vector<288x128xf32>
    %c0_35 = arith.constant 0 : index
    %c38 = arith.constant 38 : index
    %c0_36 = arith.constant 0 : index
    %73 = vector.load %arg2[%c0_35, %c38, %c0_36] : memref<1x342x1xf32, #tpu.memory_space<vmem>>, vector<1x288x1xf32>
    %74 = vector.shape_cast %73 : vector<1x288x1xf32> to vector<288x1xf32>
    %c8 = arith.constant 8 : index
    %c0_37 = arith.constant 0 : index
    %c0_38 = arith.constant 0 : index
    %75 = vector.load %arg4[%c8, %c0_37, %c0_38] : memref<9x1x128xbf16, #tpu.memory_space<vmem>>, vector<1x1x128xbf16>
    %76 = vector.shape_cast %75 : vector<1x1x128xbf16> to vector<1x128xbf16>
    %77 = arith.extf %76 : vector<1x128xbf16> to vector<1x128xf32>
    %78 = vector.broadcast %74 : vector<288x1xf32> to vector<288x128xf32>
    %79 = vector.broadcast %77 : vector<1x128xf32> to vector<288x128xf32>
    %80 = arith.mulf %78, %79 : vector<288x128xf32>
    %81 = arith.addf %72, %80 : vector<288x128xf32>
    %c0_i32 = arith.constant 0 : i32
    %82 = arith.cmpi eq, %arg0, %c0_i32 : i32
    %c0_i32_39 = arith.constant 0 : i32
    %83 = arith.cmpi eq, %arg1, %c0_i32_39 : i32
    %84 = arith.andi %82, %83 : i1
    %85 = arith.extui %84 : i1 to i32
    %c0_i32_40 = arith.constant 0 : i32
    %86 = arith.cmpi ne, %85, %c0_i32_40 : i32
    scf.if %86 {
      %cst_47 = arith.constant 0.000000e+00 : f32
      %98 = vector.broadcast %cst_47 : f32 to vector<2x128xf32>
      %c0_48 = arith.constant 0 : index
      %c0_49 = arith.constant 0 : index
      %99 = vector.load %arg8[%c0_48, %c0_49] : memref<2x128xf32, #tpu.memory_space<vmem>>, vector<2x128xf32>
      tpu.vector_store %arg8[%c0_48, %c0_49], %98 {strides = array<i32>} : memref<2x128xf32, #tpu.memory_space<vmem>>, vector<2x128xf32>,
    } else {
    }
    %c0_i32_41 = arith.constant 0 : i32
    %87 = arith.cmpi eq, %arg0, %c0_i32_41 : i32
    %88 = arith.extui %87 : i1 to i32
    %c0_i32_42 = arith.constant 0 : i32
    %89 = arith.cmpi ne, %88, %c0_i32_42 : i32
    scf.if %89 {
      %c0_47 = arith.constant 0 : index
      %c0_48 = arith.constant 0 : index
      %98 = vector.load %arg3[%c0_47, %c0_48] : memref<288x1xf32, #tpu.memory_space<vmem>>, vector<288x1xf32>
      %99 = vector.broadcast %98 : vector<288x1xf32> to vector<288x128xf32>
      %100 = arith.mulf %81, %99 : vector<288x128xf32>
      %c0_49 = arith.constant 0 : index
      %c0_50 = arith.constant 0 : index
      %101 = vector.load %arg8[%c0_49, %c0_50] : memref<2x128xf32, #tpu.memory_space<vmem>>, vector<1x128xf32>
      %cst_51 = arith.constant dense<0.000000e+00> : vector<128xf32>
      %102 = vector.multi_reduction <add>, %100, %cst_51 [0] : vector<288x128xf32> to vector<128xf32>
      %103 = vector.shape_cast %102 : vector<128xf32> to vector<1x128xf32>
      %104 = arith.addf %101, %103 : vector<1x128xf32>
      %c0_52 = arith.constant 0 : index
      %c0_53 = arith.constant 0 : index
      %105 = vector.load %arg8[%c0_52, %c0_53] : memref<2x128xf32, #tpu.memory_space<vmem>>, vector<1x128xf32>
      tpu.vector_store %arg8[%c0_52, %c0_53], %104 {strides = array<i32>} : memref<2x128xf32, #tpu.memory_space<vmem>>, vector<1x128xf32>,
      %c1_54 = arith.constant 1 : index
      %c0_55 = arith.constant 0 : index
      %106 = vector.load %arg8[%c1_54, %c0_55] : memref<2x128xf32, #tpu.memory_space<vmem>>, vector<1x128xf32>
      %107 = arith.mulf %100, %100 : vector<288x128xf32>
      %cst_56 = arith.constant dense<0.000000e+00> : vector<128xf32>
      %108 = vector.multi_reduction <add>, %107, %cst_56 [0] : vector<288x128xf32> to vector<128xf32>
      %109 = vector.shape_cast %108 : vector<128xf32> to vector<1x128xf32>
      %110 = arith.addf %106, %109 : vector<1x128xf32>
      %c1_57 = arith.constant 1 : index
      %c0_58 = arith.constant 0 : index
      %111 = vector.load %arg8[%c1_57, %c0_58] : memref<2x128xf32, #tpu.memory_space<vmem>>, vector<1x128xf32>
      tpu.vector_store %arg8[%c1_57, %c0_58], %110 {strides = array<i32>} : memref<2x128xf32, #tpu.memory_space<vmem>>, vector<1x128xf32>,
    } else {
    }
    %c1_i32 = arith.constant 1 : i32
    %90 = arith.cmpi eq, %arg0, %c1_i32 : i32
    %c0_i32_43 = arith.constant 0 : i32
    %91 = arith.cmpi eq, %arg1, %c0_i32_43 : i32
    %92 = arith.andi %90, %91 : i1
    %93 = arith.extui %92 : i1 to i32
    %c0_i32_44 = arith.constant 0 : i32
    %94 = arith.cmpi ne, %93, %c0_i32_44 : i32
    scf.if %94 {
      %c0_47 = arith.constant 0 : index
      %c0_48 = arith.constant 0 : index
      %98 = vector.load %arg8[%c0_47, %c0_48] : memref<2x128xf32, #tpu.memory_space<vmem>>, vector<1x128xf32>
      %cst_49 = arith.constant 0.001953125 : f32
      %99 = vector.broadcast %cst_49 : f32 to vector<1x128xf32>
      %100 = arith.mulf %98, %99 : vector<1x128xf32>
      %c1_50 = arith.constant 1 : index
      %c0_51 = arith.constant 0 : index
      %101 = vector.load %arg8[%c1_50, %c0_51] : memref<2x128xf32, #tpu.memory_space<vmem>>, vector<1x128xf32>
      %cst_52 = arith.constant 0.001953125 : f32
      %102 = vector.broadcast %cst_52 : f32 to vector<1x128xf32>
      %103 = arith.mulf %101, %102 : vector<1x128xf32>
      %104 = arith.mulf %100, %100 : vector<1x128xf32>
      %105 = arith.subf %103, %104 : vector<1x128xf32>
      %cst_53 = arith.constant 0.000000e+00 : f32
      %106 = vector.broadcast %cst_53 : f32 to vector<1x128xf32>
      %107 = arith.maximumf %105, %106 : vector<1x128xf32>
      %c0_54 = arith.constant 0 : index
      %c0_55 = arith.constant 0 : index
      %108 = vector.load %arg5[%c0_54, %c0_55] : memref<1x128xf32, #tpu.memory_space<vmem>>, vector<1x128xf32>
      %cst_56 = arith.constant 9.99999974E-6 : f32
      %109 = vector.broadcast %cst_56 : f32 to vector<1x128xf32>
      %110 = arith.addf %107, %109 : vector<1x128xf32>
      %111 = math.rsqrt %110 : vector<1x128xf32>
      %112 = arith.mulf %108, %111 : vector<1x128xf32>
      %c0_57 = arith.constant 0 : index
      %c0_58 = arith.constant 0 : index
      %113 = vector.load %arg9[%c0_57, %c0_58] : memref<2x128xf32, #tpu.memory_space<vmem>>, vector<1x128xf32>
      tpu.vector_store %arg9[%c0_57, %c0_58], %112 {strides = array<i32>} : memref<2x128xf32, #tpu.memory_space<vmem>>, vector<1x128xf32>,
      %c0_59 = arith.constant 0 : index
      %c0_60 = arith.constant 0 : index
      %114 = vector.load %arg6[%c0_59, %c0_60] : memref<1x128xf32, #tpu.memory_space<vmem>>, vector<1x128xf32>
      %115 = arith.mulf %100, %112 : vector<1x128xf32>
      %116 = arith.subf %114, %115 : vector<1x128xf32>
      %c1_61 = arith.constant 1 : index
      %c0_62 = arith.constant 0 : index
      %117 = vector.load %arg9[%c1_61, %c0_62] : memref<2x128xf32, #tpu.memory_space<vmem>>, vector<1x128xf32>
      tpu.vector_store %arg9[%c1_61, %c0_62], %116 {strides = array<i32>} : memref<2x128xf32, #tpu.memory_space<vmem>>, vector<1x128xf32>,
    } else {
    }
    %c1_i32_45 = arith.constant 1 : i32
    %95 = arith.cmpi eq, %arg0, %c1_i32_45 : i32
    %96 = arith.extui %95 : i1 to i32
    %c0_i32_46 = arith.constant 0 : i32
    %97 = arith.cmpi ne, %96, %c0_i32_46 : i32
    scf.if %97 {
      %c0_47 = arith.constant 0 : index
      %c0_48 = arith.constant 0 : index
      %98 = vector.load %arg9[%c0_47, %c0_48] : memref<2x128xf32, #tpu.memory_space<vmem>>, vector<1x128xf32>
      %99 = vector.broadcast %98 : vector<1x128xf32> to vector<288x128xf32>
      %100 = arith.mulf %81, %99 : vector<288x128xf32>
      %c1_49 = arith.constant 1 : index
      %c0_50 = arith.constant 0 : index
      %101 = vector.load %arg9[%c1_49, %c0_50] : memref<2x128xf32, #tpu.memory_space<vmem>>, vector<1x128xf32>
      %102 = vector.broadcast %101 : vector<1x128xf32> to vector<288x128xf32>
      %103 = arith.addf %100, %102 : vector<288x128xf32>
      %cst_51 = arith.constant 0.000000e+00 : f32
      %104 = vector.broadcast %cst_51 : f32 to vector<288x128xf32>
      %105 = arith.maximumf %103, %104 : vector<288x128xf32>
      %c0_52 = arith.constant 0 : index
      %c0_53 = arith.constant 0 : index
      %106 = vector.load %arg10[%c0_52, %c0_53] : memref<288x128xf32, #tpu.memory_space<vmem>>, vector<288x128xf32>
      tpu.vector_store %arg10[%c0_52, %c0_53], %105 {strides = array<i32>} : memref<288x128xf32, #tpu.memory_space<vmem>>, vector<288x128xf32>,
      %c0_54 = arith.constant 0 : index
      %c0_55 = arith.constant 0 : index
      %107 = tpu.strided_load %arg10[%c0_54, %c0_55] {strides = array<i32: 2, 1>} : memref<288x128xf32, #tpu.memory_space<vmem>>, vector<8x128xf32>
      %c1_56 = arith.constant 1 : index
      %c0_57 = arith.constant 0 : index
      %108 = tpu.strided_load %arg10[%c1_56, %c0_57] {strides = array<i32: 2, 1>} : memref<288x128xf32, #tpu.memory_space<vmem>>, vector<8x128xf32>
      %109 = arith.maximumf %107, %108 : vector<8x128xf32>
      %c18_58 = arith.constant 18 : index
      %c0_59 = arith.constant 0 : index
      %110 = tpu.strided_load %arg10[%c18_58, %c0_59] {strides = array<i32: 2, 1>} : memref<288x128xf32, #tpu.memory_space<vmem>>, vector<8x128xf32>
      %111 = arith.maximumf %109, %110 : vector<8x128xf32>
      %c19_60 = arith.constant 19 : index
      %c0_61 = arith.constant 0 : index
      %112 = tpu.strided_load %arg10[%c19_60, %c0_61] {strides = array<i32: 2, 1>} : memref<288x128xf32, #tpu.memory_space<vmem>>, vector<8x128xf32>
      %113 = arith.maximumf %111, %112 : vector<8x128xf32>
      %c0_62 = arith.constant 0 : index
      %c0_63 = arith.constant 0 : index
      %c0_64 = arith.constant 0 : index
      %114 = vector.load %arg7[%c0_62, %c0_63, %c0_64] : memref<1x64x128xf32, #tpu.memory_space<vmem>>, vector<1x8x128xf32>
      %115 = vector.shape_cast %114 : vector<1x8x128xf32> to vector<8x128xf32>
      %116 = vector.shape_cast %113 : vector<8x128xf32> to vector<1x8x128xf32>
      tpu.vector_store %arg7[%c0_62, %c0_63, %c0_64], %116 {strides = array<i32>} : memref<1x64x128xf32, #tpu.memory_space<vmem>>, vector<1x8x128xf32>,
      %c36_65 = arith.constant 36 : index
      %c0_66 = arith.constant 0 : index
      %117 = tpu.strided_load %arg10[%c36_65, %c0_66] {strides = array<i32: 2, 1>} : memref<288x128xf32, #tpu.memory_space<vmem>>, vector<8x128xf32>
      %c37_67 = arith.constant 37 : index
      %c0_68 = arith.constant 0 : index
      %118 = tpu.strided_load %arg10[%c37_67, %c0_68] {strides = array<i32: 2, 1>} : memref<288x128xf32, #tpu.memory_space<vmem>>, vector<8x128xf32>
      %119 = arith.maximumf %117, %118 : vector<8x128xf32>
      %c54 = arith.constant 54 : index
      %c0_69 = arith.constant 0 : index
      %120 = tpu.strided_load %arg10[%c54, %c0_69] {strides = array<i32: 2, 1>} : memref<288x128xf32, #tpu.memory_space<vmem>>, vector<8x128xf32>
      %121 = arith.maximumf %119, %120 : vector<8x128xf32>
      %c55 = arith.constant 55 : index
      %c0_70 = arith.constant 0 : index
      %122 = tpu.strided_load %arg10[%c55, %c0_70] {strides = array<i32: 2, 1>} : memref<288x128xf32, #tpu.memory_space<vmem>>, vector<8x128xf32>
      %123 = arith.maximumf %121, %122 : vector<8x128xf32>
      %c0_71 = arith.constant 0 : index
      %c8_72 = arith.constant 8 : index
      %c0_73 = arith.constant 0 : index
      %124 = vector.load %arg7[%c0_71, %c8_72, %c0_73] : memref<1x64x128xf32, #tpu.memory_space<vmem>>, vector<1x8x128xf32>
      %125 = vector.shape_cast %124 : vector<1x8x128xf32> to vector<8x128xf32>
      %126 = vector.shape_cast %123 : vector<8x128xf32> to vector<1x8x128xf32>
      tpu.vector_store %arg7[%c0_71, %c8_72, %c0_73], %126 {strides = array<i32>} : memref<1x64x128xf32, #tpu.memory_space<vmem>>, vector<1x8x128xf32>,
      %c72 = arith.constant 72 : index
      %c0_74 = arith.constant 0 : index
      %127 = tpu.strided_load %arg10[%c72, %c0_74] {strides = array<i32: 2, 1>} : memref<288x128xf32, #tpu.memory_space<vmem>>, vector<8x128xf32>
      %c73 = arith.constant 73 : index
      %c0_75 = arith.constant 0 : index
      %128 = tpu.strided_load %arg10[%c73, %c0_75] {strides = array<i32: 2, 1>} : memref<288x128xf32, #tpu.memory_space<vmem>>, vector<8x128xf32>
      %129 = arith.maximumf %127, %128 : vector<8x128xf32>
      %c90 = arith.constant 90 : index
      %c0_76 = arith.constant 0 : index
      %130 = tpu.strided_load %arg10[%c90, %c0_76] {strides = array<i32: 2, 1>} : memref<288x128xf32, #tpu.memory_space<vmem>>, vector<8x128xf32>
      %131 = arith.maximumf %129, %130 : vector<8x128xf32>
      %c91 = arith.constant 91 : index
      %c0_77 = arith.constant 0 : index
      %132 = tpu.strided_load %arg10[%c91, %c0_77] {strides = array<i32: 2, 1>} : memref<288x128xf32, #tpu.memory_space<vmem>>, vector<8x128xf32>
      %133 = arith.maximumf %131, %132 : vector<8x128xf32>
      %c0_78 = arith.constant 0 : index
      %c16 = arith.constant 16 : index
      %c0_79 = arith.constant 0 : index
      %134 = vector.load %arg7[%c0_78, %c16, %c0_79] : memref<1x64x128xf32, #tpu.memory_space<vmem>>, vector<1x8x128xf32>
      %135 = vector.shape_cast %134 : vector<1x8x128xf32> to vector<8x128xf32>
      %136 = vector.shape_cast %133 : vector<8x128xf32> to vector<1x8x128xf32>
      tpu.vector_store %arg7[%c0_78, %c16, %c0_79], %136 {strides = array<i32>} : memref<1x64x128xf32, #tpu.memory_space<vmem>>, vector<1x8x128xf32>,
      %c108 = arith.constant 108 : index
      %c0_80 = arith.constant 0 : index
      %137 = tpu.strided_load %arg10[%c108, %c0_80] {strides = array<i32: 2, 1>} : memref<288x128xf32, #tpu.memory_space<vmem>>, vector<8x128xf32>
      %c109 = arith.constant 109 : index
      %c0_81 = arith.constant 0 : index
      %138 = tpu.strided_load %arg10[%c109, %c0_81] {strides = array<i32: 2, 1>} : memref<288x128xf32, #tpu.memory_space<vmem>>, vector<8x128xf32>
      %139 = arith.maximumf %137, %138 : vector<8x128xf32>
      %c126 = arith.constant 126 : index
      %c0_82 = arith.constant 0 : index
      %140 = tpu.strided_load %arg10[%c126, %c0_82] {strides = array<i32: 2, 1>} : memref<288x128xf32, #tpu.memory_space<vmem>>, vector<8x128xf32>
      %141 = arith.maximumf %139, %140 : vector<8x128xf32>
      %c127 = arith.constant 127 : index
      %c0_83 = arith.constant 0 : index
      %142 = tpu.strided_load %arg10[%c127, %c0_83] {strides = array<i32: 2, 1>} : memref<288x128xf32, #tpu.memory_space<vmem>>, vector<8x128xf32>
      %143 = arith.maximumf %141, %142 : vector<8x128xf32>
      %c0_84 = arith.constant 0 : index
      %c24 = arith.constant 24 : index
      %c0_85 = arith.constant 0 : index
      %144 = vector.load %arg7[%c0_84, %c24, %c0_85] : memref<1x64x128xf32, #tpu.memory_space<vmem>>, vector<1x8x128xf32>
      %145 = vector.shape_cast %144 : vector<1x8x128xf32> to vector<8x128xf32>
      %146 = vector.shape_cast %143 : vector<8x128xf32> to vector<1x8x128xf32>
      tpu.vector_store %arg7[%c0_84, %c24, %c0_85], %146 {strides = array<i32>} : memref<1x64x128xf32, #tpu.memory_space<vmem>>, vector<1x8x128xf32>,
      %c144 = arith.constant 144 : index
      %c0_86 = arith.constant 0 : index
      %147 = tpu.strided_load %arg10[%c144, %c0_86] {strides = array<i32: 2, 1>} : memref<288x128xf32, #tpu.memory_space<vmem>>, vector<8x128xf32>
      %c145 = arith.constant 145 : index
      %c0_87 = arith.constant 0 : index
      %148 = tpu.strided_load %arg10[%c145, %c0_87] {strides = array<i32: 2, 1>} : memref<288x128xf32, #tpu.memory_space<vmem>>, vector<8x128xf32>
      %149 = arith.maximumf %147, %148 : vector<8x128xf32>
      %c162 = arith.constant 162 : index
      %c0_88 = arith.constant 0 : index
      %150 = tpu.strided_load %arg10[%c162, %c0_88] {strides = array<i32: 2, 1>} : memref<288x128xf32, #tpu.memory_space<vmem>>, vector<8x128xf32>
      %151 = arith.maximumf %149, %150 : vector<8x128xf32>
      %c163 = arith.constant 163 : index
      %c0_89 = arith.constant 0 : index
      %152 = tpu.strided_load %arg10[%c163, %c0_89] {strides = array<i32: 2, 1>} : memref<288x128xf32, #tpu.memory_space<vmem>>, vector<8x128xf32>
      %153 = arith.maximumf %151, %152 : vector<8x128xf32>
      %c0_90 = arith.constant 0 : index
      %c32 = arith.constant 32 : index
      %c0_91 = arith.constant 0 : index
      %154 = vector.load %arg7[%c0_90, %c32, %c0_91] : memref<1x64x128xf32, #tpu.memory_space<vmem>>, vector<1x8x128xf32>
      %155 = vector.shape_cast %154 : vector<1x8x128xf32> to vector<8x128xf32>
      %156 = vector.shape_cast %153 : vector<8x128xf32> to vector<1x8x128xf32>
      tpu.vector_store %arg7[%c0_90, %c32, %c0_91], %156 {strides = array<i32>} : memref<1x64x128xf32, #tpu.memory_space<vmem>>, vector<1x8x128xf32>,
      %c180 = arith.constant 180 : index
      %c0_92 = arith.constant 0 : index
      %157 = tpu.strided_load %arg10[%c180, %c0_92] {strides = array<i32: 2, 1>} : memref<288x128xf32, #tpu.memory_space<vmem>>, vector<8x128xf32>
      %c181 = arith.constant 181 : index
      %c0_93 = arith.constant 0 : index
      %158 = tpu.strided_load %arg10[%c181, %c0_93] {strides = array<i32: 2, 1>} : memref<288x128xf32, #tpu.memory_space<vmem>>, vector<8x128xf32>
      %159 = arith.maximumf %157, %158 : vector<8x128xf32>
      %c198 = arith.constant 198 : index
      %c0_94 = arith.constant 0 : index
      %160 = tpu.strided_load %arg10[%c198, %c0_94] {strides = array<i32: 2, 1>} : memref<288x128xf32, #tpu.memory_space<vmem>>, vector<8x128xf32>
      %161 = arith.maximumf %159, %160 : vector<8x128xf32>
      %c199 = arith.constant 199 : index
      %c0_95 = arith.constant 0 : index
      %162 = tpu.strided_load %arg10[%c199, %c0_95] {strides = array<i32: 2, 1>} : memref<288x128xf32, #tpu.memory_space<vmem>>, vector<8x128xf32>
      %163 = arith.maximumf %161, %162 : vector<8x128xf32>
      %c0_96 = arith.constant 0 : index
      %c40 = arith.constant 40 : index
      %c0_97 = arith.constant 0 : index
      %164 = vector.load %arg7[%c0_96, %c40, %c0_97] : memref<1x64x128xf32, #tpu.memory_space<vmem>>, vector<1x8x128xf32>
      %165 = vector.shape_cast %164 : vector<1x8x128xf32> to vector<8x128xf32>
      %166 = vector.shape_cast %163 : vector<8x128xf32> to vector<1x8x128xf32>
      tpu.vector_store %arg7[%c0_96, %c40, %c0_97], %166 {strides = array<i32>} : memref<1x64x128xf32, #tpu.memory_space<vmem>>, vector<1x8x128xf32>,
      %c216 = arith.constant 216 : index
      %c0_98 = arith.constant 0 : index
      %167 = tpu.strided_load %arg10[%c216, %c0_98] {strides = array<i32: 2, 1>} : memref<288x128xf32, #tpu.memory_space<vmem>>, vector<8x128xf32>
      %c217 = arith.constant 217 : index
      %c0_99 = arith.constant 0 : index
      %168 = tpu.strided_load %arg10[%c217, %c0_99] {strides = array<i32: 2, 1>} : memref<288x128xf32, #tpu.memory_space<vmem>>, vector<8x128xf32>
      %169 = arith.maximumf %167, %168 : vector<8x128xf32>
      %c234 = arith.constant 234 : index
      %c0_100 = arith.constant 0 : index
      %170 = tpu.strided_load %arg10[%c234, %c0_100] {strides = array<i32: 2, 1>} : memref<288x128xf32, #tpu.memory_space<vmem>>, vector<8x128xf32>
      %171 = arith.maximumf %169, %170 : vector<8x128xf32>
      %c235 = arith.constant 235 : index
      %c0_101 = arith.constant 0 : index
      %172 = tpu.strided_load %arg10[%c235, %c0_101] {strides = array<i32: 2, 1>} : memref<288x128xf32, #tpu.memory_space<vmem>>, vector<8x128xf32>
      %173 = arith.maximumf %171, %172 : vector<8x128xf32>
      %c0_102 = arith.constant 0 : index
      %c48 = arith.constant 48 : index
      %c0_103 = arith.constant 0 : index
      %174 = vector.load %arg7[%c0_102, %c48, %c0_103] : memref<1x64x128xf32, #tpu.memory_space<vmem>>, vector<1x8x128xf32>
      %175 = vector.shape_cast %174 : vector<1x8x128xf32> to vector<8x128xf32>
      %176 = vector.shape_cast %173 : vector<8x128xf32> to vector<1x8x128xf32>
      tpu.vector_store %arg7[%c0_102, %c48, %c0_103], %176 {strides = array<i32>} : memref<1x64x128xf32, #tpu.memory_space<vmem>>, vector<1x8x128xf32>,
      %c252 = arith.constant 252 : index
      %c0_104 = arith.constant 0 : index
      %177 = tpu.strided_load %arg10[%c252, %c0_104] {strides = array<i32: 2, 1>} : memref<288x128xf32, #tpu.memory_space<vmem>>, vector<8x128xf32>
      %c253 = arith.constant 253 : index
      %c0_105 = arith.constant 0 : index
      %178 = tpu.strided_load %arg10[%c253, %c0_105] {strides = array<i32: 2, 1>} : memref<288x128xf32, #tpu.memory_space<vmem>>, vector<8x128xf32>
      %179 = arith.maximumf %177, %178 : vector<8x128xf32>
      %c270 = arith.constant 270 : index
      %c0_106 = arith.constant 0 : index
      %180 = tpu.strided_load %arg10[%c270, %c0_106] {strides = array<i32: 2, 1>} : memref<288x128xf32, #tpu.memory_space<vmem>>, vector<8x128xf32>
      %181 = arith.maximumf %179, %180 : vector<8x128xf32>
      %c271 = arith.constant 271 : index
      %c0_107 = arith.constant 0 : index
      %182 = tpu.strided_load %arg10[%c271, %c0_107] {strides = array<i32: 2, 1>} : memref<288x128xf32, #tpu.memory_space<vmem>>, vector<8x128xf32>
      %183 = arith.maximumf %181, %182 : vector<8x128xf32>
      %c0_108 = arith.constant 0 : index
      %c56 = arith.constant 56 : index
      %c0_109 = arith.constant 0 : index
      %184 = vector.load %arg7[%c0_108, %c56, %c0_109] : memref<1x64x128xf32, #tpu.memory_space<vmem>>, vector<1x8x128xf32>
      %185 = vector.shape_cast %184 : vector<1x8x128xf32> to vector<8x128xf32>
      %186 = vector.shape_cast %183 : vector<8x128xf32> to vector<1x8x128xf32>
      tpu.vector_store %arg7[%c0_108, %c56, %c0_109], %186 {strides = array<i32>} : memref<1x64x128xf32, #tpu.memory_space<vmem>>, vector<1x8x128xf32>,
    } else {
    }
    return
  }
  func.func @transform_0(%arg0: i32, %arg1: i32) -> (i32, i32, i32) {
    %c0_i32 = arith.constant 0 : i32
    %c0_i32_0 = arith.constant 0 : i32
    %c0_i32_1 = arith.constant 0 : i32
    return %arg1, %c0_i32, %c0_i32_0 : i32, i32, i32
  }
  func.func @transform_1(%arg0: i32, %arg1: i32) -> (i32, i32) {
    %c0_i32 = arith.constant 0 : i32
    %c0_i32_0 = arith.constant 0 : i32
    %c0_i32_1 = arith.constant 0 : i32
    return %c0_i32, %c0_i32_0 : i32, i32
  }
  func.func @transform_2(%arg0: i32, %arg1: i32) -> (i32, i32, i32) {
    %c0_i32 = arith.constant 0 : i32
    %c0_i32_0 = arith.constant 0 : i32
    %c0_i32_1 = arith.constant 0 : i32
    %c0_i32_2 = arith.constant 0 : i32
    return %c0_i32, %c0_i32_0, %c0_i32_1 : i32, i32, i32
  }
  func.func @transform_3(%arg0: i32, %arg1: i32) -> (i32, i32) {
    %c0_i32 = arith.constant 0 : i32
    %c0_i32_0 = arith.constant 0 : i32
    %c0_i32_1 = arith.constant 0 : i32
    return %c0_i32, %c0_i32_0 : i32, i32
  }
  func.func @transform_4(%arg0: i32, %arg1: i32) -> (i32, i32) {
    %c0_i32 = arith.constant 0 : i32
    %c0_i32_0 = arith.constant 0 : i32
    %c0_i32_1 = arith.constant 0 : i32
    return %c0_i32, %c0_i32_0 : i32, i32
  }
  func.func @transform_5(%arg0: i32, %arg1: i32) -> (i32, i32, i32) {
    %0 = arith.muli %arg0, %arg1 : i32
    %c0_i32 = arith.constant 0 : i32
    %c0_i32_0 = arith.constant 0 : i32
    %c0_i32_1 = arith.constant 0 : i32
    return %0, %c0_i32, %c0_i32_0 : i32, i32, i32
  }
}

module attributes {stable_mosaic.version = 11 : i64} {
  func.func @_lflb_kernel(%arg0: i32, %arg1: i32, %arg2: memref<1x110x4xf32, #tpu.memory_space<vmem>>, %arg3: memref<80x1xf32, #tpu.memory_space<vmem>>, %arg4: memref<9x4x128xbf16, #tpu.memory_space<vmem>>, %arg5: memref<1x128xf32, #tpu.memory_space<vmem>>, %arg6: memref<1x128xf32, #tpu.memory_space<vmem>>, %arg7: memref<1x16x128xf32, #tpu.memory_space<vmem>>, %arg8: memref<2x128xf32, #tpu.memory_space<vmem>>, %arg9: memref<2x128xf32, #tpu.memory_space<vmem>>, %arg10: memref<80x128xf32, #tpu.memory_space<vmem>>) attributes {dimension_semantics = [#tpu.dimension_semantics<arbitrary>, #tpu.dimension_semantics<arbitrary>], iteration_bounds = array<i64: 2, 2>, scalar_prefetch = 0 : i64, scratch_operands = 3 : i64, tpu.core_type = #tpu.core_type<tc>, window_params = [{transform_indices = @transform_0, window_bounds = array<i64: 1, 110, 4>}, {pipeline_mode = #tpu.pipeline_mode<synchronous>, transform_indices = @transform_1, window_bounds = array<i64: 80, 1>}, {pipeline_mode = #tpu.pipeline_mode<synchronous>, transform_indices = @transform_2, window_bounds = array<i64: 9, 4, 128>}, {pipeline_mode = #tpu.pipeline_mode<synchronous>, transform_indices = @transform_3, window_bounds = array<i64: 1, 128>}, {pipeline_mode = #tpu.pipeline_mode<synchronous>, transform_indices = @transform_4, window_bounds = array<i64: 1, 128>}, {transform_indices = @transform_5, window_bounds = array<i64: 1, 16, 128>}]} {
    %cst = arith.constant 0.000000e+00 : f32
    %0 = vector.broadcast %cst : f32 to vector<80x128xf32>
    %c0 = arith.constant 0 : index
    %c0_0 = arith.constant 0 : index
    %c0_1 = arith.constant 0 : index
    %1 = vector.load %arg2[%c0, %c0_0, %c0_1] : memref<1x110x4xf32, #tpu.memory_space<vmem>>, vector<1x80x4xf32>
    %2 = vector.shape_cast %1 : vector<1x80x4xf32> to vector<80x4xf32>
    %c0_2 = arith.constant 0 : index
    %c0_3 = arith.constant 0 : index
    %c0_4 = arith.constant 0 : index
    %3 = vector.load %arg4[%c0_2, %c0_3, %c0_4] : memref<9x4x128xbf16, #tpu.memory_space<vmem>>, vector<1x4x128xbf16>
    %4 = vector.shape_cast %3 : vector<1x4x128xbf16> to vector<4x128xbf16>
    %5 = arith.truncf %2 : vector<80x4xf32> to vector<80x4xbf16>
    %cst_5 = arith.constant dense<0.000000e+00> : vector<80x128xf32>
    %6 = tpu.matmul %5, %4, %cst_5 {dimension_numbers = #tpu.dot_dimension_numbers<[1], [0], [0], [1], [0, 0, 1, 1], [], []>} : vector<80x4xbf16>, vector<4x128xbf16>, vector<80x128xf32> -> vector<80x128xf32>
    %7 = arith.addf %0, %6 : vector<80x128xf32>
    %c0_6 = arith.constant 0 : index
    %c1 = arith.constant 1 : index
    %c0_7 = arith.constant 0 : index
    %8 = vector.load %arg2[%c0_6, %c1, %c0_7] : memref<1x110x4xf32, #tpu.memory_space<vmem>>, vector<1x80x4xf32>
    %9 = vector.shape_cast %8 : vector<1x80x4xf32> to vector<80x4xf32>
    %c1_8 = arith.constant 1 : index
    %c0_9 = arith.constant 0 : index
    %c0_10 = arith.constant 0 : index
    %10 = vector.load %arg4[%c1_8, %c0_9, %c0_10] : memref<9x4x128xbf16, #tpu.memory_space<vmem>>, vector<1x4x128xbf16>
    %11 = vector.shape_cast %10 : vector<1x4x128xbf16> to vector<4x128xbf16>
    %12 = arith.truncf %9 : vector<80x4xf32> to vector<80x4xbf16>
    %cst_11 = arith.constant dense<0.000000e+00> : vector<80x128xf32>
    %13 = tpu.matmul %12, %11, %cst_11 {dimension_numbers = #tpu.dot_dimension_numbers<[1], [0], [0], [1], [0, 0, 1, 1], [], []>} : vector<80x4xbf16>, vector<4x128xbf16>, vector<80x128xf32> -> vector<80x128xf32>
    %14 = arith.addf %7, %13 : vector<80x128xf32>
    %c0_12 = arith.constant 0 : index
    %c2 = arith.constant 2 : index
    %c0_13 = arith.constant 0 : index
    %15 = vector.load %arg2[%c0_12, %c2, %c0_13] : memref<1x110x4xf32, #tpu.memory_space<vmem>>, vector<1x80x4xf32>
    %16 = vector.shape_cast %15 : vector<1x80x4xf32> to vector<80x4xf32>
    %c2_14 = arith.constant 2 : index
    %c0_15 = arith.constant 0 : index
    %c0_16 = arith.constant 0 : index
    %17 = vector.load %arg4[%c2_14, %c0_15, %c0_16] : memref<9x4x128xbf16, #tpu.memory_space<vmem>>, vector<1x4x128xbf16>
    %18 = vector.shape_cast %17 : vector<1x4x128xbf16> to vector<4x128xbf16>
    %19 = arith.truncf %16 : vector<80x4xf32> to vector<80x4xbf16>
    %cst_17 = arith.constant dense<0.000000e+00> : vector<80x128xf32>
    %20 = tpu.matmul %19, %18, %cst_17 {dimension_numbers = #tpu.dot_dimension_numbers<[1], [0], [0], [1], [0, 0, 1, 1], [], []>} : vector<80x4xbf16>, vector<4x128xbf16>, vector<80x128xf32> -> vector<80x128xf32>
    %21 = arith.addf %14, %20 : vector<80x128xf32>
    %c0_18 = arith.constant 0 : index
    %c10 = arith.constant 10 : index
    %c0_19 = arith.constant 0 : index
    %22 = vector.load %arg2[%c0_18, %c10, %c0_19] : memref<1x110x4xf32, #tpu.memory_space<vmem>>, vector<1x80x4xf32>
    %23 = vector.shape_cast %22 : vector<1x80x4xf32> to vector<80x4xf32>
    %c3 = arith.constant 3 : index
    %c0_20 = arith.constant 0 : index
    %c0_21 = arith.constant 0 : index
    %24 = vector.load %arg4[%c3, %c0_20, %c0_21] : memref<9x4x128xbf16, #tpu.memory_space<vmem>>, vector<1x4x128xbf16>
    %25 = vector.shape_cast %24 : vector<1x4x128xbf16> to vector<4x128xbf16>
    %26 = arith.truncf %23 : vector<80x4xf32> to vector<80x4xbf16>
    %cst_22 = arith.constant dense<0.000000e+00> : vector<80x128xf32>
    %27 = tpu.matmul %26, %25, %cst_22 {dimension_numbers = #tpu.dot_dimension_numbers<[1], [0], [0], [1], [0, 0, 1, 1], [], []>} : vector<80x4xbf16>, vector<4x128xbf16>, vector<80x128xf32> -> vector<80x128xf32>
    %28 = arith.addf %21, %27 : vector<80x128xf32>
    %c0_23 = arith.constant 0 : index
    %c11 = arith.constant 11 : index
    %c0_24 = arith.constant 0 : index
    %29 = vector.load %arg2[%c0_23, %c11, %c0_24] : memref<1x110x4xf32, #tpu.memory_space<vmem>>, vector<1x80x4xf32>
    %30 = vector.shape_cast %29 : vector<1x80x4xf32> to vector<80x4xf32>
    %c4 = arith.constant 4 : index
    %c0_25 = arith.constant 0 : index
    %c0_26 = arith.constant 0 : index
    %31 = vector.load %arg4[%c4, %c0_25, %c0_26] : memref<9x4x128xbf16, #tpu.memory_space<vmem>>, vector<1x4x128xbf16>
    %32 = vector.shape_cast %31 : vector<1x4x128xbf16> to vector<4x128xbf16>
    %33 = arith.truncf %30 : vector<80x4xf32> to vector<80x4xbf16>
    %cst_27 = arith.constant dense<0.000000e+00> : vector<80x128xf32>
    %34 = tpu.matmul %33, %32, %cst_27 {dimension_numbers = #tpu.dot_dimension_numbers<[1], [0], [0], [1], [0, 0, 1, 1], [], []>} : vector<80x4xbf16>, vector<4x128xbf16>, vector<80x128xf32> -> vector<80x128xf32>
    %35 = arith.addf %28, %34 : vector<80x128xf32>
    %c0_28 = arith.constant 0 : index
    %c12 = arith.constant 12 : index
    %c0_29 = arith.constant 0 : index
    %36 = vector.load %arg2[%c0_28, %c12, %c0_29] : memref<1x110x4xf32, #tpu.memory_space<vmem>>, vector<1x80x4xf32>
    %37 = vector.shape_cast %36 : vector<1x80x4xf32> to vector<80x4xf32>
    %c5 = arith.constant 5 : index
    %c0_30 = arith.constant 0 : index
    %c0_31 = arith.constant 0 : index
    %38 = vector.load %arg4[%c5, %c0_30, %c0_31] : memref<9x4x128xbf16, #tpu.memory_space<vmem>>, vector<1x4x128xbf16>
    %39 = vector.shape_cast %38 : vector<1x4x128xbf16> to vector<4x128xbf16>
    %40 = arith.truncf %37 : vector<80x4xf32> to vector<80x4xbf16>
    %cst_32 = arith.constant dense<0.000000e+00> : vector<80x128xf32>
    %41 = tpu.matmul %40, %39, %cst_32 {dimension_numbers = #tpu.dot_dimension_numbers<[1], [0], [0], [1], [0, 0, 1, 1], [], []>} : vector<80x4xbf16>, vector<4x128xbf16>, vector<80x128xf32> -> vector<80x128xf32>
    %42 = arith.addf %35, %41 : vector<80x128xf32>
    %c0_33 = arith.constant 0 : index
    %c20 = arith.constant 20 : index
    %c0_34 = arith.constant 0 : index
    %43 = vector.load %arg2[%c0_33, %c20, %c0_34] : memref<1x110x4xf32, #tpu.memory_space<vmem>>, vector<1x80x4xf32>
    %44 = vector.shape_cast %43 : vector<1x80x4xf32> to vector<80x4xf32>
    %c6 = arith.constant 6 : index
    %c0_35 = arith.constant 0 : index
    %c0_36 = arith.constant 0 : index
    %45 = vector.load %arg4[%c6, %c0_35, %c0_36] : memref<9x4x128xbf16, #tpu.memory_space<vmem>>, vector<1x4x128xbf16>
    %46 = vector.shape_cast %45 : vector<1x4x128xbf16> to vector<4x128xbf16>
    %47 = arith.truncf %44 : vector<80x4xf32> to vector<80x4xbf16>
    %cst_37 = arith.constant dense<0.000000e+00> : vector<80x128xf32>
    %48 = tpu.matmul %47, %46, %cst_37 {dimension_numbers = #tpu.dot_dimension_numbers<[1], [0], [0], [1], [0, 0, 1, 1], [], []>} : vector<80x4xbf16>, vector<4x128xbf16>, vector<80x128xf32> -> vector<80x128xf32>
    %49 = arith.addf %42, %48 : vector<80x128xf32>
    %c0_38 = arith.constant 0 : index
    %c21 = arith.constant 21 : index
    %c0_39 = arith.constant 0 : index
    %50 = vector.load %arg2[%c0_38, %c21, %c0_39] : memref<1x110x4xf32, #tpu.memory_space<vmem>>, vector<1x80x4xf32>
    %51 = vector.shape_cast %50 : vector<1x80x4xf32> to vector<80x4xf32>
    %c7 = arith.constant 7 : index
    %c0_40 = arith.constant 0 : index
    %c0_41 = arith.constant 0 : index
    %52 = vector.load %arg4[%c7, %c0_40, %c0_41] : memref<9x4x128xbf16, #tpu.memory_space<vmem>>, vector<1x4x128xbf16>
    %53 = vector.shape_cast %52 : vector<1x4x128xbf16> to vector<4x128xbf16>
    %54 = arith.truncf %51 : vector<80x4xf32> to vector<80x4xbf16>
    %cst_42 = arith.constant dense<0.000000e+00> : vector<80x128xf32>
    %55 = tpu.matmul %54, %53, %cst_42 {dimension_numbers = #tpu.dot_dimension_numbers<[1], [0], [0], [1], [0, 0, 1, 1], [], []>} : vector<80x4xbf16>, vector<4x128xbf16>, vector<80x128xf32> -> vector<80x128xf32>
    %56 = arith.addf %49, %55 : vector<80x128xf32>
    %c0_43 = arith.constant 0 : index
    %c22 = arith.constant 22 : index
    %c0_44 = arith.constant 0 : index
    %57 = vector.load %arg2[%c0_43, %c22, %c0_44] : memref<1x110x4xf32, #tpu.memory_space<vmem>>, vector<1x80x4xf32>
    %58 = vector.shape_cast %57 : vector<1x80x4xf32> to vector<80x4xf32>
    %c8 = arith.constant 8 : index
    %c0_45 = arith.constant 0 : index
    %c0_46 = arith.constant 0 : index
    %59 = vector.load %arg4[%c8, %c0_45, %c0_46] : memref<9x4x128xbf16, #tpu.memory_space<vmem>>, vector<1x4x128xbf16>
    %60 = vector.shape_cast %59 : vector<1x4x128xbf16> to vector<4x128xbf16>
    %61 = arith.truncf %58 : vector<80x4xf32> to vector<80x4xbf16>
    %cst_47 = arith.constant dense<0.000000e+00> : vector<80x128xf32>
    %62 = tpu.matmul %61, %60, %cst_47 {dimension_numbers = #tpu.dot_dimension_numbers<[1], [0], [0], [1], [0, 0, 1, 1], [], []>} : vector<80x4xbf16>, vector<4x128xbf16>, vector<80x128xf32> -> vector<80x128xf32>
    %63 = arith.addf %56, %62 : vector<80x128xf32>
    %c0_i32 = arith.constant 0 : i32
    %64 = arith.cmpi eq, %arg0, %c0_i32 : i32
    %c0_i32_48 = arith.constant 0 : i32
    %65 = arith.cmpi eq, %arg1, %c0_i32_48 : i32
    %66 = arith.andi %64, %65 : i1
    %67 = arith.extui %66 : i1 to i32
    %c0_i32_49 = arith.constant 0 : i32
    %68 = arith.cmpi ne, %67, %c0_i32_49 : i32
    scf.if %68 {
      %cst_56 = arith.constant 0.000000e+00 : f32
      %80 = vector.broadcast %cst_56 : f32 to vector<2x128xf32>
      %c0_57 = arith.constant 0 : index
      %c0_58 = arith.constant 0 : index
      %81 = vector.load %arg8[%c0_57, %c0_58] : memref<2x128xf32, #tpu.memory_space<vmem>>, vector<2x128xf32>
      tpu.vector_store %arg8[%c0_57, %c0_58], %80 {strides = array<i32>} : memref<2x128xf32, #tpu.memory_space<vmem>>, vector<2x128xf32>,
    } else {
    }
    %c0_i32_50 = arith.constant 0 : i32
    %69 = arith.cmpi eq, %arg0, %c0_i32_50 : i32
    %70 = arith.extui %69 : i1 to i32
    %c0_i32_51 = arith.constant 0 : i32
    %71 = arith.cmpi ne, %70, %c0_i32_51 : i32
    scf.if %71 {
      %c0_56 = arith.constant 0 : index
      %c0_57 = arith.constant 0 : index
      %80 = vector.load %arg3[%c0_56, %c0_57] : memref<80x1xf32, #tpu.memory_space<vmem>>, vector<80x1xf32>
      %81 = vector.broadcast %80 : vector<80x1xf32> to vector<80x128xf32>
      %82 = arith.mulf %63, %81 : vector<80x128xf32>
      %c0_58 = arith.constant 0 : index
      %c0_59 = arith.constant 0 : index
      %83 = vector.load %arg8[%c0_58, %c0_59] : memref<2x128xf32, #tpu.memory_space<vmem>>, vector<1x128xf32>
      %cst_60 = arith.constant dense<0.000000e+00> : vector<128xf32>
      %84 = vector.multi_reduction <add>, %82, %cst_60 [0] : vector<80x128xf32> to vector<128xf32>
      %85 = vector.shape_cast %84 : vector<128xf32> to vector<1x128xf32>
      %86 = arith.addf %83, %85 : vector<1x128xf32>
      %c0_61 = arith.constant 0 : index
      %c0_62 = arith.constant 0 : index
      %87 = vector.load %arg8[%c0_61, %c0_62] : memref<2x128xf32, #tpu.memory_space<vmem>>, vector<1x128xf32>
      tpu.vector_store %arg8[%c0_61, %c0_62], %86 {strides = array<i32>} : memref<2x128xf32, #tpu.memory_space<vmem>>, vector<1x128xf32>,
      %c1_63 = arith.constant 1 : index
      %c0_64 = arith.constant 0 : index
      %88 = vector.load %arg8[%c1_63, %c0_64] : memref<2x128xf32, #tpu.memory_space<vmem>>, vector<1x128xf32>
      %89 = arith.mulf %82, %82 : vector<80x128xf32>
      %cst_65 = arith.constant dense<0.000000e+00> : vector<128xf32>
      %90 = vector.multi_reduction <add>, %89, %cst_65 [0] : vector<80x128xf32> to vector<128xf32>
      %91 = vector.shape_cast %90 : vector<128xf32> to vector<1x128xf32>
      %92 = arith.addf %88, %91 : vector<1x128xf32>
      %c1_66 = arith.constant 1 : index
      %c0_67 = arith.constant 0 : index
      %93 = vector.load %arg8[%c1_66, %c0_67] : memref<2x128xf32, #tpu.memory_space<vmem>>, vector<1x128xf32>
      tpu.vector_store %arg8[%c1_66, %c0_67], %92 {strides = array<i32>} : memref<2x128xf32, #tpu.memory_space<vmem>>, vector<1x128xf32>,
    } else {
    }
    %c1_i32 = arith.constant 1 : i32
    %72 = arith.cmpi eq, %arg0, %c1_i32 : i32
    %c0_i32_52 = arith.constant 0 : i32
    %73 = arith.cmpi eq, %arg1, %c0_i32_52 : i32
    %74 = arith.andi %72, %73 : i1
    %75 = arith.extui %74 : i1 to i32
    %c0_i32_53 = arith.constant 0 : i32
    %76 = arith.cmpi ne, %75, %c0_i32_53 : i32
    scf.if %76 {
      %c0_56 = arith.constant 0 : index
      %c0_57 = arith.constant 0 : index
      %80 = vector.load %arg8[%c0_56, %c0_57] : memref<2x128xf32, #tpu.memory_space<vmem>>, vector<1x128xf32>
      %cst_58 = arith.constant 7.812500e-03 : f32
      %81 = vector.broadcast %cst_58 : f32 to vector<1x128xf32>
      %82 = arith.mulf %80, %81 : vector<1x128xf32>
      %c1_59 = arith.constant 1 : index
      %c0_60 = arith.constant 0 : index
      %83 = vector.load %arg8[%c1_59, %c0_60] : memref<2x128xf32, #tpu.memory_space<vmem>>, vector<1x128xf32>
      %cst_61 = arith.constant 7.812500e-03 : f32
      %84 = vector.broadcast %cst_61 : f32 to vector<1x128xf32>
      %85 = arith.mulf %83, %84 : vector<1x128xf32>
      %86 = arith.mulf %82, %82 : vector<1x128xf32>
      %87 = arith.subf %85, %86 : vector<1x128xf32>
      %cst_62 = arith.constant 0.000000e+00 : f32
      %88 = vector.broadcast %cst_62 : f32 to vector<1x128xf32>
      %89 = arith.maximumf %87, %88 : vector<1x128xf32>
      %c0_63 = arith.constant 0 : index
      %c0_64 = arith.constant 0 : index
      %90 = vector.load %arg5[%c0_63, %c0_64] : memref<1x128xf32, #tpu.memory_space<vmem>>, vector<1x128xf32>
      %cst_65 = arith.constant 9.99999974E-6 : f32
      %91 = vector.broadcast %cst_65 : f32 to vector<1x128xf32>
      %92 = arith.addf %89, %91 : vector<1x128xf32>
      %93 = math.rsqrt %92 : vector<1x128xf32>
      %94 = arith.mulf %90, %93 : vector<1x128xf32>
      %c0_66 = arith.constant 0 : index
      %c0_67 = arith.constant 0 : index
      %95 = vector.load %arg9[%c0_66, %c0_67] : memref<2x128xf32, #tpu.memory_space<vmem>>, vector<1x128xf32>
      tpu.vector_store %arg9[%c0_66, %c0_67], %94 {strides = array<i32>} : memref<2x128xf32, #tpu.memory_space<vmem>>, vector<1x128xf32>,
      %c0_68 = arith.constant 0 : index
      %c0_69 = arith.constant 0 : index
      %96 = vector.load %arg6[%c0_68, %c0_69] : memref<1x128xf32, #tpu.memory_space<vmem>>, vector<1x128xf32>
      %97 = arith.mulf %82, %94 : vector<1x128xf32>
      %98 = arith.subf %96, %97 : vector<1x128xf32>
      %c1_70 = arith.constant 1 : index
      %c0_71 = arith.constant 0 : index
      %99 = vector.load %arg9[%c1_70, %c0_71] : memref<2x128xf32, #tpu.memory_space<vmem>>, vector<1x128xf32>
      tpu.vector_store %arg9[%c1_70, %c0_71], %98 {strides = array<i32>} : memref<2x128xf32, #tpu.memory_space<vmem>>, vector<1x128xf32>,
    } else {
    }
    %c1_i32_54 = arith.constant 1 : i32
    %77 = arith.cmpi eq, %arg0, %c1_i32_54 : i32
    %78 = arith.extui %77 : i1 to i32
    %c0_i32_55 = arith.constant 0 : i32
    %79 = arith.cmpi ne, %78, %c0_i32_55 : i32
    scf.if %79 {
      %c0_56 = arith.constant 0 : index
      %c0_57 = arith.constant 0 : index
      %80 = vector.load %arg9[%c0_56, %c0_57] : memref<2x128xf32, #tpu.memory_space<vmem>>, vector<1x128xf32>
      %81 = vector.broadcast %80 : vector<1x128xf32> to vector<80x128xf32>
      %82 = arith.mulf %63, %81 : vector<80x128xf32>
      %c1_58 = arith.constant 1 : index
      %c0_59 = arith.constant 0 : index
      %83 = vector.load %arg9[%c1_58, %c0_59] : memref<2x128xf32, #tpu.memory_space<vmem>>, vector<1x128xf32>
      %84 = vector.broadcast %83 : vector<1x128xf32> to vector<80x128xf32>
      %85 = arith.addf %82, %84 : vector<80x128xf32>
      %cst_60 = arith.constant 0.000000e+00 : f32
      %86 = vector.broadcast %cst_60 : f32 to vector<80x128xf32>
      %87 = arith.maximumf %85, %86 : vector<80x128xf32>
      %c0_61 = arith.constant 0 : index
      %c0_62 = arith.constant 0 : index
      %88 = vector.load %arg10[%c0_61, %c0_62] : memref<80x128xf32, #tpu.memory_space<vmem>>, vector<80x128xf32>
      tpu.vector_store %arg10[%c0_61, %c0_62], %87 {strides = array<i32>} : memref<80x128xf32, #tpu.memory_space<vmem>>, vector<80x128xf32>,
      %c0_63 = arith.constant 0 : index
      %c0_64 = arith.constant 0 : index
      %89 = tpu.strided_load %arg10[%c0_63, %c0_64] {strides = array<i32: 2, 1>} : memref<80x128xf32, #tpu.memory_space<vmem>>, vector<4x128xf32>
      %c1_65 = arith.constant 1 : index
      %c0_66 = arith.constant 0 : index
      %90 = tpu.strided_load %arg10[%c1_65, %c0_66] {strides = array<i32: 2, 1>} : memref<80x128xf32, #tpu.memory_space<vmem>>, vector<4x128xf32>
      %91 = arith.maximumf %89, %90 : vector<4x128xf32>
      %c10_67 = arith.constant 10 : index
      %c0_68 = arith.constant 0 : index
      %92 = tpu.strided_load %arg10[%c10_67, %c0_68] {strides = array<i32: 2, 1>} : memref<80x128xf32, #tpu.memory_space<vmem>>, vector<4x128xf32>
      %93 = arith.maximumf %91, %92 : vector<4x128xf32>
      %c11_69 = arith.constant 11 : index
      %c0_70 = arith.constant 0 : index
      %94 = tpu.strided_load %arg10[%c11_69, %c0_70] {strides = array<i32: 2, 1>} : memref<80x128xf32, #tpu.memory_space<vmem>>, vector<4x128xf32>
      %95 = arith.maximumf %93, %94 : vector<4x128xf32>
      %c0_71 = arith.constant 0 : index
      %c0_72 = arith.constant 0 : index
      %c0_73 = arith.constant 0 : index
      %96 = vector.load %arg7[%c0_71, %c0_72, %c0_73] : memref<1x16x128xf32, #tpu.memory_space<vmem>>, vector<1x4x128xf32>
      %97 = vector.shape_cast %96 : vector<1x4x128xf32> to vector<4x128xf32>
      %98 = vector.shape_cast %95 : vector<4x128xf32> to vector<1x4x128xf32>
      tpu.vector_store %arg7[%c0_71, %c0_72, %c0_73], %98 {strides = array<i32>} : memref<1x16x128xf32, #tpu.memory_space<vmem>>, vector<1x4x128xf32>,
      %c20_74 = arith.constant 20 : index
      %c0_75 = arith.constant 0 : index
      %99 = tpu.strided_load %arg10[%c20_74, %c0_75] {strides = array<i32: 2, 1>} : memref<80x128xf32, #tpu.memory_space<vmem>>, vector<4x128xf32>
      %c21_76 = arith.constant 21 : index
      %c0_77 = arith.constant 0 : index
      %100 = tpu.strided_load %arg10[%c21_76, %c0_77] {strides = array<i32: 2, 1>} : memref<80x128xf32, #tpu.memory_space<vmem>>, vector<4x128xf32>
      %101 = arith.maximumf %99, %100 : vector<4x128xf32>
      %c30 = arith.constant 30 : index
      %c0_78 = arith.constant 0 : index
      %102 = tpu.strided_load %arg10[%c30, %c0_78] {strides = array<i32: 2, 1>} : memref<80x128xf32, #tpu.memory_space<vmem>>, vector<4x128xf32>
      %103 = arith.maximumf %101, %102 : vector<4x128xf32>
      %c31 = arith.constant 31 : index
      %c0_79 = arith.constant 0 : index
      %104 = tpu.strided_load %arg10[%c31, %c0_79] {strides = array<i32: 2, 1>} : memref<80x128xf32, #tpu.memory_space<vmem>>, vector<4x128xf32>
      %105 = arith.maximumf %103, %104 : vector<4x128xf32>
      %c0_80 = arith.constant 0 : index
      %c4_81 = arith.constant 4 : index
      %c0_82 = arith.constant 0 : index
      %106 = vector.load %arg7[%c0_80, %c4_81, %c0_82] : memref<1x16x128xf32, #tpu.memory_space<vmem>>, vector<1x4x128xf32>
      %107 = vector.shape_cast %106 : vector<1x4x128xf32> to vector<4x128xf32>
      %108 = vector.shape_cast %105 : vector<4x128xf32> to vector<1x4x128xf32>
      tpu.vector_store %arg7[%c0_80, %c4_81, %c0_82], %108 {strides = array<i32>} : memref<1x16x128xf32, #tpu.memory_space<vmem>>, vector<1x4x128xf32>,
      %c40 = arith.constant 40 : index
      %c0_83 = arith.constant 0 : index
      %109 = tpu.strided_load %arg10[%c40, %c0_83] {strides = array<i32: 2, 1>} : memref<80x128xf32, #tpu.memory_space<vmem>>, vector<4x128xf32>
      %c41 = arith.constant 41 : index
      %c0_84 = arith.constant 0 : index
      %110 = tpu.strided_load %arg10[%c41, %c0_84] {strides = array<i32: 2, 1>} : memref<80x128xf32, #tpu.memory_space<vmem>>, vector<4x128xf32>
      %111 = arith.maximumf %109, %110 : vector<4x128xf32>
      %c50 = arith.constant 50 : index
      %c0_85 = arith.constant 0 : index
      %112 = tpu.strided_load %arg10[%c50, %c0_85] {strides = array<i32: 2, 1>} : memref<80x128xf32, #tpu.memory_space<vmem>>, vector<4x128xf32>
      %113 = arith.maximumf %111, %112 : vector<4x128xf32>
      %c51 = arith.constant 51 : index
      %c0_86 = arith.constant 0 : index
      %114 = tpu.strided_load %arg10[%c51, %c0_86] {strides = array<i32: 2, 1>} : memref<80x128xf32, #tpu.memory_space<vmem>>, vector<4x128xf32>
      %115 = arith.maximumf %113, %114 : vector<4x128xf32>
      %c0_87 = arith.constant 0 : index
      %c8_88 = arith.constant 8 : index
      %c0_89 = arith.constant 0 : index
      %116 = vector.load %arg7[%c0_87, %c8_88, %c0_89] : memref<1x16x128xf32, #tpu.memory_space<vmem>>, vector<1x4x128xf32>
      %117 = vector.shape_cast %116 : vector<1x4x128xf32> to vector<4x128xf32>
      %118 = vector.shape_cast %115 : vector<4x128xf32> to vector<1x4x128xf32>
      tpu.vector_store %arg7[%c0_87, %c8_88, %c0_89], %118 {strides = array<i32>} : memref<1x16x128xf32, #tpu.memory_space<vmem>>, vector<1x4x128xf32>,
      %c60 = arith.constant 60 : index
      %c0_90 = arith.constant 0 : index
      %119 = tpu.strided_load %arg10[%c60, %c0_90] {strides = array<i32: 2, 1>} : memref<80x128xf32, #tpu.memory_space<vmem>>, vector<4x128xf32>
      %c61 = arith.constant 61 : index
      %c0_91 = arith.constant 0 : index
      %120 = tpu.strided_load %arg10[%c61, %c0_91] {strides = array<i32: 2, 1>} : memref<80x128xf32, #tpu.memory_space<vmem>>, vector<4x128xf32>
      %121 = arith.maximumf %119, %120 : vector<4x128xf32>
      %c70 = arith.constant 70 : index
      %c0_92 = arith.constant 0 : index
      %122 = tpu.strided_load %arg10[%c70, %c0_92] {strides = array<i32: 2, 1>} : memref<80x128xf32, #tpu.memory_space<vmem>>, vector<4x128xf32>
      %123 = arith.maximumf %121, %122 : vector<4x128xf32>
      %c71 = arith.constant 71 : index
      %c0_93 = arith.constant 0 : index
      %124 = tpu.strided_load %arg10[%c71, %c0_93] {strides = array<i32: 2, 1>} : memref<80x128xf32, #tpu.memory_space<vmem>>, vector<4x128xf32>
      %125 = arith.maximumf %123, %124 : vector<4x128xf32>
      %c0_94 = arith.constant 0 : index
      %c12_95 = arith.constant 12 : index
      %c0_96 = arith.constant 0 : index
      %126 = vector.load %arg7[%c0_94, %c12_95, %c0_96] : memref<1x16x128xf32, #tpu.memory_space<vmem>>, vector<1x4x128xf32>
      %127 = vector.shape_cast %126 : vector<1x4x128xf32> to vector<4x128xf32>
      %128 = vector.shape_cast %125 : vector<4x128xf32> to vector<1x4x128xf32>
      tpu.vector_store %arg7[%c0_94, %c12_95, %c0_96], %128 {strides = array<i32>} : memref<1x16x128xf32, #tpu.memory_space<vmem>>, vector<1x4x128xf32>,
    } else {
    }
    return
  }
  func.func @transform_0(%arg0: i32, %arg1: i32) -> (i32, i32, i32) {
    %c0_i32 = arith.constant 0 : i32
    %c0_i32_0 = arith.constant 0 : i32
    %c0_i32_1 = arith.constant 0 : i32
    return %arg1, %c0_i32, %c0_i32_0 : i32, i32, i32
  }
  func.func @transform_1(%arg0: i32, %arg1: i32) -> (i32, i32) {
    %c0_i32 = arith.constant 0 : i32
    %c0_i32_0 = arith.constant 0 : i32
    %c0_i32_1 = arith.constant 0 : i32
    return %c0_i32, %c0_i32_0 : i32, i32
  }
  func.func @transform_2(%arg0: i32, %arg1: i32) -> (i32, i32, i32) {
    %c0_i32 = arith.constant 0 : i32
    %c0_i32_0 = arith.constant 0 : i32
    %c0_i32_1 = arith.constant 0 : i32
    %c0_i32_2 = arith.constant 0 : i32
    return %c0_i32, %c0_i32_0, %c0_i32_1 : i32, i32, i32
  }
  func.func @transform_3(%arg0: i32, %arg1: i32) -> (i32, i32) {
    %c0_i32 = arith.constant 0 : i32
    %c0_i32_0 = arith.constant 0 : i32
    %c0_i32_1 = arith.constant 0 : i32
    return %c0_i32, %c0_i32_0 : i32, i32
  }
  func.func @transform_4(%arg0: i32, %arg1: i32) -> (i32, i32) {
    %c0_i32 = arith.constant 0 : i32
    %c0_i32_0 = arith.constant 0 : i32
    %c0_i32_1 = arith.constant 0 : i32
    return %c0_i32, %c0_i32_0 : i32, i32
  }
  func.func @transform_5(%arg0: i32, %arg1: i32) -> (i32, i32, i32) {
    %0 = arith.muli %arg0, %arg1 : i32
    %c0_i32 = arith.constant 0 : i32
    %c0_i32_0 = arith.constant 0 : i32
    %c0_i32_1 = arith.constant 0 : i32
    return %0, %c0_i32, %c0_i32_0 : i32, i32, i32
  }
}

</mosaic_0001>

<bundles_post_ra>
// kernel: spectrogram_forward.3
= control target key start
LH: loop header
LB: loop body
LE: loop exit
PB: predicated region body
PF: predicated region fallthrough
CT: control target
= control target key end

     0   :  { %s1446_s18 = smov 0   ;;  %s1448_s19 = smov 0   ;;  %s1787_s0 = inlined_call_operand.vmem [shape: f32[2,110,4], index: 0, kind: input, shape index: {}]   ;;  %s1788_s1 = inlined_call_operand.vmem [shape: f32[80,1], index: 1, kind: input, shape index: {}]   ;;  %s1789_s2 = inlined_call_operand.vmem [shape: bf16[9,4,128], index: 2, kind: input, shape index: {}]   ;;  %s1790_s3 = inlined_call_operand.vmem [shape: f32[1,128], index: 3, kind: input, shape index: {}]   ;;  %s1791_s4 = inlined_call_operand.vmem [shape: f32[1,128], index: 4, kind: input, shape index: {}]   ;;  %s1792_s5 = inlined_call_operand.vmem [shape: f32[2,16,128], index: 5, kind: output, shape index: {}]  }
   0x1   :  { %s1450_s20 = smov 0   ;;  %s1452_s21 = smov 0  }
   0x2   :  { %s1454_s22 = smov 0  }
   0x3 LB: > { %s24_s23 = sadd.s32 1, %s1404_s20  ;;  %s27_s24 = sadd.s32 1, %s1408_s21  ;;  %s1412_s22 = sphi %s1454_s22, %s15_s22   ;;  %s1408_s21 = sphi %s1452_s21, %s1797_s21   ;;  %s1404_s20 = sphi %s1450_s20, %s1796_s20   ;;  %s1400_s19 = sphi %s1448_s19, %s1795_s19   ;;  %s1396_s18 = sphi %s1446_s18, %s1794_s18  }
   0x4   : > { %p25_p0 = scmp.ge.s32.totalorder %s24_s23, 2  ;;  %p1259_p1 = scmp.ge.s32.totalorder %s1412_s22, 1 }
   0x5   : > { %p201_p2 = scmp.lt.s32.totalorder %s1412_s22, 5 }
   0x6   : > { %s1799_s23 = smov (%p25_p0, %s24_s23), 0  ;;  %s1801_s24 = smov (!%p25_p0, %s27_s24), %s1408_s21 }
   0x7   : > { %p202_p3 = pnand %p1259_p1, %p201_p2  ;;  %p29_p4 = scmp.ge.s32.totalorder %s1801_s24, 2 }
   0x8   : > { %p230_p5 = scmp.lt.s32.totalorder (!%p202_p3), %s1396_s18, 1  ;;  %s235_s27 = smul.u32 (!%p202_p3), %s1396_s18, %s1400_s19 }
   0x9   : > { %s1803_s24 = smov (%p29_p4, %s1801_s24), 0  ;;  %205 = sbr.rel (%p202_p3) target bundleno = 598 (0x256), region = 40 }
   0xa   : > { %p236_p6 = scmp.lt.s32.totalorder (!%p202_p3), %s235_s27, 1  ;;  %p935_p7 = scmp.eq.s32.totalorder (!%p202_p3), %s1400_s19, 0 }
   0xb   : > { %p936_p8 = scmp.eq.s32.totalorder (!%p202_p3), %s1396_s18, 0 }
   0xd   : > { %p1659_p9 = pnand (!%p202_p3), %p936_p8, %p935_p7 }
   0xe   : > { %v1263_v0 = vld [vmem:[%s1789_s2 + $0x2] sm:$0x3]  ;;  %vm292_vm0 = vcmask 1041408   ;;  %v1274_v2 = vld [vmem:[%s1789_s2 + $0x4] sm:$0x3]  ;;  %s231_s7 = scalar_select %p230_p5, %s1396_s18, 1 }
   0xf   : > { %v294_v1 = vsel %vm292_vm0, %v1263_v0, 0  ;;  %v253_v3 = vld [vmem:[%s1789_s2] sm:$0x3]  ;;  %v415_v4 = vsel %vm292_vm0, %v1274_v2, 0  ;;  %v1280_v6 = vld [vmem:[%s1789_s2 + $0x6] sm:$0x3] }
  0x10   : > { %1321 = vmatpush.bf16.msra.mxu1 %v294_v1  ;;  %1322 = vmatpush.bf16.msra.mxu2 %v294_v1  ;;  %v346_v5 = vsel %vm292_vm0, %v253_v3, 0  ;;  %v494_v7 = vsel %vm292_vm0, %v1280_v6, 0  ;;  %v1286_v8 = vld [vmem:[%s1789_s2 + $0x8] sm:$0x3]  ;;  %s1324_s12 = smul.u32 112, %s231_s7  ;;  %s1805_s27 = smov (!%p236_p6, %s235_s27), 1 }
  0x11   : > { %1323 = vmatpush.bf16.msra.mxu3 %v294_v1  ;;  %303 = vmatpush.bf16.msra.mxu0 %v294_v1  ;;  %v573_v9 = vsel %vm292_vm0, %v1286_v8, 0  ;;  %vm276_vm1 = vcmask 31744   ;;  %s1320_s16 = sshll.u32 %s1805_s27, 4  ;;  %v1298_v22 = vld [vmem:[%s1789_s2 + $0xc] sm:$0x3] }
  0x12   : > { %s1507_s15 = scalar_lea.vmem %s1787_s0, %s1324_s12  ;;  %s1518_s26 = scalar_lea.vmem %s1792_s5, %s1320_s16  ;;  %v731_v23 = vsel %vm292_vm0, %v1298_v22, 0  ;;  %v1304_v24 = vld [vmem:[%s1789_s2 + $0xe] sm:$0x3]  ;;  %v1292_v26 = vld [vmem:[%s1789_s2 + $0xa] sm:$0x3] }
  0x13   : > { %v261_v10 = vld [vmem:[%s1507_s15 + $0x11] sm:$0xff]  ;;  %v262_v11 = vld [vmem:[%s1507_s15 + $0x19] sm:$0xff]  ;;  %v263_v12 = vld [vmem:[%s1507_s15 + $0x21] sm:$0xff]  ;;  %v810_v25 = vsel %vm292_vm0, %v1304_v24, 0  ;;  %v652_v27 = vsel %vm292_vm0, %v1292_v26, 0 }
  0x14   : > { %424 = vmatpush.bf16.msrb.mxu2 %v415_v4  ;;  %355 = vmatpush.bf16.msrb.mxu1 %v346_v5  ;;  %v272_v13 = vpack.c.bf16 %v262_v11, %v261_v10  ;;  %v264_v14 = vld [vmem:[%s1507_s15 + $0x29] sm:$0xff]  ;;  %v267_v15 = vld [vmem:[%s1507_s15 + $0x41] sm:$0xff]  ;;  %v265_v30 = vld [vmem:[%s1507_s15 + $0x31] sm:$0xff] }
  0x15   : > { %503 = vmatpush.bf16.msrb.mxu3 %v494_v7  ;;  %582 = vmatpush.bf16.msrb.mxu0 %v573_v9  ;;  %v268_v16 = vld [vmem:[%s1507_s15 + $0x49] sm:$0xff]  ;;  %v273_v17 = vpack.c.bf16 %v264_v14, %v263_v12  ;;  %v259_v19 = vld [vmem:[%s1507_s15 + $0x1] sm:$0xff]  ;;  %v266_v33 = vld [vmem:[%s1507_s15 + $0x39] sm:$0xff] }
  0x16   : > { %v275_v18 = vpack.c.bf16 %v268_v16, %v267_v15  ;;  %1265 = vmatmul.msk.bf16.vlgmr.msra.gmra.mxu1 %vm276_vm1, %v272_v13  ;;  %v260_v20 = vld [vmem:[%s1507_s15 + $0x9] sm:$0xff]  ;;  %v243_v31 = vld [vmem:[%s1507_s15] sm:$0xff]  ;;  %v462_v35 = vld [vmem:[%s1507_s15 + $0x12] sm:$0xff]  ;;  %v274_v39 = vpack.c.bf16 %v266_v33, %v265_v30 }
  0x17   : > { %1266 = vmatmul.msk.bf16.vlgmr.msra.gmra.mxu2 %vm276_vm1, %v273_v17  ;;  %v271_v21 = vpack.c.bf16 %v260_v20, %v259_v19  ;;  %v1310_v28 = vld [vmem:[%s1789_s2 + $0x10] sm:$0x3]  ;;  %v244_v32 = vld [vmem:[%s1507_s15 + $0x8] sm:$0xff]  ;;  %v541_v38 = vld [vmem:[%s1507_s15 + $0x13] sm:$0xff] }
  0x18   : > { %1268 = vmatmul.msk.bf16.vlgmr.msra.gmra.mxu3 %vm276_vm1, %v275_v18  ;;  %740 = vmatpush.bf16.msra.mxu2 %v731_v23  ;;  %v889_v29 = vsel %vm292_vm0, %v1310_v28, 0  ;;  %v461_v34 = vld [vmem:[%s1507_s15 + $0xa] sm:$0xff]  ;;  %v254_v36 = vpack.c.bf16 %v244_v32, %v243_v31  ;;  %v246_v43 = vld [vmem:[%s1507_s15 + $0x18] sm:$0xff]  ;;  %v382_v44 = vld [vmem:[%s1507_s15 + $0x2] sm:$0xff] }
  0x19   : > { %1264 = vmatmul.msk.bf16.vlgmr.msra.gmra.mxu0 %vm276_vm1, %v271_v21  ;;  %819 = vmatpush.bf16.msra.mxu3 %v810_v25  ;;  %v540_v37 = vld [vmem:[%s1507_s15 + $0xb] sm:$0xff]  ;;  %v473_v40 = vpack.c.bf16 %v462_v35, %v461_v34  ;;  %v463_v45 = vld [vmem:[%s1507_s15 + $0x1a] sm:$0xff]  ;;  %v464_v46 = vld [vmem:[%s1507_s15 + $0x22] sm:$0xff]  ;;  %v394_v50 = vpack.c.bf16 %v461_v34, %v382_v44 }
  0x1a   : > { %661 = vmatpush.bf16.msra.mxu1 %v652_v27  ;;  %898 = vmatpush.bf16.msra.mxu0 %v889_v29  ;;  %v552_v41 = vpack.c.bf16 %v541_v38, %v540_v37  ;;  %v245_v42 = vld [vmem:[%s1507_s15 + $0x10] sm:$0xff]  ;;  %v542_v48 = vld [vmem:[%s1507_s15 + $0x1b] sm:$0xff]  ;;  %v543_v49 = vld [vmem:[%s1507_s15 + $0x23] sm:$0xff]  ;;  %v474_v51 = vpack.c.bf16 %v464_v46, %v463_v45  ;;  %v395_v60 = vpack.c.bf16 %v463_v45, %v462_v35 }
  0x1b   : > { %v255_v47 = vpack.c.bf16 %v246_v43, %v245_v42  ;;  %v553_v52 = vpack.c.bf16 %v543_v49, %v542_v48  ;;  %v247_v53 = vld [vmem:[%s1507_s15 + $0x20] sm:$0xff]  ;;  %v248_v54 = vld [vmem:[%s1507_s15 + $0x28] sm:$0xff]  ;;  %v466_v56 = vld [vmem:[%s1507_s15 + $0x32] sm:$0xff] }
  0x1c   : > { %v465_v55 = vld [vmem:[%s1507_s15 + $0x2a] sm:$0xff]  ;;  %v256_v57 = vpack.c.bf16 %v248_v54, %v247_v53  ;;  %v545_v59 = vld [vmem:[%s1507_s15 + $0x33] sm:$0xff]  ;;  %v468_v2 = vld [vmem:[%s1507_s15 + $0x42] sm:$0xff] }
  0x1d   : > { %v544_v58 = vld [vmem:[%s1507_s15 + $0x2b] sm:$0xff]  ;;  %v475_v61 = vpack.c.bf16 %v466_v56, %v465_v55  ;;  %v250_v0 = vld [vmem:[%s1507_s15 + $0x38] sm:$0xff]  ;;  %v547_v5 = vld [vmem:[%s1507_s15 + $0x43] sm:$0xff]  ;;  %v396_v6 = vpack.c.bf16 %v465_v55, %v464_v46 }
  0x1e   : > { %v554_v62 = vpack.c.bf16 %v545_v59, %v544_v58  ;;  %v249_v63 = vld [vmem:[%s1507_s15 + $0x30] sm:$0xff]  ;;  %v467_v1 = vld [vmem:[%s1507_s15 + $0x3a] sm:$0xff]  ;;  %v252_v10 = vld [vmem:[%s1507_s15 + $0x48] sm:$0xff] }
  0x1f   : > { %v257_v3 = vpack.c.bf16 %v250_v0, %v249_v63  ;;  %v546_v4 = vld [vmem:[%s1507_s15 + $0x3b] sm:$0xff]  ;;  %v476_v7 = vpack.c.bf16 %v468_v2, %v467_v1  ;;  %v469_v11 = vld [vmem:[%s1507_s15 + $0x4a] sm:$0xff]  ;;  %v470_v12 = vld [vmem:[%s1507_s15 + $0x52] sm:$0xff]  ;;  %v397_v16 = vpack.c.bf16 %v467_v1, %v466_v56 }
  0x20   : > { %v555_v8 = vpack.c.bf16 %v547_v5, %v546_v4  ;;  %v251_v9 = vld [vmem:[%s1507_s15 + $0x40] sm:$0xff]  ;;  %v548_v14 = vld [vmem:[%s1507_s15 + $0x4b] sm:$0xff]  ;;  %v549_v15 = vld [vmem:[%s1507_s15 + $0x53] sm:$0xff]  ;;  %v477_v17 = vpack.c.bf16 %v470_v12, %v469_v11  ;;  %v398_v26 = vpack.c.bf16 %v469_v11, %v468_v2 }
  0x21   : > { %v258_v13 = vpack.c.bf16 %v252_v10, %v251_v9  ;;  %v556_v18 = vpack.c.bf16 %v549_v15, %v548_v14  ;;  %v619_v19 = vld [vmem:[%s1507_s15 + $0xc] sm:$0xff]  ;;  %v620_v20 = vld [vmem:[%s1507_s15 + $0x14] sm:$0xff]  ;;  %v778_v22 = vld [vmem:[%s1507_s15 + $0x1d] sm:$0xff] }
  0x22   : > { %v777_v21 = vld [vmem:[%s1507_s15 + $0x15] sm:$0xff]  ;;  %v631_v23 = vpack.c.bf16 %v620_v20, %v619_v19  ;;  %v857_v25 = vld [vmem:[%s1507_s15 + $0x1e] sm:$0xff]  ;;  %v780_v32 = vld [vmem:[%s1507_s15 + $0x2d] sm:$0xff] }
  0x23   : > { %v856_v24 = vld [vmem:[%s1507_s15 + $0x16] sm:$0xff]  ;;  %v789_v27 = vpack.c.bf16 %v778_v22, %v777_v21  ;;  %v622_v30 = vld [vmem:[%s1507_s15 + $0x24] sm:$0xff]  ;;  %v859_v35 = vld [vmem:[%s1507_s15 + $0x2e] sm:$0xff] }
  0x24   : > { %v868_v28 = vpack.c.bf16 %v857_v25, %v856_v24  ;;  %v621_v29 = vld [vmem:[%s1507_s15 + $0x1c] sm:$0xff]  ;;  %v779_v31 = vld [vmem:[%s1507_s15 + $0x25] sm:$0xff]  ;;  %v784_v58 = vld [vmem:[%s1507_s15 + $0x4d] sm:$0xff] }
  0x25   : > { %v632_v33 = vpack.c.bf16 %v622_v30, %v621_v29  ;;  %v858_v34 = vld [vmem:[%s1507_s15 + $0x26] sm:$0xff]  ;;  %v790_v37 = vpack.c.bf16 %v780_v32, %v779_v31  ;;  %v782_v42 = vld [vmem:[%s1507_s15 + $0x3d] sm:$0xff]  ;;  %v863_v63 = vld [vmem:[%s1507_s15 + $0x4e] sm:$0xff] }
  0x26   : > { %1269 = vmatmul.msk.bf16.vlgmr.msrb.gmra.mxu1 %vm276_vm1, %v254_v36  ;;  %v710_v36 = vpack.c.bf16 %v621_v29, %v620_v20  ;;  %v869_v38 = vpack.c.bf16 %v859_v35, %v858_v34  ;;  %v860_v44 = vld [vmem:[%s1507_s15 + $0x36] sm:$0xff]  ;;  %v861_v45 = vld [vmem:[%s1507_s15 + $0x3e] sm:$0xff]  ;;  %v627_v11 = vld [vmem:[%s1507_s15 + $0x4c] sm:$0xff] }
  0x27   : > { %1267 = vmatmul.msk.bf16.gmra.mxu2 %vm276_vm1, %v274_v39  ;;  %v623_v39 = vld [vmem:[%s1507_s15 + $0x2c] sm:$0xff]  ;;  %v870_v49 = vpack.c.bf16 %v861_v45, %v860_v44  ;;  %v625_v55 = vld [vmem:[%s1507_s15 + $0x3c] sm:$0xff]  ;;  %v626_v56 = vld [vmem:[%s1507_s15 + $0x44] sm:$0xff] }
  0x28   : > { %1281 = vmatmul.msk.bf16.vlgmr.msrb.gmra.mxu3 %vm276_vm1, %v473_v40  ;;  %v624_v40 = vld [vmem:[%s1507_s15 + $0x34] sm:$0xff]  ;;  %v786_v14 = vld [vmem:[%s1507_s15 + $0x5d] sm:$0xff]  ;;  %v713_v21 = vpack.c.bf16 %v627_v11, %v626_v56 }
  0x29   : > { %1287 = vmatmul.msk.bf16.vlgmr.msrb.gmra.mxu0 %vm276_vm1, %v552_v41  ;;  %v781_v41 = vld [vmem:[%s1507_s15 + $0x35] sm:$0xff]  ;;  %v633_v43 = vpack.c.bf16 %v624_v40, %v623_v39  ;;  %v712_v1 = vpack.c.bf16 %v625_v55, %v624_v40  ;;  %v865_v19 = vld [vmem:[%s1507_s15 + $0x5e] sm:$0xff] }
  0x2a   : > { %v791_v48 = vpack.c.bf16 %v782_v42, %v781_v41  ;;  %v628_v12 = vld [vmem:[%s1507_s15 + $0x54] sm:$0xff]  ;;  %v707_v34 = vld [vmem:[%s1507_s15 + $0x5c] sm:$0xff] }
  0x36   : > { %1270 = vmatmul.msk.bf16.gmra.mxu1 %vm276_vm1, %v255_v47  ;;  %v711_v47 = vpack.c.bf16 %v623_v39, %v622_v30  ;;  %v714_v39 = vpack.c.bf16 %v707_v34, %v628_v12 }
  0x37   : > { %1275 = vmatmul.msk.bf16.vlgmr.msrb.gmra.mxu2 %vm276_vm1, %v394_v50 }
  0x38   : > { %1282 = vmatmul.msk.bf16.gmra.mxu3 %vm276_vm1, %v474_v51 }
  0x39   : > { %1288 = vmatmul.msk.bf16.gmra.mxu0 %vm276_vm1, %v553_v52 }
  0x46   : > { %1271 = vmatmul.msk.bf16.gmra.mxu1 %vm276_vm1, %v256_v57  ;;  %v783_v57 = vld [vmem:[%s1507_s15 + $0x45] sm:$0xff] }
  0x47   : > { %1276 = vmatmul.msk.bf16.gmra.mxu2 %vm276_vm1, %v395_v60  ;;  %v634_v60 = vpack.c.bf16 %v626_v56, %v625_v55  ;;  %v792_v2 = vpack.c.bf16 %v784_v58, %v783_v57 }
  0x48   : > { %1283 = vmatmul.msk.bf16.gmra.mxu3 %vm276_vm1, %v475_v61 }
  0x49   : > { %1289 = vmatmul.msk.bf16.gmra.mxu0 %vm276_vm1, %v554_v62  ;;  %v862_v62 = vld [vmem:[%s1507_s15 + $0x46] sm:$0xff] }
  0x4a   : > { %v871_v4 = vpack.c.bf16 %v863_v63, %v862_v62 }
  0x56   : > { %1272 = vmatmul.msk.bf16.gmra.mxu1 %vm276_vm1, %v257_v3 }
  0x57   : > { %1277 = vmatmul.msk.bf16.gmra.mxu2 %vm276_vm1, %v396_v6 }
  0x58   : > { %1284 = vmatmul.msk.bf16.gmra.mxu3 %vm276_vm1, %v476_v7 }
  0x59   : > { %1290 = vmatmul.msk.bf16.gmra.mxu0 %vm276_vm1, %v555_v8 }
  0x66   : > { %1273 = vmatmul.msk.bf16.gmra.mxu1 %vm276_vm1, %v258_v13  ;;  %v785_v13 = vld [vmem:[%s1507_s15 + $0x55] sm:$0xff] }
  0x67   : > { %1278 = vmatmul.msk.bf16.gmra.mxu2 %vm276_vm1, %v397_v16  ;;  %v635_v16 = vpack.c.bf16 %v628_v12, %v627_v11  ;;  %v793_v22 = vpack.c.bf16 %v786_v14, %v785_v13 }
  0x68   : > { %1285 = vmatmul.msk.bf16.gmra.mxu3 %vm276_vm1, %v477_v17 }
  0x69   : > { %1291 = vmatmul.msk.bf16.gmra.mxu0 %vm276_vm1, %v556_v18  ;;  %v864_v18 = vld [vmem:[%s1507_s15 + $0x56] sm:$0xff] }
  0x6a   : > { %v872_v24 = vpack.c.bf16 %v865_v19, %v864_v18 }
  0x76   : > { %1293 = vmatmul.msk.bf16.vlgmr.msra.gmra.mxu1 %vm276_vm1, %v631_v23 }
  0x77   : > { %1279 = vmatmul.msk.bf16.gmra.mxu2 %vm276_vm1, %v398_v26 }
  0x78   : > { %1305 = vmatmul.msk.bf16.vlgmr.msra.gmra.mxu3 %vm276_vm1, %v789_v27 }
  0x79   : > { %1311 = vmatmul.msk.bf16.vlgmr.msra.gmra.mxu0 %vm276_vm1, %v868_v28 }
  0x86   : > { %1294 = vmatmul.msk.bf16.gmra.mxu1 %vm276_vm1, %v632_v33 }
  0x87   : > { %1299 = vmatmul.msk.bf16.vlgmr.msra.gmra.mxu2 %vm276_vm1, %v710_v36 }
  0x88   : > { %1306 = vmatmul.msk.bf16.gmra.mxu3 %vm276_vm1, %v790_v37 }
  0x89   : > { %1312 = vmatmul.msk.bf16.gmra.mxu0 %vm276_vm1, %v869_v38 }
  0x93   : > { %v310_v46 = vpop.f32.mrf.mxu1 }
  0x96   : > { %1295 = vmatmul.msk.bf16.gmra.mxu1 %vm276_vm1, %v633_v43  ;;  %v305_v50 = vpop.f32.mrf.mxu0 }
  0x97   : > { %1300 = vmatmul.msk.bf16.gmra.mxu2 %vm276_vm1, %v711_v47 }
  0x98   : > { %1307 = vmatmul.msk.bf16.gmra.mxu3 %vm276_vm1, %v791_v48 }
  0x99   : > { %1313 = vmatmul.msk.bf16.gmra.mxu0 %vm276_vm1, %v870_v49 }
  0x9a   : > { %v315_v51 = vpop.f32.mrf.mxu2 }
  0x9b   : > { %v1625_v52 = vpop.f32.mrf.mxu3  ;;  %v312_v53 = vpop.f32.mrf.mxu1 }
  0x9e   : > { %v307_v54 = vpop.f32.mrf.mxu0 }
  0xa2   : > { %v317_v59 = vpop.f32.mrf.mxu2 }
  0xa3   : > { %v1631_v61 = vpop.f32.mrf.mxu3  ;;  %v357_v0 = vpop.f32.mrf.mxu1 }
  0xa4   : > { %v358_v3 = vadd.f32 %v357_v0, %v305_v50 }
  0xa6   : > { %1296 = vmatmul.msk.bf16.gmra.mxu1 %vm276_vm1, %v634_v60  ;;  %v584_v5 = vpop.f32.mrf.mxu0 }
  0xa7   : > { %1301 = vmatmul.msk.bf16.gmra.mxu2 %vm276_vm1, %v712_v1 }
  0xa8   : > { %1308 = vmatmul.msk.bf16.gmra.mxu3 %vm276_vm1, %v792_v2 }
  0xa9   : > { %1314 = vmatmul.msk.bf16.gmra.mxu0 %vm276_vm1, %v871_v4 }
  0xaa   : > { %v320_v6 = vpop.f32.mrf.mxu2 }
  0xab   : > { %v505_v7 = vpop.f32.mrf.mxu3  ;;  %v359_v8 = vpop.f32.mrf.mxu1 }
  0xac   : > { %v360_v9 = vadd.f32 %v359_v8, %v307_v54 }
  0xae   : > { %v586_v10 = vpop.f32.mrf.mxu0 }
  0xb2   : > { %v322_v15 = vpop.f32.mrf.mxu2 }
  0xb3   : > { %v507_v17 = vpop.f32.mrf.mxu3  ;;  %v362_v20 = vpop.f32.mrf.mxu1 }
  0xb4   : > { %v363_v23 = vadd.f32 %v362_v20, %v310_v46 }
  0xb6   : > { %1297 = vmatmul.msk.bf16.gmra.mxu1 %vm276_vm1, %v635_v16  ;;  %v589_v25 = vpop.f32.mrf.mxu0 }
  0xb7   : > { %1302 = vmatmul.msk.bf16.gmra.mxu2 %vm276_vm1, %v713_v21 }
  0xb8   : > { %1309 = vmatmul.msk.bf16.gmra.mxu3 %vm276_vm1, %v793_v22 }
  0xb9   : > { %1315 = vmatmul.msk.bf16.gmra.mxu0 %vm276_vm1, %v872_v24 }
  0xba   : > { %v426_v26 = vpop.f32.mrf.mxu2 }
  0xbb   : > { %v510_v27 = vpop.f32.mrf.mxu3  ;;  %v451_v28 = vadd.f32 %v426_v26, %v358_v3  ;;  %v364_v29 = vpop.f32.mrf.mxu1 }
  0xbc   : > { %v365_v30 = vadd.f32 %v364_v29, %v312_v53 }
  0xbd   : > { %v530_v31 = vadd.f32 %v505_v7, %v451_v28 }
  0xbe   : > { %v591_v32 = vpop.f32.mrf.mxu0 }
  0xbf   : > { %v609_v33 = vadd.f32 %v584_v5, %v530_v31 }
  0xc2   : > { %v428_v35 = vpop.f32.mrf.mxu2 }
  0xc3   : > { %v512_v36 = vpop.f32.mrf.mxu3  ;;  %v452_v37 = vadd.f32 %v428_v35, %v360_v9  ;;  %v367_v38 = vpop.f32.mrf.mxu1 }
  0xc4   : > { %v368_v40 = vadd.f32 %v367_v38, %v315_v51 }
  0xc5   : > { %v531_v41 = vadd.f32 %v507_v17, %v452_v37 }
  0xc6   : > { %v594_v42 = vpop.f32.mrf.mxu0 }
  0xc7   : > { %1303 = vmatmul.msk.bf16.gmra.mxu2 %vm276_vm1, %v714_v39  ;;  %v610_v43 = vadd.f32 %v586_v10, %v531_v41 }
  0xca   : > { %v431_v44 = vpop.f32.mrf.mxu2 }
  0xcb   : > { %v515_v45 = vpop.f32.mrf.mxu3  ;;  %v453_v46 = vadd.f32 %v431_v44, %v363_v23  ;;  %v369_v47 = vpop.f32.mrf.mxu1 }
  0xcc   : > { %v370_v48 = vadd.f32 %v369_v47, %v317_v59 }
  0xcd   : > { %v532_v49 = vadd.f32 %v510_v27, %v453_v46 }
  0xce   : > { %v596_v50 = vpop.f32.mrf.mxu0 }
  0xcf   : > { %v1651_v53 = vadd.f32 %v589_v25, %v532_v49 }
  0xd2   : > { %v433_v54 = vpop.f32.mrf.mxu2 }
  0xd3   : > { %v517_v55 = vpop.f32.mrf.mxu3  ;;  %v454_v51 = vadd.f32 %v433_v54, %v365_v30  ;;  %v372_v56 = vpop.f32.mrf.mxu1 }
  0xd4   : > { %v373_v57 = vadd.f32 %v372_v56, %v320_v6 }
  0xd5   : > { %v533_v58 = vadd.f32 %v512_v36, %v454_v51 }
  0xd6   : > { %v599_v60 = vpop.f32.mrf.mxu0 }
  0xd7   : > { %v1655_v62 = vadd.f32 %v591_v32, %v533_v58 }
  0xda   : > { %v436_v59 = vpop.f32.mrf.mxu2 }
  0xdb   : > { %v520_v63 = vpop.f32.mrf.mxu3  ;;  %v455_v0 = vadd.f32 %v436_v59, %v368_v40  ;;  %v374_v1 = vpop.f32.mrf.mxu1 }
  0xdc   : > { %v375_v2 = vadd.f32 %v374_v1, %v322_v15 }
  0xdd   : > { %v534_v3 = vadd.f32 %v515_v45, %v455_v0 }
  0xde   : > { %v601_v4 = vpop.f32.mrf.mxu0 }
  0xdf   : > { %v1663_v5 = vadd.f32 %v594_v42, %v534_v3 }
  0xe2   : > { %v438_v6 = vpop.f32.mrf.mxu2 }
  0xe3   : > { %v522_v7 = vpop.f32.mrf.mxu3  ;;  %v456_v8 = vadd.f32 %v438_v6, %v370_v48  ;;  %v377_v9 = vpop.f32.mrf.mxu1 }
  0xe4   : > { %v378_v27 = vadd.f32 %v377_v9, %v1625_v52 }
  0xe5   : > { %v535_v10 = vadd.f32 %v517_v55, %v456_v8 }
  0xe6   : > { %v604_v11 = vpop.f32.mrf.mxu0 }
  0xe7   : > { %v1665_v12 = vadd.f32 %v596_v50, %v535_v10 }
  0xea   : > { %v441_v13 = vpop.f32.mrf.mxu2 }
  0xeb   : > { %v525_v14 = vpop.f32.mrf.mxu3  ;;  %v457_v16 = vadd.f32 %v441_v13, %v373_v57  ;;  %v379_v17 = vpop.f32.mrf.mxu1 }
  0xec   : > { %v380_v37 = vadd.f32 %v379_v17, %v1631_v61 }
  0xed   : > { %v536_v18 = vadd.f32 %v520_v63, %v457_v16 }
  0xee   : > { %v606_v15 = vpop.f32.mrf.mxu0 }
  0xef   : > { %v1667_v19 = vadd.f32 %v599_v60, %v536_v18 }
  0xf2   : > { %v443_v20 = vpop.f32.mrf.mxu2 }
  0xf3   : > { %v527_v21 = vpop.f32.mrf.mxu3  ;;  %v458_v22 = vadd.f32 %v443_v20, %v375_v2  ;;  %v663_v23 = vpop.f32.mrf.mxu1 }
  0xf4   : > { %v688_v24 = vadd.f32 %v663_v23, %v609_v33 }
  0xf5   : > { %v537_v25 = vadd.f32 %v522_v7, %v458_v22 }
  0xf6   : > { %v900_v34 = vpop.f32.mrf.mxu0 }
  0xf7   : > { %v1669_v26 = vadd.f32 %v601_v4, %v537_v25 }
  0xfa   : > { %v446_v28 = vpop.f32.mrf.mxu2 }
  0xfb   : > { %v821_v29 = vpop.f32.mrf.mxu3  ;;  %v459_v30 = vadd.f32 %v446_v28, %v378_v27  ;;  %v665_v31 = vpop.f32.mrf.mxu1 }
  0xfc   : > { %v689_v32 = vadd.f32 %v665_v31, %v610_v43 }
  0xfd   : > { %v538_v35 = vadd.f32 %v525_v14, %v459_v30 }
  0xfe   : > { %v902_v41 = vpop.f32.mrf.mxu0 }
  0xff   : > { %v1672_v36 = vadd.f32 %v604_v11, %v538_v35 }
 0x102   : > { %v448_v38 = vpop.f32.mrf.mxu2 }
 0x103   : > { %v460_v39 = vadd.f32 %v448_v38, %v380_v37  ;;  %v823_v40 = vpop.f32.mrf.mxu3  ;;  %v668_v44 = vpop.f32.mrf.mxu1 }
 0x104   : > { %v690_v56 = vadd.f32 %v668_v44, %v1651_v53 }
 0x105   : > { %v539_v33 = vadd.f32 %v527_v21, %v460_v39 }
 0x106   : > { %v905_v43 = vpop.f32.mrf.mxu0 }
 0x107   : > { %v1675_v42 = vadd.f32 %v606_v15, %v539_v33 }
 0x10a   : > { %v742_v52 = vpop.f32.mrf.mxu2 }
 0x10b   : > { %v767_v45 = vadd.f32 %v742_v52, %v688_v24  ;;  %v826_v47 = vpop.f32.mrf.mxu3  ;;  %v670_v49 = vpop.f32.mrf.mxu1 }
 0x10c   : > { %v691_v1 = vadd.f32 %v670_v49, %v1655_v62 }
 0x10d   : > { %v846_v46 = vadd.f32 %v821_v29, %v767_v45 }
 0x10e   : > { %v907_v58 = vpop.f32.mrf.mxu0 }
 0x10f   : > { %v1677_v48 = vadd.f32 %v900_v34, %v846_v46 }
 0x112   : > { %v744_v50 = vpop.f32.mrf.mxu2 }
 0x113   : > { %v768_v54 = vadd.f32 %v744_v50, %v689_v32  ;;  %v828_v51 = vpop.f32.mrf.mxu3  ;;  %v673_v59 = vpop.f32.mrf.mxu1 }
 0x114   : > { %v692_v10 = vadd.f32 %v673_v59, %v1663_v5 }
 0x115   : > { %v847_v55 = vadd.f32 %v823_v40, %v768_v54 }
 0x116   : > { %v910_v6 = vpop.f32.mrf.mxu0 }
 0x117   : > { %v1679_v61 = vadd.f32 %v902_v41, %v847_v55 }
 0x11a   : > { %v747_v57 = vpop.f32.mrf.mxu2 }
 0x11b   : > { %v769_v60 = vadd.f32 %v747_v57, %v690_v56  ;;  %v831_v3 = vpop.f32.mrf.mxu3  ;;  %v675_v8 = vpop.f32.mrf.mxu1 }
 0x11c   : > { %v693_v62 = vadd.f32 %v675_v8, %v1665_v12 }
 0x11d   : > { %v848_v63 = vadd.f32 %v826_v47, %v769_v60 }
 0x11e   : > { %v912_v16 = vpop.f32.mrf.mxu0 }
 0x11f   : > { %v1682_v0 = vadd.f32 %v905_v43, %v848_v63 }
 0x122   : > { %v749_v2 = vpop.f32.mrf.mxu2 }
 0x123   : > { %v770_v4 = vadd.f32 %v749_v2, %v691_v1  ;;  %v833_v13 = vpop.f32.mrf.mxu3  ;;  %v678_v18 = vpop.f32.mrf.mxu1 }
 0x124   : > { %v694_v25 = vadd.f32 %v678_v18, %v1667_v19 }
 0x125   : > { %v849_v7 = vadd.f32 %v828_v51, %v770_v4 }
 0x126   : > { %v915_v24 = vpop.f32.mrf.mxu0 }
 0x127   : > { %v1685_v9 = vadd.f32 %v907_v58, %v849_v7 }
 0x12a   : > { %v752_v53 = vpop.f32.mrf.mxu2 }
 0x12b   : > { %v771_v11 = vadd.f32 %v752_v53, %v692_v10  ;;  %v836_v22 = vpop.f32.mrf.mxu3  ;;  %v680_v5 = vpop.f32.mrf.mxu1 }
 0x12c   : > { %v695_v32 = vadd.f32 %v680_v5, %v1669_v26 }
 0x12d   : > { %v850_v14 = vadd.f32 %v831_v3, %v771_v11 }
 0x12e   : > { %v917_v34 = vpop.f32.mrf.mxu0 }
 0x12f   : > { %v1688_v17 = vadd.f32 %v910_v6, %v850_v14 }
 0x132   : > { %v754_v15 = vpop.f32.mrf.mxu2 }
 0x133   : > { %v772_v20 = vadd.f32 %v754_v15, %v693_v62  ;;  %v838_v31 = vpop.f32.mrf.mxu3  ;;  %v683_v37 = vpop.f32.mrf.mxu1 }
 0x134   : > { %v696_v40 = vadd.f32 %v683_v37, %v1672_v36 }
 0x135   : > { %v851_v21 = vadd.f32 %v833_v13, %v772_v20 }
 0x136   : > { %v920_v44 = vpop.f32.mrf.mxu0 }
 0x137   : > { %v1691_v23 = vadd.f32 %v912_v16, %v851_v21 }
 0x13a   : > { %v757_v27 = vpop.f32.mrf.mxu2 }
 0x13b   : > { %v773_v28 = vadd.f32 %v757_v27, %v694_v25  ;;  %v841_v33 = vpop.f32.mrf.mxu3  ;;  %v685_v45 = vpop.f32.mrf.mxu1 }
 0x13c   : > { %v697_v47 = vadd.f32 %v685_v45, %v1675_v42 }
 0x13d   : > { %v852_v29 = vadd.f32 %v836_v22, %v773_v28 }
 0x13e   : > { %v922_v54 = vpop.f32.mrf.mxu0 }
 0x13f   : > { %v1694_v30 = vadd.f32 %v915_v24, %v852_v29 }
 0x142   : > { %v759_v12 = vpop.f32.mrf.mxu2 }
 0x143   : > { %v774_v35 = vadd.f32 %v759_v12, %v695_v32  ;;  %v843_v49 = vpop.f32.mrf.mxu3 }
 0x145   : > { %v853_v38 = vadd.f32 %v838_v31, %v774_v35 }
 0x147   : > { %v1697_v39 = vadd.f32 %v917_v34, %v853_v38 }
 0x14a   : > { %v762_v19 = vpop.f32.mrf.mxu2 }
 0x14b   : > { %v775_v41 = vadd.f32 %v762_v19, %v696_v40 }
 0x14d   : > { %v854_v52 = vadd.f32 %v841_v33, %v775_v41 }
 0x14f   : > { %v1700_v46 = vadd.f32 %v920_v44, %v854_v52 }
 0x152   : > { %v764_v26 = vpop.f32.mrf.mxu2 }
 0x153   : > { %v776_v43 = vadd.f32 %v764_v26, %v697_v47  ;;  %940 = sbr.rel (%p1659_p9) target bundleno = 346 (0x15a), region = 44 }
 0x155   : > { %v855_v50 = vadd.f32 %v843_v49, %v776_v43 }
 0x157   : > { %v1703_v55 = vadd.f32 %v922_v54, %v855_v50 }
 0x158   : > { %v1414_v36 = vmov 0.0  }
 0x159   : > { %941 = vst [vmem:[#allocation2] sm:$0x3] %v1414_v36 }
 0x15a PF: > { %p1316_p10 = scmp.ne.s32.totalorder %s1400_s19, 0 }
 0x15c   : > { %944 = sbr.rel (%p1316_p10) target bundleno = 515 (0x203), region = 48 }
 0x161   : > { %v947_v42 = vld [vmem:[%s1788_s1 + $0x10] sm:$0xff]  ;;  %v945_v51 = vld [vmem:[%s1788_s1] sm:$0xff]  ;;  %v1415_v56 = vmov 0   ;;  %v948_v58 = vld [vmem:[%s1788_s1 + $0x18] sm:$0xff] }
 0x162   : > { %1368 = vset.pattern.permute.xlu1 %v1415_v56  ;;  %1367 = vset.pattern.permute.xlu0 %v1415_v56  ;;  %v949_v57 = vld [vmem:[%s1788_s1 + $0x20] sm:$0xff]  ;;  %v946_v60 = vld [vmem:[%s1788_s1 + $0x8] sm:$0xff]  ;;  %v952_v63 = vld [vmem:[%s1788_s1 + $0x38] sm:$0xff] }
 0x163   : > { %967 = vperm.xlu1 %1368, %v947_v42   ;;  %957 = vperm.xlu0 %1367, %v945_v51   ;;  %v950_v59 = vld [vmem:[%s1788_s1 + $0x28] sm:$0xff]  ;;  %v951_v1 = vld [vmem:[%s1788_s1 + $0x30] sm:$0xff]  ;;  %v953_v2 = vld [vmem:[%s1788_s1 + $0x40] sm:$0xff] }
 0x164   : > { %1369 = vset.pattern.permute.xlu2 %v1415_v56  ;;  %v954_v3 = vld [vmem:[%s1788_s1 + $0x48] sm:$0xff] }
 0x165   : > { %977 = vperm.xlu2 %1369, %v949_v57  }
 0x16b   : > { %972 = vperm.xlu1 %1368, %v948_v58   ;;  %962 = vperm.xlu0 %1367, %v946_v60  }
 0x16d   : > { %982 = vperm.xlu2 %1369, %v950_v59  }
 0x173   : > { %992 = vperm.xlu1 %1368, %v952_v63   ;;  %987 = vperm.xlu0 %1367, %v951_v1  }
 0x175   : > { %997 = vperm.xlu2 %1369, %v953_v2  }
 0x17b   : > { %1002 = vperm.xlu0 %1367, %v954_v3  }
 0x1bf   : > { %v978_v4 = vpop.permute.xlu2 %977 }
 0x1c0   : > { %v1009_v20 = vmul.f32 %v978_v4, %v1688_v17 }
 0x1c2   : > { %v1038_v32 = vmul.f32 %v1009_v20, %v1009_v20 }
 0x1c7   : > { %v983_v8 = vpop.permute.xlu2 %982 }
 0x1c8   : > { %v1010_v25 = vmul.f32 %v983_v8, %v1691_v23  ;;  %v1015_v8 = vld [vmem:[#allocation2] sm:$0x1] }
 0x1ca   : > { %v1039_v38 = vmul.f32 %v1010_v25, %v1010_v25 }
 0x1cf   : > { %v998_v37 = vpop.permute.xlu2 %997 }
 0x1d0   : > { %v1013_v41 = vmul.f32 %v998_v37, %v1700_v46 }
 0x1d2   : > { %v1042_v50 = vmul.f32 %v1013_v41, %v1013_v41 }
 0x1d5   : > { %v968_v6 = vpop.permute.xlu1 %967  ;;  %v958_v7 = vpop.permute.xlu0 %957 }
 0x1d6   : > { %v1005_v10 = vmul.f32 %v958_v7, %v1677_v48  ;;  %v1007_v13 = vmul.f32 %v968_v6, %v1682_v0 }
 0x1d8   : > { %v1034_v16 = vmul.f32 %v1005_v10, %v1005_v10  ;;  %v1036_v21 = vmul.f32 %v1007_v13, %v1007_v13 }
 0x1dd   : > { %v973_v53 = vpop.permute.xlu1 %972  ;;  %v963_v11 = vpop.permute.xlu0 %962 }
 0x1de   : > { %v1006_v14 = vmul.f32 %v963_v11, %v1679_v61  ;;  %v1008_v18 = vmul.f32 %v973_v53, %v1685_v9  ;;  %v1033_v11 = vld [vmem:[#allocation2 + $0x1] sm:$0x1] }
 0x1e0   : > { %v1016_v62 = vadd.f32 %v1006_v14, %v1005_v10  ;;  %v1035_v15 = vmul.f32 %v1006_v14, %v1006_v14  ;;  %v1037_v5 = vmul.f32 %v1008_v18, %v1008_v18 }
 0x1e2   : > { %v1017_v22 = vadd.f32 %v1016_v62, %v1007_v13  ;;  %v1044_v24 = vadd.f32 %v1035_v15, %v1034_v16 }
 0x1e4   : > { %v1018_v27 = vadd.f32 %v1017_v22, %v1008_v18  ;;  %v1045_v28 = vadd.f32 %v1044_v24, %v1036_v21 }
 0x1e5   : > { %v993_v29 = vpop.permute.xlu1 %992  ;;  %v988_v31 = vpop.permute.xlu0 %987 }
 0x1e6   : > { %v1046_v34 = vadd.f32 %v1045_v28, %v1037_v5  ;;  %v1019_v12 = vadd.f32 %v1018_v27, %v1009_v20  ;;  %v1011_v35 = vmul.f32 %v988_v31, %v1694_v30  ;;  %v1012_v40 = vmul.f32 %v993_v29, %v1697_v39 }
 0x1e8   : > { %v1020_v33 = vadd.f32 %v1019_v12, %v1010_v25  ;;  %v1047_v19 = vadd.f32 %v1046_v34, %v1038_v32  ;;  %v1040_v45 = vmul.f32 %v1011_v35, %v1011_v35  ;;  %v1041_v47 = vmul.f32 %v1012_v40, %v1012_v40 }
 0x1ea   : > { %v1048_v44 = vadd.f32 %v1047_v19, %v1039_v38  ;;  %v1021_v52 = vadd.f32 %v1020_v33, %v1011_v35 }
 0x1ec   : > { %v1022_v26 = vadd.f32 %v1021_v52, %v1012_v40  ;;  %v1049_v43 = vadd.f32 %v1048_v44, %v1040_v45 }
 0x1ed   : > { %v1003_v49 = vpop.permute.xlu0 %1002 }
 0x1ee   : > { %v1050_v54 = vadd.f32 %v1049_v43, %v1041_v47  ;;  %v1023_v36 = vadd.f32 %v1022_v26, %v1013_v41  ;;  %v1014_v42 = vmul.f32 %v1003_v49, %v1703_v55 }
 0x1f0   : > { %v1051_v51 = vadd.f32 %v1050_v54, %v1042_v50  ;;  %v1024_v56 = vadd.f32 %v1023_v36, %v1014_v42  ;;  %v1043_v57 = vmul.f32 %v1014_v42, %v1014_v42 }
 0x1f2   : > { %v1025_v58 = vrot.slane %v1024_v56, 4  ;;  %v1052_v60 = vadd.f32 %v1051_v51, %v1043_v57 }
 0x1f4   : > { %v1026_v59 = vadd.f32 %v1025_v58, %v1024_v56  ;;  %v1053_v63 = vrot.slane %v1052_v60, 4 }
 0x1f6   : > { %v1027_v1 = vrot.slane %v1026_v59, 2  ;;  %v1054_v2 = vadd.f32 %v1053_v63, %v1052_v60 }
 0x1f8   : > { %v1028_v3 = vadd.f32 %v1027_v1, %v1026_v59  ;;  %v1055_v4 = vrot.slane %v1054_v2, 2 }
 0x1fa   : > { %v1029_v6 = vrot.slane %v1028_v3, 1  ;;  %v1056_v7 = vadd.f32 %v1055_v4, %v1054_v2 }
 0x1fc   : > { %v1030_v10 = vadd.f32 %v1029_v6, %v1028_v3  ;;  %v1057_v53 = vrot.slane %v1056_v7, 1 }
 0x1fe   : > { %v1031_v13 = vadd.f32 %v1030_v10, %v1015_v8  ;;  %v1058_v14 = vadd.f32 %v1057_v53, %v1056_v7 }
 0x200   : > { %1032 = vst [vmem:[#allocation2] sm:$0x1] %v1031_v13  ;;  %v1059_v16 = vadd.f32 %v1058_v14, %v1033_v11 }
 0x202   : > { %1060 = vst [vmem:[#allocation2 + $0x1] sm:$0x1] %v1059_v16 }
 0x203 PF: > { %p1061_p11 = scmp.eq.s32.totalorder %s1400_s19, 1 }
 0x205   : > { %p1062_p12 = pnand %p1061_p11, %p936_p8 }
 0x207   : > { %1065 = sbr.rel (%p1062_p12) target bundleno = 560 (0x230), region = 52 }
 0x20c   : > { %v1066_v18 = vld [vmem:[#allocation2] sm:$0x1]  ;;  %v1068_v62 = vld [vmem:[#allocation2 + $0x1] sm:$0x1] }
 0x20d   : > { %v1067_v15 = vmul.f32 0.0078125, %v1066_v18  ;;  %v1069_v20 = vmul.f32 0.0078125, %v1068_v62  ;;  %v1073_v32 = vld [vmem:[%s1790_s3] sm:$0x1] }
 0x20e   : > { %v1087_v37 = vld [vmem:[%s1791_s4] sm:$0x1] }
 0x20f   : > { %v1070_v21 = vmul.f32 %v1067_v15, %v1067_v15 }
 0x211   : > { %v1071_v22 = vsub.f32 %v1069_v20, %v1070_v21 }
 0x213   : > { %v1072_v24 = vmax.f32 %v1071_v22, 0.0 }
 0x215   : > { %v1074_v25 = vadd.f32 1e-05, %v1072_v24 }
 0x217   : > { %1370 = vrsqrt.f32 %v1074_v25  ;;  %vm1081_vm2 = vweird.f32 %v1074_v25 }
 0x21d   : > { %v1371_v5 = vpop.eup %1370 }
 0x21e   : > { %v1076_v27 = vmul.f32 %v1371_v5, %v1074_v25  ;;  %vm1082_vm3 = vweird.f32 %v1371_v5 }
 0x21f   : > { %vm1083_vm4 = vmor %vm1081_vm2, %vm1082_vm3 }
 0x220   : > { %v1077_v28 = vmul.f32 %v1371_v5, %v1076_v27 }
 0x222   : > { %v1078_v29 = vmul.f32 0.5, %v1077_v28 }
 0x224   : > { %v1079_v31 = vsub.f32 1.5, %v1078_v29 }
 0x226   : > { %v1080_v34 = vmul.f32 %v1371_v5, %v1079_v31 }
 0x228   : > { %v1084_v12 = vsel %vm1083_vm4, %v1371_v5, %v1080_v34 }
 0x229   : > { %v1085_v35 = vmul.f32 %v1084_v12, %v1073_v32 }
 0x22b   : > { %1086 = vst [vmem:[#allocation3] sm:$0x1] %v1085_v35  ;;  %v1088_v38 = vmul.f32 %v1085_v35, %v1067_v15 }
 0x22d   : > { %v1089_v40 = vsub.f32 %v1087_v37, %v1088_v38 }
 0x22f   : > { %1090 = vst [vmem:[#allocation3 + $0x1] sm:$0x1] %v1089_v40 }
 0x230 PF: > { %p1317_p13 = scmp.ne.s32.totalorder %s1400_s19, 1 }
 0x232   : > { %1093 = sbr.rel (%p1317_p13) target bundleno = 598 (0x256), region = 56 }
 0x237   : > { %v1372_v33 = vld [vmem:[#allocation3] ss:$0 sm:$0xff]  ;;  %v1373_v19 = vld [vmem:[#allocation3 + $0x1] ss:$0 sm:$0xff] }
 0x238   : > { %v1096_v41 = vmul.f32 %v1372_v33, %v1677_v48  ;;  %v1097_v44 = vmul.f32 %v1372_v33, %v1679_v61  ;;  %v1098_v52 = vmul.f32 %v1372_v33, %v1682_v0  ;;  %v1099_v45 = vmul.f32 %v1372_v33, %v1685_v9 }
 0x239   : > { %v1100_v47 = vmul.f32 %v1372_v33, %v1688_v17  ;;  %v1101_v26 = vmul.f32 %v1372_v33, %v1691_v23  ;;  %v1102_v43 = vmul.f32 %v1372_v33, %v1694_v30  ;;  %v1103_v49 = vmul.f32 %v1372_v33, %v1697_v39 }
 0x23a   : > { %v1108_v50 = vadd.f32 %v1373_v19, %v1096_v41  ;;  %v1109_v54 = vadd.f32 %v1373_v19, %v1097_v44  ;;  %v1110_v36 = vadd.f32 %v1373_v19, %v1098_v52  ;;  %v1111_v42 = vadd.f32 %v1373_v19, %v1099_v45 }
 0x23b   : > { %v1112_v51 = vadd.f32 %v1373_v19, %v1100_v47  ;;  %v1113_v48 = vadd.f32 %v1373_v19, %v1101_v26  ;;  %v1114_v0 = vadd.f32 %v1373_v19, %v1102_v43  ;;  %v1115_v9 = vadd.f32 %v1373_v19, %v1103_v49 }
 0x23c   : > { %v1118_v56 = vmax.f32 %v1108_v50, 0.0  ;;  %v1119_v61 = vmax.f32 %v1109_v54, 0.0  ;;  %v1120_v57 = vmax.f32 %v1110_v36, 0.0  ;;  %v1121_v58 = vmax.f32 %v1111_v42, 0.0 }
 0x23d   : > { %v1122_v17 = vmax.f32 %v1112_v51, 0.0  ;;  %v1104_v23 = vmul.f32 %v1372_v33, %v1700_v46  ;;  %v1105_v30 = vmul.f32 %v1372_v33, %v1703_v55  ;;  %v1123_v39 = vmax.f32 %v1113_v48, 0.0 }
 0x23e   : > { %1128 = vst [vmem:[#allocation4] sm:$0xff] %v1118_v56  ;;  %v1124_v60 = vmax.f32 %v1114_v0, 0.0  ;;  %v1125_v1 = vmax.f32 %v1115_v9, 0.0 }
 0x23f   : > { %1129 = vst [vmem:[#allocation4 + $0x8] sm:$0xff] %v1119_v61  ;;  %v1116_v59 = vadd.f32 %v1373_v19, %v1104_v23  ;;  %v1117_v63 = vadd.f32 %v1373_v19, %v1105_v30 }
 0x240   : > { %1130 = vst [vmem:[#allocation4 + $0x10] sm:$0xff] %v1120_v57 }
 0x241   : > { %1131 = vst [vmem:[#allocation4 + $0x18] sm:$0xff] %v1121_v58  ;;  %v1126_v2 = vmax.f32 %v1116_v59, 0.0  ;;  %v1127_v3 = vmax.f32 %v1117_v63, 0.0 }
 0x242   : > { %1132 = vst [vmem:[#allocation4 + $0x20] sm:$0xff] %v1122_v17 }
 0x243   : > { %1133 = vst [vmem:[#allocation4 + $0x28] sm:$0xff] %v1123_v39 }
 0x244   : > { %1134 = vst [vmem:[#allocation4 + $0x30] sm:$0xff] %v1124_v60 }
 0x245   : > { %1135 = vst [vmem:[#allocation4 + $0x38] sm:$0xff] %v1125_v1  ;;  %v1138_v4 = vld [vmem:[#allocation4] ss:$2 sm:$0xf] }
 0x246   : > { %1136 = vst [vmem:[#allocation4 + $0x40] sm:$0xff] %v1126_v2  ;;  %v1140_v6 = vld [vmem:[#allocation4 + $0x1] ss:$2 sm:$0xf] }
 0x247   : > { %1137 = vst [vmem:[#allocation4 + $0x48] sm:$0xff] %v1127_v3  ;;  %v1141_v46 = vmax.f32 %v1138_v4, %v1140_v6  ;;  %v1143_v55 = vld [vmem:[#allocation4 + $0xa] ss:$2 sm:$0xf] }
 0x248   : > { %v1150_v7 = vld [vmem:[#allocation4 + $0x14] ss:$2 sm:$0xf]  ;;  %v1152_v10 = vld [vmem:[#allocation4 + $0x15] ss:$2 sm:$0xf] }
 0x249   : > { %v1144_v8 = vmax.f32 %v1141_v46, %v1143_v55  ;;  %v1146_v53 = vld [vmem:[#allocation4 + $0xb] ss:$2 sm:$0xf]  ;;  %v1153_v11 = vmax.f32 %v1150_v7, %v1152_v10  ;;  %v1155_v16 = vld [vmem:[#allocation4 + $0x1e] ss:$2 sm:$0xf] }
 0x24a   : > { %v1162_v13 = vld [vmem:[#allocation4 + $0x28] ss:$2 sm:$0xf]  ;;  %v1164_v18 = vld [vmem:[#allocation4 + $0x29] ss:$2 sm:$0xf] }
 0x24b   : > { %v1147_v14 = vmax.f32 %v1144_v8, %v1146_v53  ;;  %v1156_v62 = vmax.f32 %v1153_v11, %v1155_v16  ;;  %v1158_v15 = vld [vmem:[#allocation4 + $0x1f] ss:$2 sm:$0xf]  ;;  %v1165_v20 = vmax.f32 %v1162_v13, %v1164_v18 }
 0x24c   : > { %v1167_v21 = vld [vmem:[#allocation4 + $0x32] ss:$2 sm:$0xf]  ;;  %v1170_v27 = vld [vmem:[#allocation4 + $0x33] ss:$2 sm:$0xf] }
 0x24d   : > { %1148 = vst [vmem:[%s1518_s26] sm:$0xf] %v1147_v14  ;;  %v1174_v22 = vld [vmem:[#allocation4 + $0x3c] ss:$2 sm:$0xf]  ;;  %v1159_v24 = vmax.f32 %v1156_v62, %v1158_v15  ;;  %v1168_v25 = vmax.f32 %v1165_v20, %v1167_v21 }
 0x24e   : > { %v1176_v5 = vld [vmem:[#allocation4 + $0x3d] ss:$2 sm:$0xf]  ;;  %v1179_v31 = vld [vmem:[#allocation4 + $0x46] ss:$2 sm:$0xf] }
 0x24f   : > { %v1177_v28 = vmax.f32 %v1174_v22, %v1176_v5  ;;  %1160 = vst [vmem:[%s1518_s26 + $0x4] sm:$0xf] %v1159_v24  ;;  %v1171_v29 = vmax.f32 %v1168_v25, %v1170_v27  ;;  %v1182_v34 = vld [vmem:[#allocation4 + $0x47] ss:$2 sm:$0xf] }
 0x251   : > { %v1180_v32 = vmax.f32 %v1177_v28, %v1179_v31  ;;  %1172 = vst [vmem:[%s1518_s26 + $0x8] sm:$0xf] %v1171_v29 }
 0x253   : > { %v1183_v12 = vmax.f32 %v1180_v32, %v1182_v34 }
 0x255   : > { %1184 = vst [vmem:[%s1518_s26 + $0xc] sm:$0xf] %v1183_v12 }
 0x256 PF: > { %s15_s22 = sadd.s32 1, %s1412_s22   ;;  %s1794_s18 = smov %s1404_s20 }
 0x257   : > { %p12_p0 = scmp.ge.s32.totalorder %s15_s22, 6   ;;  %s1795_s19 = smov %s1408_s21 }
 0x258   : > { %s1796_s20 = smov %s1799_s23  ;;  %s1797_s21 = smov %s1803_s24 }
 0x259   :  { %14 = sbr.rel (!%p12_p0) target bundleno = 3 (0x3), region = 109 }

// kernel: spectrogram_forward.2
= control target key start
LH: loop header
LB: loop body
LE: loop exit
PB: predicated region body
PF: predicated region fallthrough
CT: control target
= control target key end

     0   :  { %s3749_s18 = smov 0   ;;  %s3751_s19 = smov 0   ;;  %s6095_s0 = inlined_call_operand.vmem [shape: f32[2,342,1], index: 0, kind: input, shape index: {}]   ;;  %s6096_s1 = inlined_call_operand.vmem [shape: f32[288,1], index: 1, kind: input, shape index: {}]   ;;  %s6097_s2 = inlined_call_operand.vmem [shape: bf16[9,1,128], index: 2, kind: input, shape index: {}]   ;;  %s6098_s3 = inlined_call_operand.vmem [shape: f32[1,128], index: 3, kind: input, shape index: {}]   ;;  %s6099_s4 = inlined_call_operand.vmem [shape: f32[1,128], index: 4, kind: input, shape index: {}]   ;;  %s6100_s5 = inlined_call_operand.vmem [shape: f32[2,64,128], index: 5, kind: output, shape index: {}]  }
   0x1   :  { %s3753_s20 = smov 0   ;;  %s3755_s21 = smov 0  }
   0x2   :  { %s3757_s22 = smov 0  }
   0x3 LB: > { %s24_s23 = sadd.s32 1, %s3706_s20  ;;  %s27_s24 = sadd.s32 1, %s3710_s21  ;;  %s3714_s22 = sphi %s3757_s22, %s15_s22   ;;  %s3710_s21 = sphi %s3755_s21, %s6479_s21   ;;  %s3706_s20 = sphi %s3753_s20, %s6478_s20   ;;  %s3702_s19 = sphi %s3751_s19, %s6477_s19   ;;  %s3698_s18 = sphi %s3749_s18, %s6476_s18  }
   0x4   : > { %p25_p0 = scmp.ge.s32.totalorder %s24_s23, 2  ;;  %p3605_p1 = scmp.ge.s32.totalorder %s3714_s22, 1 }
   0x5   : > { %p201_p2 = scmp.lt.s32.totalorder %s3714_s22, 5 }
   0x6   : > { %s6481_s23 = smov (%p25_p0, %s24_s23), 0  ;;  %s6483_s24 = smov (!%p25_p0, %s27_s24), %s3710_s21 }
   0x7   : > { %p202_p3 = pnand %p3605_p1, %p201_p2  ;;  %p29_p4 = scmp.ge.s32.totalorder %s6483_s24, 2 }
   0x9   : > { %s6485_s24 = smov (%p29_p4, %s6483_s24), 0  ;;  %205 = sbr.rel (%p202_p3) target bundleno = 1344 (0x540), region = 40 }
   0xe   : > { %p230_p5 = scmp.lt.s32.totalorder %s3698_s18, 1  ;;  %v3716_v0 = vmov 0   ;;  %s235_s28 = smul.u32 %s3698_s18, %s3702_s19 }
   0xf   : > { %3668 = vset.pattern.permute.xlu2 %v3716_v0  ;;  %3667 = vset.pattern.permute.xlu1 %v3716_v0  ;;  %p2869_p7 = scmp.eq.s32.totalorder %s3702_s19, 0  ;;  %p2870_p8 = scmp.eq.s32.totalorder %s3698_s18, 0 }
  0x10   : > { %3666 = vset.pattern.permute.xlu0 %v3716_v0  ;;  %s231_s25 = scalar_select %p230_p5, %s3698_s18, 1 }
  0x11   : > { %p236_p6 = scmp.lt.s32.totalorder %s235_s28, 1  ;;  %p5611_p9 = pnand %p2870_p8, %p2869_p7 }
  0x12   : > { %s3622_s26 = smul.u32 344, %s231_s25 }
  0x13   : > { %s6487_s28 = smov (!%p236_p6, %s235_s28), 1 }
  0x14   : > { %s3788_s29 = scalar_lea.vmem %s6095_s0, %s3622_s26  ;;  %s3621_s30 = sshll.u32 %s6487_s28, 6 }
  0x15   : > { %v246_v1 = vld [vmem:[%s3788_s29 + $0x20] sm:$0xff]  ;;  %v244_v2 = vld [vmem:[%s3788_s29 + $0x10] sm:$0xff]  ;;  %v247_v4 = vld [vmem:[%s3788_s29 + $0x28] sm:$0xff]  ;;  %s5607_s8 = scalar_lea.vmem %s6100_s5, %s3621_s30 }
  0x16   : > { %v242_v3 = vld [vmem:[%s3788_s29] sm:$0xff]  ;;  %302 = vperm.xlu2 %3668, %v246_v1   ;;  %292 = vperm.xlu1 %3667, %v244_v2   ;;  %v245_v5 = vld [vmem:[%s3788_s29 + $0x18] sm:$0xff]  ;;  %v243_v6 = vld [vmem:[%s3788_s29 + $0x8] sm:$0xff] }
  0x17   : > { %282 = vperm.xlu0 %3666, %v242_v3   ;;  %v250_v7 = vld [vmem:[%s3788_s29 + $0x40] sm:$0xff]  ;;  %v249_v8 = vld [vmem:[%s3788_s29 + $0x38] sm:$0xff]  ;;  %v248_v9 = vld [vmem:[%s3788_s29 + $0x30] sm:$0xff] }
  0x18   : > { %v253_v10 = vld [vmem:[%s3788_s29 + $0x58] sm:$0xff]  ;;  %v252_v11 = vld [vmem:[%s3788_s29 + $0x50] sm:$0xff]  ;;  %v251_v12 = vld [vmem:[%s3788_s29 + $0x48] sm:$0xff] }
  0x19   : > { %v256_v13 = vld [vmem:[%s3788_s29 + $0x70] sm:$0xff]  ;;  %v255_v14 = vld [vmem:[%s3788_s29 + $0x68] sm:$0xff]  ;;  %v254_v15 = vld [vmem:[%s3788_s29 + $0x60] sm:$0xff] }
  0x1a   : > { %v259_v16 = vld [vmem:[%s3788_s29 + $0x88] sm:$0xff]  ;;  %v258_v17 = vld [vmem:[%s3788_s29 + $0x80] sm:$0xff]  ;;  %v257_v18 = vld [vmem:[%s3788_s29 + $0x78] sm:$0xff] }
  0x1b   : > { %v262_v19 = vld [vmem:[%s3788_s29 + $0xa0] sm:$0xff]  ;;  %v261_v20 = vld [vmem:[%s3788_s29 + $0x98] sm:$0xff]  ;;  %v260_v21 = vld [vmem:[%s3788_s29 + $0x90] sm:$0xff] }
  0x1c   : > { %v265_v22 = vld [vmem:[%s3788_s29 + $0xb8] sm:$0xff]  ;;  %v264_v23 = vld [vmem:[%s3788_s29 + $0xb0] sm:$0xff]  ;;  %v263_v24 = vld [vmem:[%s3788_s29 + $0xa8] sm:$0xff] }
  0x1d   : > { %v268_v25 = vld [vmem:[%s3788_s29 + $0xd0] sm:$0xff]  ;;  %v267_v26 = vld [vmem:[%s3788_s29 + $0xc8] sm:$0xff]  ;;  %v266_v27 = vld [vmem:[%s3788_s29 + $0xc0] sm:$0xff] }
  0x1e   : > { %307 = vperm.xlu2 %3668, %v247_v4   ;;  %297 = vperm.xlu1 %3667, %v245_v5   ;;  %v271_v28 = vld [vmem:[%s3788_s29 + $0xe8] sm:$0xff]  ;;  %v270_v29 = vld [vmem:[%s3788_s29 + $0xe0] sm:$0xff]  ;;  %v269_v30 = vld [vmem:[%s3788_s29 + $0xd8] sm:$0xff] }
  0x1f   : > { %287 = vperm.xlu0 %3666, %v243_v6   ;;  %v274_v31 = vld [vmem:[%s3788_s29 + $0x100] sm:$0xff]  ;;  %v273_v32 = vld [vmem:[%s3788_s29 + $0xf8] sm:$0xff]  ;;  %v272_v33 = vld [vmem:[%s3788_s29 + $0xf0] sm:$0xff] }
  0x20   : > { %v277_v34 = vld [vmem:[%s3788_s29 + $0x118] sm:$0xff]  ;;  %v276_v35 = vld [vmem:[%s3788_s29 + $0x110] sm:$0xff]  ;;  %v275_v36 = vld [vmem:[%s3788_s29 + $0x108] sm:$0xff] }
  0x21   : > { %v535_v38 = vld [vmem:[%s3788_s29 + $0x11] sm:$0xff]  ;;  %v534_v39 = vld [vmem:[%s3788_s29 + $0x9] sm:$0xff]  ;;  %v533_v40 = vld [vmem:[%s3788_s29 + $0x1] sm:$0xff] }
  0x22   : > { %v538_v42 = vld [vmem:[%s3788_s29 + $0x29] sm:$0xff]  ;;  %v537_v43 = vld [vmem:[%s3788_s29 + $0x21] sm:$0xff]  ;;  %v536_v44 = vld [vmem:[%s3788_s29 + $0x19] sm:$0xff] }
  0x23   : > { %v541_v46 = vld [vmem:[%s3788_s29 + $0x41] sm:$0xff]  ;;  %v540_v47 = vld [vmem:[%s3788_s29 + $0x39] sm:$0xff]  ;;  %v539_v48 = vld [vmem:[%s3788_s29 + $0x31] sm:$0xff] }
  0x24   : > { %v544_v52 = vld [vmem:[%s3788_s29 + $0x59] sm:$0xff]  ;;  %v543_v53 = vld [vmem:[%s3788_s29 + $0x51] sm:$0xff]  ;;  %v542_v54 = vld [vmem:[%s3788_s29 + $0x49] sm:$0xff] }
  0x25   : > { %v547_v58 = vld [vmem:[%s3788_s29 + $0x71] sm:$0xff]  ;;  %v546_v59 = vld [vmem:[%s3788_s29 + $0x69] sm:$0xff]  ;;  %v545_v60 = vld [vmem:[%s3788_s29 + $0x61] sm:$0xff] }
  0x26   : > { %322 = vperm.xlu2 %3668, %v250_v7   ;;  %317 = vperm.xlu1 %3667, %v249_v8   ;;  %v550_v0 = vld [vmem:[%s3788_s29 + $0x89] sm:$0xff]  ;;  %v549_v1 = vld [vmem:[%s3788_s29 + $0x81] sm:$0xff]  ;;  %v548_v2 = vld [vmem:[%s3788_s29 + $0x79] sm:$0xff] }
  0x27   : > { %312 = vperm.xlu0 %3666, %v248_v9   ;;  %v553_v6 = vld [vmem:[%s3788_s29 + $0xa1] sm:$0xff]  ;;  %v552_v7 = vld [vmem:[%s3788_s29 + $0x99] sm:$0xff]  ;;  %v551_v8 = vld [vmem:[%s3788_s29 + $0x91] sm:$0xff] }
  0x2e   : > { %337 = vperm.xlu2 %3668, %v253_v10   ;;  %332 = vperm.xlu1 %3667, %v252_v11  }
  0x2f   : > { %327 = vperm.xlu0 %3666, %v251_v12   ;;  %v556_v12 = vld [vmem:[%s3788_s29 + $0xb9] sm:$0xff] }
  0x36   : > { %352 = vperm.xlu2 %3668, %v256_v13   ;;  %347 = vperm.xlu1 %3667, %v255_v14   ;;  %v555_v13 = vld [vmem:[%s3788_s29 + $0xb1] sm:$0xff]  ;;  %v554_v14 = vld [vmem:[%s3788_s29 + $0xa9] sm:$0xff] }
  0x37   : > { %342 = vperm.xlu0 %3666, %v254_v15  }
  0x3e   : > { %367 = vperm.xlu2 %3668, %v259_v16   ;;  %362 = vperm.xlu1 %3667, %v258_v17  }
  0x3f   : > { %357 = vperm.xlu0 %3666, %v257_v18   ;;  %v559_v18 = vld [vmem:[%s3788_s29 + $0xd1] sm:$0xff] }
  0x46   : > { %382 = vperm.xlu2 %3668, %v262_v19   ;;  %377 = vperm.xlu1 %3667, %v261_v20   ;;  %v558_v19 = vld [vmem:[%s3788_s29 + $0xc9] sm:$0xff]  ;;  %v557_v20 = vld [vmem:[%s3788_s29 + $0xc1] sm:$0xff] }
  0x47   : > { %372 = vperm.xlu0 %3666, %v260_v21  }
  0x4e   : > { %397 = vperm.xlu2 %3668, %v265_v22   ;;  %392 = vperm.xlu1 %3667, %v264_v23  }
  0x4f   : > { %387 = vperm.xlu0 %3666, %v263_v24   ;;  %v562_v24 = vld [vmem:[%s3788_s29 + $0xe9] sm:$0xff] }
  0x56   : > { %412 = vperm.xlu2 %3668, %v268_v25   ;;  %407 = vperm.xlu1 %3667, %v267_v26   ;;  %v561_v25 = vld [vmem:[%s3788_s29 + $0xe1] sm:$0xff]  ;;  %v560_v26 = vld [vmem:[%s3788_s29 + $0xd9] sm:$0xff] }
  0x57   : > { %402 = vperm.xlu0 %3666, %v266_v27  }
  0x5e   : > { %427 = vperm.xlu2 %3668, %v271_v28   ;;  %422 = vperm.xlu1 %3667, %v270_v29  }
  0x5f   : > { %417 = vperm.xlu0 %3666, %v269_v30   ;;  %v565_v30 = vld [vmem:[%s3788_s29 + $0x101] sm:$0xff] }
  0x66   : > { %442 = vperm.xlu2 %3668, %v274_v31   ;;  %437 = vperm.xlu1 %3667, %v273_v32   ;;  %v564_v31 = vld [vmem:[%s3788_s29 + $0xf9] sm:$0xff]  ;;  %v563_v32 = vld [vmem:[%s3788_s29 + $0xf1] sm:$0xff] }
  0x67   : > { %432 = vperm.xlu0 %3666, %v272_v33  }
  0x6e   : > { %457 = vperm.xlu2 %3668, %v277_v34   ;;  %452 = vperm.xlu1 %3667, %v276_v35  }
  0x6f   : > { %447 = vperm.xlu0 %3666, %v275_v36   ;;  %v568_v36 = vld [vmem:[%s3788_s29 + $0x119] sm:$0xff] }
  0x70   : > { %v3826_v37 = vpop.permute.xlu2 %302 }
  0x76   : > { %584 = vperm.xlu2 %3668, %v535_v38   ;;  %579 = vperm.xlu1 %3667, %v534_v39   ;;  %v567_v38 = vld [vmem:[%s3788_s29 + $0x111] sm:$0xff]  ;;  %v566_v39 = vld [vmem:[%s3788_s29 + $0x109] sm:$0xff] }
  0x77   : > { %574 = vperm.xlu0 %3666, %v533_v40  }
  0x78   : > { %v3831_v41 = vpop.permute.xlu2 %307 }
  0x7e   : > { %599 = vperm.xlu2 %3668, %v538_v42   ;;  %594 = vperm.xlu1 %3667, %v537_v43  }
  0x7f   : > { %589 = vperm.xlu0 %3666, %v536_v44   ;;  %v3929_v44 = vld [vmem:[%s3788_s29 + $0x12] sm:$0xff] }
  0x80   : > { %v3836_v45 = vpop.permute.xlu2 %322 }
  0x86   : > { %614 = vperm.xlu2 %3668, %v541_v46   ;;  %609 = vperm.xlu1 %3667, %v540_v47   ;;  %v826_v46 = vld [vmem:[%s3788_s29 + $0xa] sm:$0xff]  ;;  %v825_v47 = vld [vmem:[%s3788_s29 + $0x2] sm:$0xff] }
  0x87   : > { %604 = vperm.xlu0 %3666, %v539_v48  }
  0x88   : > { %v3841_v49 = vpop.permute.xlu2 %337  ;;  %v3843_v50 = vpop.permute.xlu1 %292 }
  0x89   : > { %v3845_v51 = vpop.permute.xlu0 %282 }
  0x8e   : > { %629 = vperm.xlu2 %3668, %v544_v52   ;;  %624 = vperm.xlu1 %3667, %v543_v53  }
  0x8f   : > { %619 = vperm.xlu0 %3666, %v542_v54   ;;  %v3941_v54 = vld [vmem:[%s3788_s29 + $0x2a] sm:$0xff] }
  0x90   : > { %v3850_v55 = vpop.permute.xlu2 %352  ;;  %v3852_v56 = vpop.permute.xlu1 %297 }
  0x91   : > { %v3854_v57 = vpop.permute.xlu0 %287 }
  0x96   : > { %644 = vperm.xlu2 %3668, %v547_v58   ;;  %639 = vperm.xlu1 %3667, %v546_v59   ;;  %v3944_v58 = vld [vmem:[%s3788_s29 + $0x22] sm:$0xff]  ;;  %v3947_v59 = vld [vmem:[%s3788_s29 + $0x1a] sm:$0xff] }
  0x97   : > { %634 = vperm.xlu0 %3666, %v545_v60  }
  0x98   : > { %v3859_v61 = vpop.permute.xlu2 %367  ;;  %v3861_v62 = vpop.permute.xlu1 %317 }
  0x99   : > { %v3863_v63 = vpop.permute.xlu0 %312 }
  0x9e   : > { %659 = vperm.xlu2 %3668, %v550_v0   ;;  %654 = vperm.xlu1 %3667, %v549_v1  }
  0x9f   : > { %649 = vperm.xlu0 %3666, %v548_v2   ;;  %v3959_v2 = vld [vmem:[%s3788_s29 + $0x42] sm:$0xff] }
  0xa0   : > { %v3868_v3 = vpop.permute.xlu2 %382  ;;  %v3870_v4 = vpop.permute.xlu1 %332 }
  0xa1   : > { %v3872_v5 = vpop.permute.xlu0 %327 }
  0xa6   : > { %674 = vperm.xlu2 %3668, %v553_v6   ;;  %669 = vperm.xlu1 %3667, %v552_v7   ;;  %v3962_v6 = vld [vmem:[%s3788_s29 + $0x3a] sm:$0xff]  ;;  %v3965_v7 = vld [vmem:[%s3788_s29 + $0x32] sm:$0xff] }
  0xa7   : > { %664 = vperm.xlu0 %3666, %v551_v8  }
  0xa8   : > { %v3877_v9 = vpop.permute.xlu2 %397  ;;  %v3879_v10 = vpop.permute.xlu1 %347 }
  0xa9   : > { %v3881_v11 = vpop.permute.xlu0 %342 }
  0xae   : > { %689 = vperm.xlu2 %3668, %v556_v12   ;;  %684 = vperm.xlu1 %3667, %v555_v13  }
  0xaf   : > { %679 = vperm.xlu0 %3666, %v554_v14   ;;  %v3977_v14 = vld [vmem:[%s3788_s29 + $0x5a] sm:$0xff] }
  0xb0   : > { %v3886_v15 = vpop.permute.xlu2 %412  ;;  %v3888_v16 = vpop.permute.xlu1 %362 }
  0xb1   : > { %v3890_v17 = vpop.permute.xlu0 %357 }
  0xb6   : > { %704 = vperm.xlu2 %3668, %v559_v18   ;;  %699 = vperm.xlu1 %3667, %v558_v19   ;;  %v3980_v18 = vld [vmem:[%s3788_s29 + $0x52] sm:$0xff]  ;;  %v3983_v19 = vld [vmem:[%s3788_s29 + $0x4a] sm:$0xff] }
  0xb7   : > { %694 = vperm.xlu0 %3666, %v557_v20  }
  0xb8   : > { %v3895_v21 = vpop.permute.xlu2 %427  ;;  %v3897_v22 = vpop.permute.xlu1 %377 }
  0xb9   : > { %6103 = vst [vmem:[#allocation5_spill] sm:$0xff] %v3895_v21  ;;  %v3899_v23 = vpop.permute.xlu0 %372 }
  0xba   : > { %6104 = vst [vmem:[#allocation6_spill] sm:$0xff] %v3897_v22 }
  0xbb   : > { %6105 = vst [vmem:[#allocation7_spill] sm:$0xff] %v3899_v23 }
  0xbe   : > { %719 = vperm.xlu2 %3668, %v562_v24   ;;  %714 = vperm.xlu1 %3667, %v561_v25  }
  0xbf   : > { %709 = vperm.xlu0 %3666, %v560_v26   ;;  %v3995_v26 = vld [vmem:[%s3788_s29 + $0x72] sm:$0xff] }
  0xc0   : > { %v3904_v27 = vpop.permute.xlu2 %442  ;;  %v3906_v28 = vpop.permute.xlu1 %392 }
  0xc1   : > { %6106 = vst [vmem:[#allocation8_spill] sm:$0xff] %v3904_v27  ;;  %v3908_v29 = vpop.permute.xlu0 %387  ;;  %v4127_v27 = vld [vmem:[%s3788_s29 + $0x10a] sm:$0xff] }
  0xc2   : > { %6107 = vst [vmem:[#allocation9_spill] sm:$0xff] %v3906_v28 }
  0xc3   : > { %6108 = vst [vmem:[#allocation10_spill] sm:$0xff] %v3908_v29 }
  0xc6   : > { %734 = vperm.xlu2 %3668, %v565_v30   ;;  %729 = vperm.xlu1 %3667, %v564_v31   ;;  %v3998_v30 = vld [vmem:[%s3788_s29 + $0x6a] sm:$0xff]  ;;  %v4001_v31 = vld [vmem:[%s3788_s29 + $0x62] sm:$0xff] }
  0xc7   : > { %724 = vperm.xlu0 %3666, %v563_v32  }
  0xc8   : > { %v3913_v33 = vpop.permute.xlu2 %457  ;;  %v3915_v34 = vpop.permute.xlu1 %407 }
  0xc9   : > { %6109 = vst [vmem:[#allocation11_spill] sm:$0xff] %v3915_v34  ;;  %v3917_v35 = vpop.permute.xlu0 %402  ;;  %v4109_v34 = vld [vmem:[%s3788_s29 + $0xf2] sm:$0xff] }
  0xca   : > { %6110 = vst [vmem:[#allocation12_spill] sm:$0xff] %v3917_v35  ;;  %v4034_v35 = vld [vmem:[%s3788_s29 + $0x9a] sm:$0xff] }
  0xce   : > { %749 = vperm.xlu2 %3668, %v568_v36   ;;  %744 = vperm.xlu1 %3667, %v567_v38  }
  0xcf   : > { %739 = vperm.xlu0 %3666, %v566_v39   ;;  %v4013_v39 = vld [vmem:[%s3788_s29 + $0x8a] sm:$0xff] }
  0xd0   : > { %v3922_v40 = vpop.permute.xlu2 %584  ;;  %v3924_v42 = vpop.permute.xlu1 %422 }
  0xd1   : > { %6111 = vst [vmem:[#allocation13_spill] sm:$0xff] %v3924_v42  ;;  %v3926_v43 = vpop.permute.xlu0 %417  ;;  %v4031_v42 = vld [vmem:[%s3788_s29 + $0xa2] sm:$0xff] }
  0xd2   : > { %6112 = vst [vmem:[#allocation14_spill] sm:$0xff] %v3926_v43 }
  0xd6   : > { %876 = vperm.xlu2 %3668, %v3929_v44   ;;  %871 = vperm.xlu1 %3667, %v826_v46   ;;  %v4016_v46 = vld [vmem:[%s3788_s29 + $0x82] sm:$0xff] }
  0xd7   : > { %866 = vperm.xlu0 %3666, %v825_v47   ;;  %v4019_v47 = vld [vmem:[%s3788_s29 + $0x7a] sm:$0xff] }
  0xd8   : > { %v3934_v48 = vpop.permute.xlu2 %599  ;;  %v3936_v52 = vpop.permute.xlu1 %437 }
  0xd9   : > { %6113 = vst [vmem:[#allocation15_spill] sm:$0xff] %v3934_v48  ;;  %v3938_v53 = vpop.permute.xlu0 %432 }
  0xda   : > { %6114 = vst [vmem:[#allocation16_spill] sm:$0xff] %v3936_v52 }
  0xdb   : > { %6115 = vst [vmem:[#allocation17_spill] sm:$0xff] %v3938_v53 }
  0xde   : > { %891 = vperm.xlu2 %3668, %v3941_v54   ;;  %886 = vperm.xlu1 %3667, %v3944_v58  }
  0xdf   : > { %881 = vperm.xlu0 %3666, %v3947_v59  }
  0xe0   : > { %v3952_v60 = vpop.permute.xlu2 %614  ;;  %v3954_v0 = vpop.permute.xlu1 %452 }
  0xe1   : > { %6116 = vst [vmem:[#allocation18_spill] sm:$0xff] %v3952_v60  ;;  %v3956_v1 = vpop.permute.xlu0 %447  ;;  %v4106_v60 = vld [vmem:[%s3788_s29 + $0xfa] sm:$0xff] }
  0xe2   : > { %6117 = vst [vmem:[#allocation19_spill] sm:$0xff] %v3954_v0  ;;  %v4088_v0 = vld [vmem:[%s3788_s29 + $0xe2] sm:$0xff] }
  0xe3   : > { %6118 = vst [vmem:[#allocation20_spill] sm:$0xff] %v3956_v1  ;;  %v4055_v1 = vld [vmem:[%s3788_s29 + $0xaa] sm:$0xff] }
  0xe6   : > { %906 = vperm.xlu2 %3668, %v3959_v2   ;;  %901 = vperm.xlu1 %3667, %v3962_v6  }
  0xe7   : > { %896 = vperm.xlu0 %3666, %v3965_v7  }
  0xe8   : > { %v3970_v8 = vpop.permute.xlu2 %629  ;;  %v3972_v12 = vpop.permute.xlu1 %579 }
  0xe9   : > { %6119 = vst [vmem:[#allocation21_spill] sm:$0xff] %v3970_v8  ;;  %v3974_v13 = vpop.permute.xlu0 %574  ;;  %v4103_v8 = vld [vmem:[%s3788_s29 + $0x102] sm:$0xff] }
  0xea   : > { %6120 = vst [vmem:[#allocation22_spill] sm:$0xff] %v3972_v12  ;;  %v4091_v12 = vld [vmem:[%s3788_s29 + $0xda] sm:$0xff] }
  0xeb   : > { %6121 = vst [vmem:[#allocation23_spill] sm:$0xff] %v3974_v13  ;;  %v4085_v13 = vld [vmem:[%s3788_s29 + $0xea] sm:$0xff] }
  0xee   : > { %921 = vperm.xlu2 %3668, %v3977_v14   ;;  %916 = vperm.xlu1 %3667, %v3980_v18  }
  0xef   : > { %911 = vperm.xlu0 %3666, %v3983_v19  }
  0xf0   : > { %v3988_v20 = vpop.permute.xlu2 %644  ;;  %v3990_v24 = vpop.permute.xlu1 %594 }
  0xf1   : > { %6122 = vst [vmem:[#allocation24_spill] sm:$0xff] %v3988_v20  ;;  %v3992_v25 = vpop.permute.xlu0 %589  ;;  %v4073_v20 = vld [vmem:[%s3788_s29 + $0xc2] sm:$0xff] }
  0xf2   : > { %6123 = vst [vmem:[#allocation25_spill] sm:$0xff] %v3990_v24  ;;  %v4070_v24 = vld [vmem:[%s3788_s29 + $0xca] sm:$0xff] }
  0xf3   : > { %6124 = vst [vmem:[#allocation26_spill] sm:$0xff] %v3992_v25  ;;  %v4067_v25 = vld [vmem:[%s3788_s29 + $0xd2] sm:$0xff] }
  0xf6   : > { %936 = vperm.xlu2 %3668, %v3995_v26   ;;  %931 = vperm.xlu1 %3667, %v3998_v30  }
  0xf7   : > { %926 = vperm.xlu0 %3666, %v4001_v31  }
  0xf8   : > { %v4006_v32 = vpop.permute.xlu2 %659  ;;  %v4008_v36 = vpop.permute.xlu1 %609 }
  0xf9   : > { %6125 = vst [vmem:[#allocation27_spill] sm:$0xff] %v4006_v32  ;;  %v4010_v38 = vpop.permute.xlu0 %604  ;;  %v4052_v32 = vld [vmem:[%s3788_s29 + $0xb2] sm:$0xff] }
  0xfa   : > { %6126 = vst [vmem:[#allocation28_spill] sm:$0xff] %v4008_v36  ;;  %v4049_v36 = vld [vmem:[%s3788_s29 + $0xba] sm:$0xff] }
  0xfb   : > { %6127 = vst [vmem:[#allocation29_spill] sm:$0xff] %v4010_v38  ;;  %v4037_v38 = vld [vmem:[%s3788_s29 + $0x92] sm:$0xff] }
  0xfe   : > { %951 = vperm.xlu2 %3668, %v4013_v39   ;;  %946 = vperm.xlu1 %3667, %v4016_v46  }
  0xff   : > { %941 = vperm.xlu0 %3666, %v4019_v47  }
 0x100   : > { %v4024_v53 = vpop.permute.xlu2 %674  ;;  %v4026_v52 = vpop.permute.xlu1 %624 }
 0x101   : > { %6128 = vst [vmem:[#allocation30_spill] sm:$0xff] %v4024_v53  ;;  %v4028_v43 = vpop.permute.xlu0 %619 }
 0x102   : > { %6129 = vst [vmem:[#allocation31_spill] sm:$0xff] %v4026_v52 }
 0x103   : > { %6130 = vst [vmem:[#allocation32_spill] sm:$0xff] %v4028_v43 }
 0x106   : > { %966 = vperm.xlu2 %3668, %v4031_v42   ;;  %961 = vperm.xlu1 %3667, %v4034_v35  }
 0x107   : > { %956 = vperm.xlu0 %3666, %v4037_v38  }
 0x108   : > { %v4042_v53 = vpop.permute.xlu2 %689  ;;  %v4044_v52 = vpop.permute.xlu1 %639 }
 0x109   : > { %6131 = vst [vmem:[#allocation33_spill] sm:$0xff] %v4042_v53  ;;  %v4046_v43 = vpop.permute.xlu0 %634 }
 0x10a   : > { %6132 = vst [vmem:[#allocation34_spill] sm:$0xff] %v4044_v52 }
 0x10b   : > { %6133 = vst [vmem:[#allocation35_spill] sm:$0xff] %v4046_v43 }
 0x10e   : > { %981 = vperm.xlu2 %3668, %v4049_v36   ;;  %976 = vperm.xlu1 %3667, %v4052_v32  }
 0x10f   : > { %971 = vperm.xlu0 %3666, %v4055_v1  }
 0x110   : > { %v4060_v53 = vpop.permute.xlu2 %704  ;;  %v4062_v52 = vpop.permute.xlu1 %654 }
 0x111   : > { %6134 = vst [vmem:[#allocation36_spill] sm:$0xff] %v4060_v53  ;;  %v4064_v43 = vpop.permute.xlu0 %649 }
 0x112   : > { %6135 = vst [vmem:[#allocation37_spill] sm:$0xff] %v4062_v52 }
 0x113   : > { %6136 = vst [vmem:[#allocation38_spill] sm:$0xff] %v4064_v43 }
 0x116   : > { %996 = vperm.xlu2 %3668, %v4067_v25   ;;  %991 = vperm.xlu1 %3667, %v4070_v24  }
 0x117   : > { %986 = vperm.xlu0 %3666, %v4073_v20  }
 0x118   : > { %v4078_v53 = vpop.permute.xlu2 %719  ;;  %v4080_v52 = vpop.permute.xlu1 %669 }
 0x119   : > { %6137 = vst [vmem:[#allocation39_spill] sm:$0xff] %v4078_v53  ;;  %v4082_v43 = vpop.permute.xlu0 %664 }
 0x11a   : > { %6138 = vst [vmem:[#allocation40_spill] sm:$0xff] %v4080_v52 }
 0x11b   : > { %6139 = vst [vmem:[#allocation41_spill] sm:$0xff] %v4082_v43 }
 0x11e   : > { %1011 = vperm.xlu2 %3668, %v4085_v13   ;;  %1006 = vperm.xlu1 %3667, %v4088_v0  }
 0x11f   : > { %1001 = vperm.xlu0 %3666, %v4091_v12  }
 0x120   : > { %v4096_v53 = vpop.permute.xlu2 %734  ;;  %v4098_v52 = vpop.permute.xlu1 %684 }
 0x121   : > { %6140 = vst [vmem:[#allocation42_spill] sm:$0xff] %v4096_v53  ;;  %v4100_v43 = vpop.permute.xlu0 %679 }
 0x122   : > { %6141 = vst [vmem:[#allocation43_spill] sm:$0xff] %v4098_v52  ;;  %v4121_v52 = vld [vmem:[%s3788_s29 + $0x11a] sm:$0xff] }
 0x123   : > { %6142 = vst [vmem:[#allocation44_spill] sm:$0xff] %v4100_v43  ;;  %v4124_v43 = vld [vmem:[%s3788_s29 + $0x112] sm:$0xff] }
 0x126   : > { %1026 = vperm.xlu2 %3668, %v4103_v8   ;;  %1021 = vperm.xlu1 %3667, %v4106_v60  }
 0x127   : > { %1016 = vperm.xlu0 %3666, %v4109_v34  }
 0x128   : > { %v4114_v29 = vpop.permute.xlu2 %749  ;;  %v4116_v28 = vpop.permute.xlu1 %699 }
 0x129   : > { %6143 = vst [vmem:[#allocation45_spill] sm:$0xff] %v4116_v28  ;;  %v4118_v53 = vpop.permute.xlu0 %694 }
 0x12a   : > { %6144 = vst [vmem:[#allocation46_spill] sm:$0xff] %v4118_v53 }
 0x12e   : > { %1041 = vperm.xlu2 %3668, %v4121_v52   ;;  %1036 = vperm.xlu1 %3667, %v4124_v43  }
 0x12f   : > { %1031 = vperm.xlu0 %3666, %v4127_v27  }
 0x130   : > { %v4132_v23 = vpop.permute.xlu2 %876  ;;  %v4134_v48 = vpop.permute.xlu1 %714 }
 0x131   : > { %6145 = vst [vmem:[#allocation47_spill] sm:$0xff] %v4132_v23  ;;  %v4136_v22 = vpop.permute.xlu0 %709 }
 0x132   : > { %6146 = vst [vmem:[#allocation48_spill] sm:$0xff] %v4134_v48 }
 0x133   : > { %6147 = vst [vmem:[#allocation49_spill] sm:$0xff] %v4136_v22 }
 0x136   : > { %1168 = vperm.xlu2 %3668, %v3944_v58   ;;  %1163 = vperm.xlu1 %3667, %v3947_v59  }
 0x137   : > { %1158 = vperm.xlu0 %3666, %v3929_v44  }
 0x138   : > { %v4141_v53 = vpop.permute.xlu2 %891  ;;  %v4143_v28 = vpop.permute.xlu1 %729 }
 0x139   : > { %6148 = vst [vmem:[#allocation50_spill] sm:$0xff] %v4141_v53  ;;  %v4145_v21 = vpop.permute.xlu0 %724 }
 0x13a   : > { %6149 = vst [vmem:[#allocation51_spill] sm:$0xff] %v4143_v28  ;;  %v1410_v28 = vld [vmem:[%s3788_s29 + $0x1b] sm:$0xff] }
 0x13b   : > { %6150 = vst [vmem:[#allocation52_spill] sm:$0xff] %v4145_v21  ;;  %v1411_v21 = vld [vmem:[%s3788_s29 + $0x23] sm:$0xff] }
 0x13e   : > { %1183 = vperm.xlu2 %3668, %v3962_v6   ;;  %1178 = vperm.xlu1 %3667, %v3965_v7  }
 0x13f   : > { %1173 = vperm.xlu0 %3666, %v3941_v54  }
 0x140   : > { %v4150_v48 = vpop.permute.xlu2 %906  ;;  %v4152_v22 = vpop.permute.xlu1 %744 }
 0x141   : > { %6151 = vst [vmem:[#allocation53_spill] sm:$0xff] %v4150_v48  ;;  %v4154_v58 = vpop.permute.xlu0 %739  ;;  %v4529_v48 = vld [vmem:[%s3788_s29 + $0x114] sm:$0xff] }
 0x142   : > { %6152 = vst [vmem:[#allocation54_spill] sm:$0xff] %v4152_v22  ;;  %v4517_v22 = vld [vmem:[%s3788_s29 + $0xec] sm:$0xff] }
 0x143   : > { %6153 = vst [vmem:[#allocation55_spill] sm:$0xff] %v4154_v58  ;;  %v4514_v58 = vld [vmem:[%s3788_s29 + $0xf4] sm:$0xff] }
 0x144   : > { %6248 = vst [vmem:[#allocation150_spill] sm:$0xff] %v4529_v48 }
 0x146   : > { %1198 = vperm.xlu2 %3668, %v3980_v18   ;;  %1193 = vperm.xlu1 %3667, %v3983_v19  }
 0x147   : > { %1188 = vperm.xlu0 %3666, %v3959_v2  }
 0x148   : > { %v4159_v44 = vpop.permute.xlu2 %921  ;;  %v4161_v59 = vpop.permute.xlu1 %871 }
 0x149   : > { %6154 = vst [vmem:[#allocation56_spill] sm:$0xff] %v4159_v44  ;;  %v4163_v6 = vpop.permute.xlu0 %866  ;;  %v4478_v44 = vld [vmem:[%s3788_s29 + $0xc4] sm:$0xff] }
 0x14a   : > { %6155 = vst [vmem:[#allocation57_spill] sm:$0xff] %v4161_v59  ;;  %v4463_v59 = vld [vmem:[%s3788_s29 + $0xa4] sm:$0xff] }
 0x14b   : > { %6156 = vst [vmem:[#allocation58_spill] sm:$0xff] %v4163_v6  ;;  %v4460_v6 = vld [vmem:[%s3788_s29 + $0xac] sm:$0xff] }
 0x14e   : > { %1213 = vperm.xlu2 %3668, %v3998_v30   ;;  %1208 = vperm.xlu1 %3667, %v4001_v31  }
 0x14f   : > { %1203 = vperm.xlu0 %3666, %v3977_v14  }
 0x150   : > { %v4168_v54 = vpop.permute.xlu2 %936  ;;  %v4170_v7 = vpop.permute.xlu1 %886 }
 0x151   : > { %6157 = vst [vmem:[#allocation59_spill] sm:$0xff] %v4168_v54  ;;  %v4172_v18 = vpop.permute.xlu0 %881  ;;  %v4424_v54 = vld [vmem:[%s3788_s29 + $0x7c] sm:$0xff] }
 0x152   : > { %6158 = vst [vmem:[#allocation60_spill] sm:$0xff] %v4170_v7 }
 0x153   : > { %6159 = vst [vmem:[#allocation61_spill] sm:$0xff] %v4172_v18 }
 0x156   : > { %1228 = vperm.xlu2 %3668, %v4016_v46   ;;  %1223 = vperm.xlu1 %3667, %v4019_v47  }
 0x157   : > { %1218 = vperm.xlu0 %3666, %v3995_v26  }
 0x158   : > { %v4177_v2 = vpop.permute.xlu2 %951  ;;  %v4179_v19 = vpop.permute.xlu1 %901 }
 0x159   : > { %6160 = vst [vmem:[#allocation62_spill] sm:$0xff] %v4177_v2  ;;  %v4181_v30 = vpop.permute.xlu0 %896  ;;  %v4403_v2 = vld [vmem:[%s3788_s29 + $0x6c] sm:$0xff] }
 0x15a   : > { %6161 = vst [vmem:[#allocation63_spill] sm:$0xff] %v4179_v19 }
 0x15b   : > { %6162 = vst [vmem:[#allocation64_spill] sm:$0xff] %v4181_v30 }
 0x15e   : > { %1243 = vperm.xlu2 %3668, %v4034_v35   ;;  %1238 = vperm.xlu1 %3667, %v4037_v38  }
 0x15f   : > { %1233 = vperm.xlu0 %3666, %v4013_v39  }
 0x160   : > { %v4186_v14 = vpop.permute.xlu2 %966  ;;  %v4188_v31 = vpop.permute.xlu1 %916 }
 0x161   : > { %6163 = vst [vmem:[#allocation65_spill] sm:$0xff] %v4186_v14  ;;  %v4190_v46 = vpop.permute.xlu0 %911  ;;  %v1701_v14 = vld [vmem:[%s3788_s29 + $0x14] sm:$0xff] }
 0x162   : > { %6164 = vst [vmem:[#allocation66_spill] sm:$0xff] %v4188_v31  ;;  %v1431_v31 = vld [vmem:[%s3788_s29 + $0xc3] sm:$0xff] }
 0x163   : > { %6165 = vst [vmem:[#allocation67_spill] sm:$0xff] %v4190_v46  ;;  %v1427_v46 = vld [vmem:[%s3788_s29 + $0xa3] sm:$0xff] }
 0x166   : > { %1258 = vperm.xlu2 %3668, %v4052_v32   ;;  %1253 = vperm.xlu1 %3667, %v4055_v1  }
 0x167   : > { %1248 = vperm.xlu0 %3666, %v4031_v42  }
 0x168   : > { %v4195_v26 = vpop.permute.xlu2 %981  ;;  %v4197_v47 = vpop.permute.xlu1 %931 }
 0x169   : > { %6166 = vst [vmem:[#allocation68_spill] sm:$0xff] %v4195_v26  ;;  %v4199_v35 = vpop.permute.xlu0 %926  ;;  %v1428_v26 = vld [vmem:[%s3788_s29 + $0xab] sm:$0xff] }
 0x16a   : > { %6167 = vst [vmem:[#allocation69_spill] sm:$0xff] %v4197_v47  ;;  %v1429_v47 = vld [vmem:[%s3788_s29 + $0xb3] sm:$0xff] }
 0x16b   : > { %6168 = vst [vmem:[#allocation70_spill] sm:$0xff] %v4199_v35  ;;  %v1424_v35 = vld [vmem:[%s3788_s29 + $0x8b] sm:$0xff] }
 0x16e   : > { %1273 = vperm.xlu2 %3668, %v4070_v24   ;;  %1268 = vperm.xlu1 %3667, %v4073_v20  }
 0x16f   : > { %1263 = vperm.xlu0 %3666, %v4049_v36   ;;  %v1151_v36 = vld [vmem:[%s3788_s29 + $0x122] sm:$0xff] }
 0x170   : > { %v4204_v38 = vpop.permute.xlu2 %996  ;;  %v4206_v39 = vpop.permute.xlu1 %946 }
 0x171   : > { %6169 = vst [vmem:[#allocation71_spill] sm:$0xff] %v4204_v38  ;;  %v4208_v32 = vpop.permute.xlu0 %941  ;;  %v1425_v38 = vld [vmem:[%s3788_s29 + $0x93] sm:$0xff] }
 0x172   : > { %6170 = vst [vmem:[#allocation72_spill] sm:$0xff] %v4206_v39  ;;  %v1426_v39 = vld [vmem:[%s3788_s29 + $0x9b] sm:$0xff] }
 0x173   : > { %6171 = vst [vmem:[#allocation73_spill] sm:$0xff] %v4208_v32  ;;  %v1421_v32 = vld [vmem:[%s3788_s29 + $0x73] sm:$0xff] }
 0x176   : > { %1288 = vperm.xlu2 %3668, %v4088_v0   ;;  %1283 = vperm.xlu1 %3667, %v4091_v12  }
 0x177   : > { %1278 = vperm.xlu0 %3666, %v4067_v25   ;;  %v1152_v25 = vld [vmem:[%s3788_s29 + $0x12a] sm:$0xff] }
 0x178   : > { %v4213_v42 = vpop.permute.xlu2 %1011  ;;  %v4215_v1 = vpop.permute.xlu1 %961 }
 0x179   : > { %6172 = vst [vmem:[#allocation74_spill] sm:$0xff] %v4213_v42  ;;  %v4217_v20 = vpop.permute.xlu0 %956  ;;  %v1422_v42 = vld [vmem:[%s3788_s29 + $0x7b] sm:$0xff] }
 0x17a   : > { %6173 = vst [vmem:[#allocation75_spill] sm:$0xff] %v4215_v1  ;;  %v1423_v1 = vld [vmem:[%s3788_s29 + $0x83] sm:$0xff] }
 0x17b   : > { %6174 = vst [vmem:[#allocation76_spill] sm:$0xff] %v4217_v20  ;;  %v1418_v20 = vld [vmem:[%s3788_s29 + $0x5b] sm:$0xff] }
 0x17e   : > { %1303 = vperm.xlu2 %3668, %v4106_v60   ;;  %1298 = vperm.xlu1 %3667, %v4109_v34  }
 0x17f   : > { %1293 = vperm.xlu0 %3666, %v4085_v13  }
 0x180   : > { %v4222_v24 = vpop.permute.xlu2 %1026  ;;  %v4224_v0 = vpop.permute.xlu1 %976 }
 0x181   : > { %6175 = vst [vmem:[#allocation77_spill] sm:$0xff] %v4222_v24  ;;  %v4226_v12 = vpop.permute.xlu0 %971  ;;  %v1419_v24 = vld [vmem:[%s3788_s29 + $0x63] sm:$0xff] }
 0x182   : > { %6176 = vst [vmem:[#allocation78_spill] sm:$0xff] %v4224_v0  ;;  %v1416_v0 = vld [vmem:[%s3788_s29 + $0x4b] sm:$0xff] }
 0x183   : > { %6177 = vst [vmem:[#allocation79_spill] sm:$0xff] %v4226_v12  ;;  %v1413_v12 = vld [vmem:[%s3788_s29 + $0x33] sm:$0xff] }
 0x186   : > { %1318 = vperm.xlu2 %3668, %v4124_v43   ;;  %1313 = vperm.xlu1 %3667, %v4127_v27  }
 0x187   : > { %1308 = vperm.xlu0 %3666, %v4103_v8  }
 0x188   : > { %v4231_v60 = vpop.permute.xlu2 %1041  ;;  %v4233_v34 = vpop.permute.xlu1 %991 }
 0x189   : > { %6178 = vst [vmem:[#allocation80_spill] sm:$0xff] %v4233_v34  ;;  %v4235_v13 = vpop.permute.xlu0 %986  ;;  %v1409_v34 = vld [vmem:[%s3788_s29 + $0x13] sm:$0xff] }
 0x18a   : > { %6179 = vst [vmem:[#allocation81_spill] sm:$0xff] %v4235_v13  ;;  %v1414_v13 = vld [vmem:[%s3788_s29 + $0x3b] sm:$0xff] }
 0x18e   : > { %1333 = vperm.xlu2 %3668, %v1152_v25   ;;  %1328 = vperm.xlu1 %3667, %v1151_v36  }
 0x18f   : > { %1323 = vperm.xlu0 %3666, %v4121_v52  }
 0x190   : > { %v4240_v43 = vpop.permute.xlu2 %1168  ;;  %v4242_v27 = vpop.permute.xlu1 %1006 }
 0x191   : > { %6180 = vst [vmem:[#allocation82_spill] sm:$0xff] %v4240_v43  ;;  %v4244_v8 = vpop.permute.xlu0 %1001  ;;  %v4553_v43 = vld [vmem:[%s3788_s29 + $0x11c] sm:$0xff] }
 0x192   : > { %6181 = vst [vmem:[#allocation83_spill] sm:$0xff] %v4242_v27  ;;  %v1412_v27 = vld [vmem:[%s3788_s29 + $0x2b] sm:$0xff] }
 0x193   : > { %6182 = vst [vmem:[#allocation84_spill] sm:$0xff] %v4244_v8  ;;  %v1417_v8 = vld [vmem:[%s3788_s29 + $0x53] sm:$0xff] }
 0x196   : > { %1460 = vperm.xlu2 %3668, %v1411_v21   ;;  %1455 = vperm.xlu1 %3667, %v1410_v28  }
 0x197   : > { %1450 = vperm.xlu0 %3666, %v1409_v34  }
 0x198   : > { %v4249_v25 = vpop.permute.xlu2 %1183  ;;  %v4251_v36 = vpop.permute.xlu1 %1021 }
 0x199   : > { %6183 = vst [vmem:[#allocation85_spill] sm:$0xff] %v4249_v25  ;;  %v4253_v52 = vpop.permute.xlu0 %1016  ;;  %v4535_v25 = vld [vmem:[%s3788_s29 + $0x104] sm:$0xff] }
 0x19a   : > { %6184 = vst [vmem:[#allocation86_spill] sm:$0xff] %v4251_v36  ;;  %v1415_v36 = vld [vmem:[%s3788_s29 + $0x43] sm:$0xff] }
 0x19b   : > { %6185 = vst [vmem:[#allocation87_spill] sm:$0xff] %v4253_v52  ;;  %v1420_v52 = vld [vmem:[%s3788_s29 + $0x6b] sm:$0xff] }
 0x19e   : > { %1475 = vperm.xlu2 %3668, %v1414_v13   ;;  %1470 = vperm.xlu1 %3667, %v1413_v12  }
 0x19f   : > { %1465 = vperm.xlu0 %3666, %v1412_v27  }
 0x1a0   : > { %v4258_v21 = vpop.permute.xlu2 %1198  ;;  %v4260_v28 = vpop.permute.xlu1 %1036 }
 0x1a1   : > { %6186 = vst [vmem:[#allocation88_spill] sm:$0xff] %v4258_v21  ;;  %v4262_v34 = vpop.permute.xlu0 %1031  ;;  %v4511_v21 = vld [vmem:[%s3788_s29 + $0xfc] sm:$0xff] }
 0x1a2   : > { %6187 = vst [vmem:[#allocation89_spill] sm:$0xff] %v4260_v28  ;;  %v4499_v28 = vld [vmem:[%s3788_s29 + $0xd4] sm:$0xff] }
 0x1a3   : > { %6188 = vst [vmem:[#allocation90_spill] sm:$0xff] %v4262_v34  ;;  %v4496_v34 = vld [vmem:[%s3788_s29 + $0xdc] sm:$0xff] }
 0x1a6   : > { %1490 = vperm.xlu2 %3668, %v1417_v8   ;;  %1485 = vperm.xlu1 %3667, %v1416_v0  }
 0x1a7   : > { %1480 = vperm.xlu0 %3666, %v1415_v36  }
 0x1a8   : > { %v4267_v13 = vpop.permute.xlu2 %1213  ;;  %v4269_v12 = vpop.permute.xlu1 %1163 }
 0x1a9   : > { %6189 = vst [vmem:[#allocation91_spill] sm:$0xff] %v4267_v13  ;;  %v4271_v27 = vpop.permute.xlu0 %1158  ;;  %v4457_v13 = vld [vmem:[%s3788_s29 + $0xb4] sm:$0xff] }
 0x1aa   : > { %6190 = vst [vmem:[#allocation92_spill] sm:$0xff] %v4269_v12  ;;  %v4445_v12 = vld [vmem:[%s3788_s29 + $0x8c] sm:$0xff] }
 0x1ab   : > { %6191 = vst [vmem:[#allocation93_spill] sm:$0xff] %v4271_v27  ;;  %v4442_v27 = vld [vmem:[%s3788_s29 + $0x94] sm:$0xff] }
 0x1ae   : > { %1505 = vperm.xlu2 %3668, %v1420_v52   ;;  %1500 = vperm.xlu1 %3667, %v1419_v24  }
 0x1af   : > { %1495 = vperm.xlu0 %3666, %v1418_v20  }
 0x1b0   : > { %v4276_v8 = vpop.permute.xlu2 %1228  ;;  %v4278_v0 = vpop.permute.xlu1 %1178 }
 0x1b1   : > { %6192 = vst [vmem:[#allocation94_spill] sm:$0xff] %v4276_v8  ;;  %v4280_v36 = vpop.permute.xlu0 %1173 }
 0x1b2   : > { %6193 = vst [vmem:[#allocation95_spill] sm:$0xff] %v4278_v0  ;;  %v4409_v0 = vld [vmem:[%s3788_s29 + $0x5c] sm:$0xff] }
 0x1b3   : > { %6194 = vst [vmem:[#allocation96_spill] sm:$0xff] %v4280_v36  ;;  %v4406_v36 = vld [vmem:[%s3788_s29 + $0x64] sm:$0xff] }
 0x1b6   : > { %1520 = vperm.xlu2 %3668, %v1423_v1   ;;  %1515 = vperm.xlu1 %3667, %v1422_v42  }
 0x1b7   : > { %1510 = vperm.xlu0 %3666, %v1421_v32  }
 0x1b8   : > { %v4285_v52 = vpop.permute.xlu2 %1243  ;;  %v4287_v24 = vpop.permute.xlu1 %1193 }
 0x1b9   : > { %6195 = vst [vmem:[#allocation97_spill] sm:$0xff] %v4285_v52  ;;  %v4289_v20 = vpop.permute.xlu0 %1188 }
 0x1ba   : > { %6196 = vst [vmem:[#allocation98_spill] sm:$0xff] %v4287_v24  ;;  %v4391_v24 = vld [vmem:[%s3788_s29 + $0x44] sm:$0xff] }
 0x1bb   : > { %6197 = vst [vmem:[#allocation99_spill] sm:$0xff] %v4289_v20  ;;  %v4388_v20 = vld [vmem:[%s3788_s29 + $0x4c] sm:$0xff] }
 0x1be   : > { %1535 = vperm.xlu2 %3668, %v1426_v39   ;;  %1530 = vperm.xlu1 %3667, %v1425_v38  }
 0x1bf   : > { %1525 = vperm.xlu0 %3666, %v1424_v35  }
 0x1c0   : > { %v4294_v1 = vpop.permute.xlu2 %1258  ;;  %v4296_v42 = vpop.permute.xlu1 %1208 }
 0x1c1   : > { %6198 = vst [vmem:[#allocation100_spill] sm:$0xff] %v4294_v1  ;;  %v4298_v32 = vpop.permute.xlu0 %1203  ;;  %v1432_v1 = vld [vmem:[%s3788_s29 + $0xcb] sm:$0xff] }
 0x1c2   : > { %6199 = vst [vmem:[#allocation101_spill] sm:$0xff] %v4296_v42  ;;  %v1430_v42 = vld [vmem:[%s3788_s29 + $0xbb] sm:$0xff] }
 0x1c3   : > { %6200 = vst [vmem:[#allocation102_spill] sm:$0xff] %v4298_v32  ;;  %v1434_v32 = vld [vmem:[%s3788_s29 + $0xdb] sm:$0xff] }
 0x1c6   : > { %1550 = vperm.xlu2 %3668, %v1429_v47   ;;  %1545 = vperm.xlu1 %3667, %v1428_v26  }
 0x1c7   : > { %1540 = vperm.xlu0 %3666, %v1427_v46  }
 0x1c8   : > { %v4303_v39 = vpop.permute.xlu2 %1273  ;;  %v4305_v38 = vpop.permute.xlu1 %1223 }
 0x1c9   : > { %6201 = vst [vmem:[#allocation103_spill] sm:$0xff] %v4303_v39  ;;  %v4307_v35 = vpop.permute.xlu0 %1218  ;;  %v1435_v39 = vld [vmem:[%s3788_s29 + $0xe3] sm:$0xff] }
 0x1ca   : > { %6202 = vst [vmem:[#allocation104_spill] sm:$0xff] %v4305_v38  ;;  %v1433_v38 = vld [vmem:[%s3788_s29 + $0xd3] sm:$0xff] }
 0x1cb   : > { %6203 = vst [vmem:[#allocation105_spill] sm:$0xff] %v4307_v35  ;;  %v1437_v35 = vld [vmem:[%s3788_s29 + $0xf3] sm:$0xff] }
 0x1ce   : > { %1565 = vperm.xlu2 %3668, %v1432_v1   ;;  %1560 = vperm.xlu1 %3667, %v1431_v31  }
 0x1cf   : > { %1555 = vperm.xlu0 %3666, %v1430_v42  }
 0x1d0   : > { %v4312_v47 = vpop.permute.xlu2 %1288  ;;  %v4314_v26 = vpop.permute.xlu1 %1238 }
 0x1d1   : > { %6204 = vst [vmem:[#allocation106_spill] sm:$0xff] %v4312_v47  ;;  %v4316_v46 = vpop.permute.xlu0 %1233  ;;  %v1438_v47 = vld [vmem:[%s3788_s29 + $0xfb] sm:$0xff] }
 0x1d2   : > { %6205 = vst [vmem:[#allocation107_spill] sm:$0xff] %v4314_v26  ;;  %v1436_v26 = vld [vmem:[%s3788_s29 + $0xeb] sm:$0xff] }
 0x1d3   : > { %6206 = vst [vmem:[#allocation108_spill] sm:$0xff] %v4316_v46  ;;  %v1440_v46 = vld [vmem:[%s3788_s29 + $0x10b] sm:$0xff] }
 0x1d6   : > { %1580 = vperm.xlu2 %3668, %v1435_v39   ;;  %1575 = vperm.xlu1 %3667, %v1434_v32  }
 0x1d7   : > { %1570 = vperm.xlu0 %3666, %v1433_v38  }
 0x1d8   : > { %v4321_v1 = vpop.permute.xlu2 %1303  ;;  %v4323_v31 = vpop.permute.xlu1 %1253 }
 0x1d9   : > { %6207 = vst [vmem:[#allocation109_spill] sm:$0xff] %v4321_v1  ;;  %v4325_v42 = vpop.permute.xlu0 %1248  ;;  %v1441_v1 = vld [vmem:[%s3788_s29 + $0x113] sm:$0xff] }
 0x1da   : > { %6208 = vst [vmem:[#allocation110_spill] sm:$0xff] %v4323_v31  ;;  %v1439_v31 = vld [vmem:[%s3788_s29 + $0x103] sm:$0xff] }
 0x1db   : > { %6209 = vst [vmem:[#allocation111_spill] sm:$0xff] %v4325_v42  ;;  %v1443_v42 = vld [vmem:[%s3788_s29 + $0x123] sm:$0xff] }
 0x1de   : > { %1595 = vperm.xlu2 %3668, %v1438_v47   ;;  %1590 = vperm.xlu1 %3667, %v1437_v35  }
 0x1df   : > { %1585 = vperm.xlu0 %3666, %v1436_v26  }
 0x1e0   : > { %v4330_v39 = vpop.permute.xlu2 %1318  ;;  %v4332_v32 = vpop.permute.xlu1 %1268 }
 0x1e1   : > { %6210 = vst [vmem:[#allocation112_spill] sm:$0xff] %v4330_v39  ;;  %v4334_v38 = vpop.permute.xlu0 %1263  ;;  %v1444_v39 = vld [vmem:[%s3788_s29 + $0x12b] sm:$0xff] }
 0x1e2   : > { %6211 = vst [vmem:[#allocation113_spill] sm:$0xff] %v4332_v32  ;;  %v1442_v32 = vld [vmem:[%s3788_s29 + $0x11b] sm:$0xff] }
 0x1e3   : > { %6212 = vst [vmem:[#allocation114_spill] sm:$0xff] %v4334_v38  ;;  %v4355_v38 = vld [vmem:[%s3788_s29 + $0x24] sm:$0xff] }
 0x1e6   : > { %1610 = vperm.xlu2 %3668, %v1441_v1   ;;  %1605 = vperm.xlu1 %3667, %v1440_v46  }
 0x1e7   : > { %1600 = vperm.xlu0 %3666, %v1439_v31  }
 0x1e8   : > { %v4339_v47 = vpop.permute.xlu2 %1333  ;;  %v4341_v35 = vpop.permute.xlu1 %1283 }
 0x1e9   : > { %6213 = vst [vmem:[#allocation115_spill] sm:$0xff] %v4341_v35  ;;  %v4343_v26 = vpop.permute.xlu0 %1278  ;;  %v1702_v35 = vld [vmem:[%s3788_s29 + $0x1c] sm:$0xff] }
 0x1ea   : > { %6214 = vst [vmem:[#allocation116_spill] sm:$0xff] %v4343_v26  ;;  %v4373_v26 = vld [vmem:[%s3788_s29 + $0x2c] sm:$0xff] }
 0x1ee   : > { %1625 = vperm.xlu2 %3668, %v1444_v39   ;;  %1620 = vperm.xlu1 %3667, %v1443_v42  }
 0x1ef   : > { %1615 = vperm.xlu0 %3666, %v1442_v32  }
 0x1f0   : > { %v4348_v1 = vpop.permute.xlu2 %1460  ;;  %v4350_v46 = vpop.permute.xlu1 %1298 }
 0x1f1   : > { %6215 = vst [vmem:[#allocation117_spill] sm:$0xff] %v4348_v1  ;;  %v4352_v31 = vpop.permute.xlu0 %1293 }
 0x1f2   : > { %6216 = vst [vmem:[#allocation118_spill] sm:$0xff] %v4350_v46  ;;  %v4367_v46 = vld [vmem:[%s3788_s29 + $0x3c] sm:$0xff] }
 0x1f3   : > { %6217 = vst [vmem:[#allocation119_spill] sm:$0xff] %v4352_v31  ;;  %v4370_v31 = vld [vmem:[%s3788_s29 + $0x34] sm:$0xff] }
 0x1f6   : > { %1752 = vperm.xlu2 %3668, %v4355_v38   ;;  %1747 = vperm.xlu1 %3667, %v1702_v35  }
 0x1f7   : > { %1742 = vperm.xlu0 %3666, %v1701_v14  }
 0x1f8   : > { %v4360_v42 = vpop.permute.xlu2 %1475  ;;  %v4362_v39 = vpop.permute.xlu1 %1313 }
 0x1f9   : > { %6218 = vst [vmem:[#allocation120_spill] sm:$0xff] %v4360_v42  ;;  %v4364_v32 = vpop.permute.xlu0 %1308  ;;  %v4532_v42 = vld [vmem:[%s3788_s29 + $0x10c] sm:$0xff] }
 0x1fa   : > { %6219 = vst [vmem:[#allocation121_spill] sm:$0xff] %v4362_v39  ;;  %v4385_v39 = vld [vmem:[%s3788_s29 + $0x54] sm:$0xff] }
 0x1fb   : > { %6220 = vst [vmem:[#allocation122_spill] sm:$0xff] %v4364_v32 }
 0x1fe   : > { %1767 = vperm.xlu2 %3668, %v4367_v46   ;;  %1762 = vperm.xlu1 %3667, %v4370_v31  }
 0x1ff   : > { %1757 = vperm.xlu0 %3666, %v4373_v26  }
 0x200   : > { %v4378_v14 = vpop.permute.xlu2 %1490  ;;  %v4380_v35 = vpop.permute.xlu1 %1328 }
 0x201   : > { %6221 = vst [vmem:[#allocation123_spill] sm:$0xff] %v4378_v14  ;;  %v4382_v32 = vpop.permute.xlu0 %1323  ;;  %v4493_v14 = vld [vmem:[%s3788_s29 + $0xe4] sm:$0xff] }
 0x202   : > { %6222 = vst [vmem:[#allocation124_spill] sm:$0xff] %v4380_v35  ;;  %v4481_v35 = vld [vmem:[%s3788_s29 + $0xbc] sm:$0xff] }
 0x203   : > { %6223 = vst [vmem:[#allocation125_spill] sm:$0xff] %v4382_v32  ;;  %v4475_v32 = vld [vmem:[%s3788_s29 + $0xcc] sm:$0xff] }
 0x206   : > { %1782 = vperm.xlu2 %3668, %v4385_v39   ;;  %1777 = vperm.xlu1 %3667, %v4388_v20  }
 0x207   : > { %1772 = vperm.xlu0 %3666, %v4391_v24  }
 0x208   : > { %v4396_v52 = vpop.permute.xlu2 %1505  ;;  %v4398_v30 = vpop.permute.xlu1 %1455 }
 0x209   : > { %6224 = vst [vmem:[#allocation126_spill] sm:$0xff] %v4396_v52  ;;  %v4400_v19 = vpop.permute.xlu0 %1450  ;;  %v4439_v52 = vld [vmem:[%s3788_s29 + $0x9c] sm:$0xff] }
 0x20a   : > { %6225 = vst [vmem:[#allocation127_spill] sm:$0xff] %v4398_v30  ;;  %v4427_v30 = vld [vmem:[%s3788_s29 + $0x74] sm:$0xff] }
 0x20b   : > { %6226 = vst [vmem:[#allocation128_spill] sm:$0xff] %v4400_v19  ;;  %v4421_v19 = vld [vmem:[%s3788_s29 + $0x84] sm:$0xff] }
 0x20e   : > { %1797 = vperm.xlu2 %3668, %v4403_v2   ;;  %1792 = vperm.xlu1 %3667, %v4406_v36  }
 0x20f   : > { %1787 = vperm.xlu0 %3666, %v4409_v0  }
 0x210   : > { %v4414_v8 = vpop.permute.xlu2 %1520  ;;  %v4416_v18 = vpop.permute.xlu1 %1470 }
 0x211   : > { %6227 = vst [vmem:[#allocation129_spill] sm:$0xff] %v4414_v8  ;;  %v4418_v7 = vpop.permute.xlu0 %1465 }
 0x212   : > { %6228 = vst [vmem:[#allocation130_spill] sm:$0xff] %v4416_v18 }
 0x213   : > { %6229 = vst [vmem:[#allocation131_spill] sm:$0xff] %v4418_v7 }
 0x216   : > { %1812 = vperm.xlu2 %3668, %v4421_v19   ;;  %1807 = vperm.xlu1 %3667, %v4424_v54  }
 0x217   : > { %1802 = vperm.xlu0 %3666, %v4427_v30  }
 0x218   : > { %v4432_v8 = vpop.permute.xlu2 %1535  ;;  %v4434_v18 = vpop.permute.xlu1 %1485 }
 0x219   : > { %6230 = vst [vmem:[#allocation132_spill] sm:$0xff] %v4432_v8  ;;  %v4436_v7 = vpop.permute.xlu0 %1480 }
 0x21a   : > { %6231 = vst [vmem:[#allocation133_spill] sm:$0xff] %v4434_v18 }
 0x21b   : > { %6232 = vst [vmem:[#allocation134_spill] sm:$0xff] %v4436_v7 }
 0x21e   : > { %1827 = vperm.xlu2 %3668, %v4439_v52   ;;  %1822 = vperm.xlu1 %3667, %v4442_v27  }
 0x21f   : > { %1817 = vperm.xlu0 %3666, %v4445_v12  }
 0x220   : > { %v4450_v8 = vpop.permute.xlu2 %1550  ;;  %v4452_v18 = vpop.permute.xlu1 %1500 }
 0x221   : > { %6233 = vst [vmem:[#allocation135_spill] sm:$0xff] %v4450_v8  ;;  %v4454_v7 = vpop.permute.xlu0 %1495 }
 0x222   : > { %6234 = vst [vmem:[#allocation136_spill] sm:$0xff] %v4452_v18 }
 0x223   : > { %6235 = vst [vmem:[#allocation137_spill] sm:$0xff] %v4454_v7 }
 0x226   : > { %1842 = vperm.xlu2 %3668, %v4457_v13   ;;  %1837 = vperm.xlu1 %3667, %v4460_v6  }
 0x227   : > { %1832 = vperm.xlu0 %3666, %v4463_v59  }
 0x228   : > { %v4468_v8 = vpop.permute.xlu2 %1565  ;;  %v4470_v18 = vpop.permute.xlu1 %1515 }
 0x229   : > { %6236 = vst [vmem:[#allocation138_spill] sm:$0xff] %v4468_v8  ;;  %v4472_v7 = vpop.permute.xlu0 %1510 }
 0x22a   : > { %6237 = vst [vmem:[#allocation139_spill] sm:$0xff] %v4470_v18 }
 0x22b   : > { %6238 = vst [vmem:[#allocation140_spill] sm:$0xff] %v4472_v7 }
 0x22e   : > { %1857 = vperm.xlu2 %3668, %v4475_v32   ;;  %1852 = vperm.xlu1 %3667, %v4478_v44  }
 0x22f   : > { %1847 = vperm.xlu0 %3666, %v4481_v35  }
 0x230   : > { %v4486_v8 = vpop.permute.xlu2 %1580  ;;  %v4488_v18 = vpop.permute.xlu1 %1530 }
 0x231   : > { %6239 = vst [vmem:[#allocation141_spill] sm:$0xff] %v4486_v8  ;;  %v4490_v7 = vpop.permute.xlu0 %1525 }
 0x232   : > { %6240 = vst [vmem:[#allocation142_spill] sm:$0xff] %v4488_v18 }
 0x233   : > { %6241 = vst [vmem:[#allocation143_spill] sm:$0xff] %v4490_v7 }
 0x236   : > { %1872 = vperm.xlu2 %3668, %v4493_v14   ;;  %1867 = vperm.xlu1 %3667, %v4496_v34  }
 0x237   : > { %1862 = vperm.xlu0 %3666, %v4499_v28  }
 0x238   : > { %v4504_v8 = vpop.permute.xlu2 %1595  ;;  %v4506_v18 = vpop.permute.xlu1 %1545 }
 0x239   : > { %6242 = vst [vmem:[#allocation144_spill] sm:$0xff] %v4504_v8  ;;  %v4508_v7 = vpop.permute.xlu0 %1540 }
 0x23a   : > { %6243 = vst [vmem:[#allocation145_spill] sm:$0xff] %v4506_v18 }
 0x23b   : > { %6244 = vst [vmem:[#allocation146_spill] sm:$0xff] %v4508_v7 }
 0x23e   : > { %1887 = vperm.xlu2 %3668, %v4511_v21   ;;  %1882 = vperm.xlu1 %3667, %v4514_v58  }
 0x23f   : > { %1877 = vperm.xlu0 %3666, %v4517_v22  }
 0x240   : > { %v4522_v8 = vpop.permute.xlu2 %1610  ;;  %v4524_v18 = vpop.permute.xlu1 %1560 }
 0x241   : > { %6245 = vst [vmem:[#allocation147_spill] sm:$0xff] %v4522_v8  ;;  %v4526_v7 = vpop.permute.xlu0 %1555 }
 0x242   : > { %6246 = vst [vmem:[#allocation148_spill] sm:$0xff] %v4524_v18  ;;  %v4547_v18 = vld [vmem:[%s3788_s29 + $0x12c] sm:$0xff] }
 0x243   : > { %6247 = vst [vmem:[#allocation149_spill] sm:$0xff] %v4526_v7  ;;  %v4550_v7 = vld [vmem:[%s3788_s29 + $0x124] sm:$0xff] }
 0x244   : > { %6252 = vst [vmem:[#allocation154_spill] sm:$0xff] %v4547_v18 }
 0x246   : > { %1902 = vperm.xlu2 %3668, %v4529_v48   ;;  %1897 = vperm.xlu1 %3667, %v4532_v42  }
 0x247   : > { %1892 = vperm.xlu0 %3666, %v4535_v25  }
 0x248   : > { %v4540_v53 = vpop.permute.xlu2 %1625  ;;  %v4542_v1 = vpop.permute.xlu1 %1575 }
 0x249   : > { %6249 = vst [vmem:[#allocation151_spill] sm:$0xff] %v4540_v53  ;;  %v4544_v8 = vpop.permute.xlu0 %1570 }
 0x24a   : > { %6250 = vst [vmem:[#allocation152_spill] sm:$0xff] %v4542_v1 }
 0x24b   : > { %6251 = vst [vmem:[#allocation153_spill] sm:$0xff] %v4544_v8 }
 0x24e   : > { %1917 = vperm.xlu2 %3668, %v4547_v18   ;;  %1912 = vperm.xlu1 %3667, %v4550_v7  }
 0x24f   : > { %1907 = vperm.xlu0 %3666, %v4553_v43  }
 0x250   : > { %v4558_v48 = vpop.permute.xlu2 %1752  ;;  %v4560_v23 = vpop.permute.xlu1 %1590 }
 0x251   : > { %6253 = vst [vmem:[#allocation155_spill] sm:$0xff] %v4560_v23  ;;  %v4562_v53 = vpop.permute.xlu0 %1585 }
 0x252   : > { %6254 = vst [vmem:[#allocation156_spill] sm:$0xff] %v4562_v53 }
 0x256   : > { %2044 = vperm.xlu2 %3668, %v4370_v31   ;;  %2039 = vperm.xlu1 %3667, %v4373_v26  }
 0x257   : > { %2034 = vperm.xlu0 %3666, %v4355_v38  }
 0x258   : > { %v4567_v8 = vpop.permute.xlu2 %1767  ;;  %v4569_v1 = vpop.permute.xlu1 %1605 }
 0x259   : > { %6255 = vst [vmem:[#allocation157_spill] sm:$0xff] %v4569_v1  ;;  %v4571_v18 = vpop.permute.xlu0 %1600 }
 0x25a   : > { %6256 = vst [vmem:[#allocation158_spill] sm:$0xff] %v4571_v18  ;;  %v3609_v18 = vld [vmem:[%s6097_s2 + $0x1] sm:$0x1] }
 0x25e   : > { %2059 = vperm.xlu2 %3668, %v4388_v20   ;;  %2054 = vperm.xlu1 %3667, %v4391_v24  }
 0x25f   : > { %2049 = vperm.xlu0 %3666, %v4367_v46  }
 0x260   : > { %v4576_v23 = vpop.permute.xlu2 %1782  ;;  %v4578_v53 = vpop.permute.xlu1 %1620 }
 0x261   : > { %v4580_v31 = vpop.permute.xlu0 %1615 }
 0x266   : > { %2074 = vperm.xlu2 %3668, %v4406_v36   ;;  %2069 = vperm.xlu1 %3667, %v4409_v0  }
 0x267   : > { %2064 = vperm.xlu0 %3666, %v4385_v39  }
 0x268   : > { %v4585_v38 = vpop.permute.xlu2 %1797  ;;  %v4587_v26 = vpop.permute.xlu1 %1747 }
 0x269   : > { %v4589_v20 = vpop.permute.xlu0 %1742 }
 0x26e   : > { %2089 = vperm.xlu2 %3668, %v4424_v54   ;;  %2084 = vperm.xlu1 %3667, %v4427_v30  }
 0x26f   : > { %2079 = vperm.xlu0 %3666, %v4403_v2  }
 0x270   : > { %v4594_v24 = vpop.permute.xlu2 %1812  ;;  %v4596_v46 = vpop.permute.xlu1 %1762 }
 0x271   : > { %6257 = vst [vmem:[#allocation159_spill] sm:$0xff] %v4596_v46  ;;  %v4598_v36 = vpop.permute.xlu0 %1757  ;;  %v6306_v46 = vld [vmem:[#allocation27_spill] sm:$0xff] }
 0x272   : > { %6258 = vst [vmem:[#allocation160_spill] sm:$0xff] %v4598_v36 }
 0x276   : > { %2104 = vperm.xlu2 %3668, %v4442_v27   ;;  %2099 = vperm.xlu1 %3667, %v4445_v12  }
 0x277   : > { %2094 = vperm.xlu0 %3666, %v4421_v19  }
 0x278   : > { %v4603_v0 = vpop.permute.xlu2 %1827  ;;  %v4605_v39 = vpop.permute.xlu1 %1777 }
 0x279   : > { %6259 = vst [vmem:[#allocation161_spill] sm:$0xff] %v4603_v0  ;;  %v4607_v54 = vpop.permute.xlu0 %1772  ;;  %v2027_v0 = vld [vmem:[%s3788_s29 + $0x134] sm:$0xff] }
 0x27a   : > { %6260 = vst [vmem:[#allocation162_spill] sm:$0xff] %v4605_v39 }
 0x27b   : > { %6261 = vst [vmem:[#allocation163_spill] sm:$0xff] %v4607_v54 }
 0x27e   : > { %2119 = vperm.xlu2 %3668, %v4460_v6   ;;  %2114 = vperm.xlu1 %3667, %v4463_v59  }
 0x27f   : > { %2109 = vperm.xlu0 %3666, %v4439_v52  }
 0x280   : > { %v4612_v2 = vpop.permute.xlu2 %1842  ;;  %v4614_v30 = vpop.permute.xlu1 %1792 }
 0x281   : > { %6262 = vst [vmem:[#allocation164_spill] sm:$0xff] %v4612_v2  ;;  %v4616_v27 = vpop.permute.xlu0 %1787  ;;  %v6300_v2 = vld [vmem:[#allocation24_spill] sm:$0xff] }
 0x282   : > { %6263 = vst [vmem:[#allocation165_spill] sm:$0xff] %v4614_v30 }
 0x283   : > { %6264 = vst [vmem:[#allocation166_spill] sm:$0xff] %v4616_v27 }
 0x286   : > { %2134 = vperm.xlu2 %3668, %v4478_v44   ;;  %2129 = vperm.xlu1 %3667, %v4481_v35   ;;  %v278_v44 = vld [vmem:[%s6097_s2] sm:$0x1] }
 0x287   : > { %2124 = vperm.xlu0 %3666, %v4457_v13   ;;  %v279_v35 = vunpack.c.l.bf16 %v278_v44  ;;  %v571_v44 = vunpack.c.l.bf16 %v3609_v18 }
 0x288   : > { %v4621_v19 = vpop.permute.xlu2 %1857  ;;  %v4623_v12 = vpop.permute.xlu1 %1807 }
 0x289   : > { %6265 = vst [vmem:[#allocation167_spill] sm:$0xff] %v4621_v19  ;;  %v4625_v6 = vpop.permute.xlu0 %1802 }
 0x28a   : > { %6266 = vst [vmem:[#allocation168_spill] sm:$0xff] %v4623_v12  ;;  %v6284_v12 = vld [vmem:[#allocation9_spill] sm:$0xff] }
 0x28b   : > { %6267 = vst [vmem:[#allocation169_spill] sm:$0xff] %v4625_v6  ;;  %v6283_v6 = vld [vmem:[#allocation151_spill] sm:$0xff] }
 0x28e   : > { %2149 = vperm.xlu2 %3668, %v4496_v34   ;;  %2144 = vperm.xlu1 %3667, %v4499_v28   ;;  %v4644_v28 = vperm.slane %v279_v35, 0  ;;  %v3610_v34 = vld [vmem:[%s6097_s2 + $0x2] sm:$0x1] }
 0x28f   : > { %2139 = vperm.xlu0 %3666, %v4475_v32   ;;  %v863_v35 = vunpack.c.l.bf16 %v3610_v34 }
 0x290   : > { %v4633_v59 = vpop.permute.xlu2 %1872  ;;  %v4635_v52 = vpop.permute.xlu1 %1822  ;;  %v4671_v18 = vmul.f32 %v4644_v28, %v3841_v49  ;;  %v4690_v49 = vperm.slane %v571_v44, 0  ;;  %v4794_v19 = vmul.f32 %v4644_v28, %v6284_v12 }
 0x291   : > { %6268 = vst [vmem:[#allocation170_spill] sm:$0xff] %v4633_v59  ;;  %v4637_v13 = vpop.permute.xlu0 %1817 }
 0x292   : > { %6269 = vst [vmem:[#allocation171_spill] sm:$0xff] %v4635_v52  ;;  %v4702_v52 = vmul.f32 %v4644_v28, %v3861_v62  ;;  %v4721_v62 = vmul.f32 %v4644_v28, %v3870_v4  ;;  %v4740_v4 = vmul.f32 %v4644_v28, %v3879_v10  ;;  %v4760_v10 = vmul.f32 %v4644_v28, %v3888_v16  ;;  %v6278_v16 = vld [vmem:[#allocation6_spill] sm:$0xff] }
 0x293   : > { %6270 = vst [vmem:[#allocation172_spill] sm:$0xff] %v4637_v13  ;;  %v4778_v59 = vmul.f32 %v4644_v28, %v6278_v16  ;;  %v6286_v16 = vld [vmem:[#allocation10_spill] sm:$0xff]  ;;  %v767_v54 = vmul.f32 %v4690_v49, %v6300_v2 }
 0x294   : > { %6285 = vst [vmem:[#allocation6_spill] sm:$0xff] %v4794_v19  ;;  %v4798_v27 = vmul.f32 %v4644_v28, %v6286_v16  ;;  %v6291_v16 = vld [vmem:[#allocation150_spill] sm:$0xff] }
 0x296   : > { %2164 = vperm.xlu2 %3668, %v4514_v58   ;;  %2159 = vperm.xlu1 %3667, %v4517_v22   ;;  %v3611_v58 = vld [vmem:[%s6097_s2 + $0x3] sm:$0x1]  ;;  %v4661_v22 = vmul.f32 %v4644_v28, %v3826_v37  ;;  %v3612_v37 = vld [vmem:[%s6097_s2 + $0x4] sm:$0x1] }
 0x297   : > { %2154 = vperm.xlu0 %3666, %v4493_v14   ;;  %v466_v14 = vmul.f32 %v4644_v28, %v3831_v41  ;;  %v4684_v41 = vmul.f32 %v4644_v28, %v3850_v55  ;;  %v1155_v34 = vunpack.c.l.bf16 %v3611_v58  ;;  %v4708_v55 = vmul.f32 %v4644_v28, %v3863_v63 }
 0x298   : > { %v4650_v32 = vpop.permute.xlu2 %1887  ;;  %v4652_v1 = vpop.permute.xlu1 %1837  ;;  %v1447_v44 = vunpack.c.l.bf16 %v3612_v37  ;;  %v4725_v63 = vmul.f32 %v4644_v28, %v3872_v5  ;;  %v496_v5 = vmul.f32 %v4644_v28, %v3913_v33  ;;  %v4756_v37 = vmul.f32 %v4644_v28, %v3886_v15  ;;  %v6277_v15 = vld [vmem:[#allocation5_spill] sm:$0xff] }
 0x299   : > { %6271 = vst [vmem:[#allocation173_spill] sm:$0xff] %v4650_v32  ;;  %v4654_v13 = vpop.permute.xlu0 %1832  ;;  %v4667_v32 = vmul.f32 %v4644_v28, %v3836_v45  ;;  %v4688_v45 = vmul.f32 %v4644_v28, %v3852_v56  ;;  %v788_v56 = vmul.f32 %v4690_v49, %v4114_v29  ;;  %v4729_v29 = vmul.f32 %v4644_v28, %v3877_v9 }
 0x29a   : > { %6272 = vst [vmem:[#allocation174_spill] sm:$0xff] %v4652_v1  ;;  %v4677_v1 = vmul.f32 %v4644_v28, %v3845_v51  ;;  %v4698_v51 = vmul.f32 %v4644_v28, %v3859_v61  ;;  %v4717_v61 = vmul.f32 %v4644_v28, %v3868_v3  ;;  %v4746_v9 = vperm.slane %v1155_v34, 0 }
 0x29b   : > { %6273 = vst [vmem:[#allocation175_spill] sm:$0xff] %v4654_v13  ;;  %v463_v13 = vmul.f32 %v4644_v28, %v3843_v50  ;;  %v4694_v50 = vmul.f32 %v4644_v28, %v3854_v57  ;;  %v4712_v57 = vperm.slane %v863_v35, 0  ;;  %v4752_v35 = vmul.f32 %v4644_v28, %v3881_v11 }
 0x29c   : > { %v755_v33 = vmul.f32 %v4690_v49, %v3922_v40  ;;  %v1372_v34 = vmul.f32 %v4746_v9, %v4339_v47  ;;  %v4770_v11 = vmul.f32 %v4644_v28, %v3890_v17  ;;  %v6279_v40 = vld [vmem:[#allocation15_spill] sm:$0xff] }
 0x29d   : > { %6287 = vst [vmem:[#allocation15_spill] sm:$0xff] %v4798_v27 }
 0x29e   : > { %2179 = vperm.xlu2 %3668, %v4532_v42   ;;  %2174 = vperm.xlu1 %3667, %v4535_v25   ;;  %v3613_v25 = vld [vmem:[%s6097_s2 + $0x5] sm:$0x1]  ;;  %v1080_v42 = vmul.f32 %v4712_v57, %v4231_v60  ;;  %v824_v60 = vadd.f32 %v788_v56, %v496_v5  ;;  %v758_v56 = vmul.f32 %v4690_v49, %v6279_v40  ;;  %v6280_v5 = vld [vmem:[#allocation7_spill] sm:$0xff] }
 0x29f   : > { %2169 = vperm.xlu0 %3666, %v4511_v21   ;;  %v4784_v47 = vmul.f32 %v4644_v28, %v6280_v5  ;;  %v6288_v40 = vld [vmem:[#allocation11_spill] sm:$0xff] }
 0x2a0   : > { %v4734_v21 = vpop.permute.xlu2 %1902  ;;  %v4736_v3 = vpop.permute.xlu1 %1852  ;;  %v1116_v17 = vadd.f32 %v1080_v42, %v824_v60  ;;  %v4802_v5 = vmul.f32 %v4644_v28, %v6288_v40  ;;  %v791_v42 = vadd.f32 %v755_v33, %v463_v13  ;;  %v6290_v60 = vld [vmem:[#allocation47_spill] sm:$0xff]  ;;  %v794_v27 = vadd.f32 %v758_v56, %v466_v14  ;;  %v6292_v40 = vld [vmem:[#allocation18_spill] sm:$0xff] }
 0x2a1   : > { %6274 = vst [vmem:[#allocation176_spill] sm:$0xff] %v4734_v21  ;;  %v4748_v58 = vpop.permute.xlu0 %1847  ;;  %v4774_v21 = vmul.f32 %v4644_v28, %v6277_v15  ;;  %v1047_v12 = vmul.f32 %v4712_v57, %v6290_v60 }
 0x2a2   : > { %6275 = vst [vmem:[#allocation177_spill] sm:$0xff] %v4736_v3  ;;  %v1739_v3 = vunpack.c.l.bf16 %v3613_v25 }
 0x2a3   : > { %6276 = vst [vmem:[#allocation178_spill] sm:$0xff] %v4748_v58  ;;  %v4766_v58 = vperm.slane %v1447_v44, 0  ;;  %v6281_v44 = vld [vmem:[#allocation8_spill] sm:$0xff] }
 0x2a4   : > { %v4788_v25 = vmul.f32 %v4644_v28, %v6281_v44  ;;  %6289 = vst [vmem:[#allocation7_spill] sm:$0xff] %v4802_v5  ;;  %v1408_v44 = vadd.f32 %v1372_v34, %v1116_v17  ;;  %v4811_v19 = vperm.slane %v1739_v3, 0  ;;  %v761_v5 = vmul.f32 %v4690_v49, %v6292_v40  ;;  %v6296_v34 = vld [vmem:[#allocation82_spill] sm:$0xff] }
 0x2a5   : > { %v1664_v15 = vmul.f32 %v4766_v58, %v6283_v6  ;;  %v3614_v6 = vld [vmem:[%s6097_s2 + $0x6] sm:$0x1]  ;;  %v1339_v3 = vmul.f32 %v4746_v9, %v6296_v34  ;;  %v6302_v34 = vld [vmem:[#allocation26_spill] sm:$0xff] }
 0x2a6   : > { %6282 = vst [vmem:[#allocation5_spill] sm:$0xff] %v4788_v25  ;;  %2194 = vperm.xlu2 %3668, %v4550_v7   ;;  %2189 = vperm.xlu1 %3667, %v4553_v43   ;;  %v6293_v7 = vld [vmem:[#allocation21_spill] sm:$0xff]  ;;  %v6294_v25 = vld [vmem:[#allocation22_spill] sm:$0xff]  ;;  %v2031_v60 = vunpack.c.l.bf16 %v3614_v6  ;;  %v4846_v36 = vadd.f32 %v761_v5, %v4667_v32  ;;  %v4868_v5 = vadd.f32 %v767_v54, %v4684_v41 }
 0x2a7   : > { %2184 = vperm.xlu0 %3666, %v6291_v16   ;;  %v764_v43 = vmul.f32 %v4690_v49, %v6293_v7  ;;  %v754_v30 = vmul.f32 %v4690_v49, %v6294_v25  ;;  %v1700_v17 = vadd.f32 %v1664_v15, %v1408_v44  ;;  %v6298_v16 = vld [vmem:[#allocation19_spill] sm:$0xff]  ;;  %v756_v15 = vmul.f32 %v4690_v49, %v6302_v34  ;;  %v6310_v41 = vld [vmem:[#allocation29_spill] sm:$0xff] }
 0x2a8   : > { %v1918_v13 = vpop.permute.xlu2 %1917  ;;  %v4820_v33 = vpop.permute.xlu1 %1867  ;;  %v4829_v40 = vmul.f32 %v4644_v28, %v6298_v16  ;;  %v6299_v7 = vld [vmem:[#allocation23_spill] sm:$0xff]  ;;  %v1083_v44 = vadd.f32 %v1047_v12, %v791_v42  ;;  %v2028_v16 = vld [vmem:[%s3788_s29 + $0x13c] sm:$0xff]  ;;  %v770_v42 = vmul.f32 %v4690_v49, %v6306_v46  ;;  %v4862_v34 = vperm.slane %v2031_v60, 0 }
 0x2a9   : > { %6295 = vst [vmem:[#allocation8_spill] sm:$0xff] %v4820_v33  ;;  %v1956_v14 = vmul.f32 %v4811_v19, %v1918_v13  ;;  %v4825_v56 = vpop.permute.xlu0 %1862  ;;  %v753_v25 = vmul.f32 %v4690_v49, %v6299_v7  ;;  %v6301_v33 = vld [vmem:[#allocation25_spill] sm:$0xff]  ;;  %v6305_v7 = vld [vmem:[#allocation20_spill] sm:$0xff]  ;;  %v4858_v12 = vadd.f32 %v754_v30, %v4694_v50  ;;  %v4876_v30 = vadd.f32 %v756_v15, %v4688_v45 }
 0x2aa   : > { %6297 = vst [vmem:[#allocation151_spill] sm:$0xff] %v4825_v56  ;;  %v757_v39 = vmul.f32 %v4690_v49, %v6301_v33  ;;  %v6303_v13 = vld [vmem:[#allocation117_spill] sm:$0xff]  ;;  %v4850_v2 = vmul.f32 %v4644_v28, %v6305_v7  ;;  %v4853_v33 = vadd.f32 %v764_v43, %v4671_v18  ;;  %v6307_v18 = vld [vmem:[#allocation28_spill] sm:$0xff]  ;;  %v4882_v54 = vadd.f32 %v770_v42, %v4698_v51 }
 0x2ab   : > { %v1631_v6 = vmul.f32 %v4766_v58, %v6303_v13  ;;  %v4841_v56 = vadd.f32 %v1956_v14, %v1700_v17  ;;  %v1375_v17 = vadd.f32 %v1339_v3, %v1083_v44  ;;  %v1923_v14 = vmul.f32 %v4811_v19, %v4558_v48  ;;  %v6308_v48 = vld [vmem:[#allocation50_spill] sm:$0xff]  ;;  %v6314_v44 = vld [vmem:[#allocation32_spill] sm:$0xff] }
 0x2ac   : > { %v4865_v32 = vadd.f32 %v753_v25, %v4677_v1  ;;  %v760_v43 = vmul.f32 %v4690_v49, %v6307_v18  ;;  %v4873_v46 = vadd.f32 %v757_v39, %v4661_v22  ;;  %v1050_v50 = vmul.f32 %v4712_v57, %v6308_v48  ;;  %v6309_v1 = vld [vmem:[#allocation154_spill] sm:$0xff]  ;;  %v6312_v39 = vld [vmem:[#allocation31_spill] sm:$0xff]  ;;  %v6317_v18 = vld [vmem:[#allocation33_spill] sm:$0xff] }
 0x2ad   : > { %6304 = vst [vmem:[#allocation9_spill] sm:$0xff] %v4841_v56  ;;  %v1667_v3 = vadd.f32 %v1631_v6, %v1375_v17  ;;  %v759_v60 = vmul.f32 %v4690_v49, %v6310_v41  ;;  %v6311_v25 = vld [vmem:[#allocation30_spill] sm:$0xff]  ;;  %v763_v22 = vmul.f32 %v4690_v49, %v6312_v39  ;;  %v762_v13 = vmul.f32 %v4690_v49, %v6314_v44  ;;  %v6315_v6 = vld [vmem:[#allocation85_spill] sm:$0xff]  ;;  %v6320_v44 = vld [vmem:[#allocation36_spill] sm:$0xff] }
 0x2ae   : > { %2209 = vperm.xlu2 %3668, %v2028_v16   ;;  %2204 = vperm.xlu1 %3667, %v2027_v0   ;;  %v773_v0 = vmul.f32 %v4690_v49, %v6311_v25  ;;  %v1342_v51 = vmul.f32 %v4746_v9, %v6315_v6  ;;  %v4900_v17 = vadd.f32 %v760_v43, %v4702_v52  ;;  %v6319_v25 = vld [vmem:[#allocation35_spill] sm:$0xff]  ;;  %v6323_v56 = vld [vmem:[#allocation38_spill] sm:$0xff] }
 0x2af   : > { %2199 = vperm.xlu0 %3666, %v6309_v1   ;;  %v1959_v16 = vadd.f32 %v1923_v14, %v1667_v3  ;;  %v776_v48 = vmul.f32 %v4690_v49, %v6317_v18  ;;  %v6318_v1 = vld [vmem:[#allocation34_spill] sm:$0xff]  ;;  %v765_v39 = vmul.f32 %v4690_v49, %v6319_v25  ;;  %v779_v14 = vmul.f32 %v4690_v49, %v6320_v44  ;;  %v2287_v52 = vld [vmem:[%s3788_s29 + $0x35] sm:$0xff] }
 0x2b0   : > { %v2045_v45 = vpop.permute.xlu2 %2044  ;;  %v4890_v15 = vpop.permute.xlu1 %1882  ;;  %v766_v41 = vmul.f32 %v4690_v49, %v6318_v1  ;;  %v1086_v3 = vadd.f32 %v1050_v50, %v794_v27  ;;  %v2286_v43 = vld [vmem:[%s3788_s29 + $0x2d] sm:$0xff]  ;;  %v4920_v18 = vadd.f32 %v773_v0, %v4717_v61  ;;  %v6322_v1 = vld [vmem:[#allocation37_spill] sm:$0xff]  ;;  %v768_v44 = vmul.f32 %v4690_v49, %v6323_v56 }
 0x2b1   : > { %6313 = vst [vmem:[#allocation10_spill] sm:$0xff] %v4890_v15  ;;  %v2215_v7 = vmul.f32 %v4862_v34, %v2045_v45  ;;  %v4897_v42 = vpop.permute.xlu0 %1877  ;;  %v6321_v45 = vld [vmem:[#allocation120_spill] sm:$0xff]  ;;  %v4917_v15 = vadd.f32 %v759_v60, %v4708_v55  ;;  %v769_v25 = vmul.f32 %v4690_v49, %v6322_v1  ;;  %v2285_v27 = vld [vmem:[%s3788_s29 + $0x25] sm:$0xff]  ;;  %v4928_v50 = vadd.f32 %v763_v22, %v4721_v62 }
 0x2b2   : > { %6316 = vst [vmem:[#allocation11_spill] sm:$0xff] %v4897_v42  ;;  %v1634_v6 = vmul.f32 %v4766_v58, %v6321_v45  ;;  %v1926_v55 = vmul.f32 %v4811_v19, %v4567_v8  ;;  %v4936_v61 = vadd.f32 %v776_v48, %v4729_v29  ;;  %v4939_v60 = vadd.f32 %v766_v41, %v4740_v4  ;;  %v6324_v0 = vld [vmem:[#allocation53_spill] sm:$0xff]  ;;  %v6325_v22 = vld [vmem:[#allocation54_spill] sm:$0xff]  ;;  %v6327_v41 = vld [vmem:[#allocation55_spill] sm:$0xff] }
 0x2b3   : > { %v4912_v42 = vadd.f32 %v2215_v7, %v1959_v16  ;;  %v4931_v16 = vadd.f32 %v762_v13, %v4725_v63  ;;  %v1378_v7 = vadd.f32 %v1342_v51, %v1086_v3  ;;  %v1053_v56 = vmul.f32 %v4712_v57, %v6324_v0  ;;  %v6326_v51 = vld [vmem:[#allocation39_spill] sm:$0xff]  ;;  %v6329_v45 = vld [vmem:[#allocation89_spill] sm:$0xff] }
 0x2b4   : > { %v4944_v62 = vadd.f32 %v765_v39, %v4752_v35  ;;  %v4947_v63 = vadd.f32 %v779_v14, %v4756_v37  ;;  %v787_v8 = vmul.f32 %v4690_v49, %v6325_v22  ;;  %v4952_v29 = vadd.f32 %v769_v25, %v4760_v10  ;;  %v6328_v14 = vld [vmem:[#allocation88_spill] sm:$0xff]  ;;  %v6332_v25 = vld [vmem:[#allocation41_spill] sm:$0xff] }
 0x2b5   : > { %v1670_v13 = vadd.f32 %v1634_v6, %v1378_v7  ;;  %v4955_v4 = vadd.f32 %v768_v44, %v4770_v11  ;;  %v782_v48 = vmul.f32 %v4690_v49, %v6326_v51  ;;  %v786_v35 = vmul.f32 %v4690_v49, %v6327_v41  ;;  %v6333_v7 = vld [vmem:[#allocation90_spill] sm:$0xff]  ;;  %v6335_v51 = vld [vmem:[#allocation124_spill] sm:$0xff] }
 0x2b6   : > { %2336 = vperm.xlu2 %3668, %v2287_v52   ;;  %2331 = vperm.xlu1 %3667, %v2286_v43   ;;  %v1345_v3 = vmul.f32 %v4746_v9, %v6328_v14  ;;  %v1079_v10 = vmul.f32 %v4712_v57, %v6329_v45  ;;  %v6331_v43 = vld [vmem:[#allocation40_spill] sm:$0xff]  ;;  %v4974_v44 = vmul.f32 %v4690_v49, %v6332_v25  ;;  %v2290_v14 = vld [vmem:[%s3788_s29 + $0x4d] sm:$0xff]  ;;  %v2289_v45 = vld [vmem:[%s3788_s29 + $0x45] sm:$0xff] }
 0x2b7   : > { %2326 = vperm.xlu0 %3666, %v2285_v27   ;;  %v1962_v6 = vadd.f32 %v1926_v55, %v1670_v13  ;;  %v772_v1 = vmul.f32 %v4690_v49, %v6331_v43  ;;  %v1089_v27 = vadd.f32 %v1053_v56, %v4846_v36  ;;  %v1078_v0 = vmul.f32 %v4712_v57, %v6333_v7  ;;  %v6334_v55 = vld [vmem:[#allocation123_spill] sm:$0xff]  ;;  %v6336_v56 = vld [vmem:[#allocation56_spill] sm:$0xff]  ;;  %v6337_v7 = vld [vmem:[#allocation125_spill] sm:$0xff] }
 0x2b8   : > { %v2060_v37 = vpop.permute.xlu2 %2059  ;;  %v4961_v39 = vpop.permute.xlu1 %1897  ;;  %v823_v22 = vadd.f32 %v787_v8, %v4829_v40  ;;  %v1637_v13 = vmul.f32 %v4766_v58, %v6334_v55  ;;  %v1371_v41 = vmul.f32 %v4746_v9, %v6335_v51  ;;  %v4989_v43 = vadd.f32 %v782_v48, %v4774_v21  ;;  %v2288_v8 = vld [vmem:[%s3788_s29 + $0x3d] sm:$0xff] }
 0x2b9   : > { %v2218_v11 = vmul.f32 %v4862_v34, %v2060_v37  ;;  %v4968_v52 = vpop.permute.xlu0 %1892  ;;  %v822_v36 = vadd.f32 %v786_v35, %v4850_v2  ;;  %v1056_v25 = vmul.f32 %v4712_v57, %v6336_v56  ;;  %v1370_v40 = vmul.f32 %v4746_v9, %v6337_v7  ;;  %v6338_v51 = vld [vmem:[#allocation57_spill] sm:$0xff] }
 0x2ba   : > { %6330 = vst [vmem:[#allocation47_spill] sm:$0xff] %v4968_v52  ;;  %v1381_v55 = vadd.f32 %v1345_v3, %v1089_v27  ;;  %v1115_v52 = vadd.f32 %v1079_v10, %v823_v22  ;;  %v1046_v21 = vmul.f32 %v4712_v57, %v6338_v51  ;;  %v1662_v2 = vmul.f32 %v4766_v58, %v4580_v31  ;;  %v6339_v3 = vld [vmem:[#allocation58_spill] sm:$0xff]  ;;  %v6340_v22 = vld [vmem:[#allocation91_spill] sm:$0xff] }
 0x2bb   : > { %v4984_v37 = vadd.f32 %v2218_v11, %v1962_v6  ;;  %v1929_v6 = vmul.f32 %v4811_v19, %v4576_v23  ;;  %v1663_v11 = vmul.f32 %v4766_v58, %v4578_v53  ;;  %v1114_v48 = vadd.f32 %v1078_v0, %v822_v36  ;;  %v6341_v0 = vld [vmem:[#allocation92_spill] sm:$0xff] }
 0x2bc   : > { %v5006_v35 = vadd.f32 %v772_v1, %v4778_v59  ;;  %v1045_v10 = vmul.f32 %v4712_v57, %v6339_v3  ;;  %v1673_v27 = vadd.f32 %v1637_v13, %v1381_v55  ;;  %v1407_v23 = vadd.f32 %v1371_v41, %v1115_v52  ;;  %v6342_v41 = vld [vmem:[#allocation93_spill] sm:$0xff]  ;;  %v6343_v55 = vld [vmem:[#allocation126_spill] sm:$0xff] }
 0x2bd   : > { %v1092_v53 = vadd.f32 %v1056_v25, %v4853_v33  ;;  %v1348_v56 = vmul.f32 %v4746_v9, %v6340_v22  ;;  %v1338_v36 = vmul.f32 %v4746_v9, %v6341_v0  ;;  %v1406_v31 = vadd.f32 %v1370_v40, %v1114_v48  ;;  %v6344_v48 = vld [vmem:[#allocation127_spill] sm:$0xff] }
 0x2be   : > { %2351 = vperm.xlu2 %3668, %v2290_v14   ;;  %2346 = vperm.xlu1 %3667, %v2289_v45   ;;  %v1965_v1 = vadd.f32 %v1929_v6, %v1673_v27  ;;  %v1699_v45 = vadd.f32 %v1663_v11, %v1407_v23  ;;  %v1082_v33 = vadd.f32 %v1046_v21, %v4858_v12  ;;  %v2293_v27 = vld [vmem:[%s3788_s29 + $0x65] sm:$0xff]  ;;  %v2292_v23 = vld [vmem:[%s3788_s29 + $0x5d] sm:$0xff]  ;;  %v6345_v21 = vld [vmem:[#allocation59_spill] sm:$0xff] }
 0x2bf   : > { %2341 = vperm.xlu0 %3666, %v2288_v8   ;;  %v1337_v25 = vmul.f32 %v4746_v9, %v6342_v41  ;;  %v1698_v8 = vadd.f32 %v1662_v2, %v1406_v31  ;;  %v1640_v51 = vmul.f32 %v4766_v58, %v6343_v55  ;;  %v1630_v6 = vmul.f32 %v4766_v58, %v6344_v48  ;;  %v6346_v2 = vld [vmem:[#allocation128_spill] sm:$0xff] }
 0x2c0   : > { %v2075_v14 = vpop.permute.xlu2 %2074  ;;  %v1913_v59 = vpop.permute.xlu1 %1912  ;;  %v1081_v12 = vadd.f32 %v1045_v10, %v4865_v32  ;;  %v1059_v22 = vmul.f32 %v4712_v57, %v6345_v21  ;;  %v1629_v0 = vmul.f32 %v4766_v58, %v6346_v2  ;;  %v5049_v41 = vadd.f32 %v4974_v44, %v4784_v47  ;;  %v6352_v2 = vld [vmem:[#allocation129_spill] sm:$0xff] }
 0x2c1   : > { %v2221_v7 = vmul.f32 %v4862_v34, %v2075_v14  ;;  %v1955_v52 = vmul.f32 %v4811_v19, %v1913_v59  ;;  %v1908_v13 = vpop.permute.xlu0 %1907  ;;  %v2291_v14 = vld [vmem:[%s3788_s29 + $0x55] sm:$0xff]  ;;  %v1384_v59 = vadd.f32 %v1348_v56, %v1092_v53  ;;  %v6348_v53 = vld [vmem:[#allocation61_spill] sm:$0xff] }
 0x2c2   : > { %v1954_v40 = vmul.f32 %v4811_v19, %v1908_v13  ;;  %v1374_v13 = vadd.f32 %v1338_v36, %v1082_v33  ;;  %v1373_v10 = vadd.f32 %v1337_v25, %v1081_v12  ;;  %v1048_v56 = vmul.f32 %v4712_v57, %v6348_v53  ;;  %v6349_v33 = vld [vmem:[#allocation94_spill] sm:$0xff] }
 0x2c3   : > { %v5025_v11 = vadd.f32 %v2221_v7, %v1965_v1  ;;  %v5027_v3 = vadd.f32 %v1955_v52, %v1699_v45  ;;  %v1932_v1 = vmul.f32 %v4811_v19, %v4585_v38  ;;  %v1922_v45 = vmul.f32 %v4811_v19, %v4587_v26  ;;  %v6347_v7 = vld [vmem:[#allocation60_spill] sm:$0xff] }
 0x2c4   : > { %v5036_v31 = vadd.f32 %v1954_v40, %v1698_v8  ;;  %v1049_v32 = vmul.f32 %v4712_v57, %v6347_v7  ;;  %v1921_v52 = vmul.f32 %v4811_v19, %v4589_v20  ;;  %v1676_v38 = vadd.f32 %v1640_v51, %v1384_v59  ;;  %v6350_v8 = vld [vmem:[#allocation95_spill] sm:$0xff] }
 0x2c5   : > { %v1666_v36 = vadd.f32 %v1630_v6, %v1374_v13  ;;  %v1095_v26 = vadd.f32 %v1059_v22, %v4868_v5  ;;  %v1351_v25 = vmul.f32 %v4746_v9, %v6349_v33  ;;  %v1341_v20 = vmul.f32 %v4746_v9, %v6350_v8  ;;  %v2295_v7 = vld [vmem:[%s3788_s29 + $0x75] sm:$0xff] }
 0x2c6   : > { %2366 = vperm.xlu2 %3668, %v2293_v27   ;;  %2361 = vperm.xlu1 %3667, %v2292_v23   ;;  %v1665_v40 = vadd.f32 %v1629_v0, %v1373_v10  ;;  %v1968_v44 = vadd.f32 %v1932_v1, %v1676_v38  ;;  %v1085_v5 = vadd.f32 %v1049_v32, %v4873_v46  ;;  %v6351_v23 = vld [vmem:[#allocation96_spill] sm:$0xff]  ;;  %v6354_v32 = vld [vmem:[#allocation62_spill] sm:$0xff] }
 0x2c7   : > { %2356 = vperm.xlu0 %3666, %v2291_v14   ;;  %v1958_v48 = vadd.f32 %v1922_v45, %v1666_v36  ;;  %v1340_v12 = vmul.f32 %v4746_v9, %v6351_v23  ;;  %v1643_v0 = vmul.f32 %v4766_v58, %v6352_v2  ;;  %v6353_v14 = vld [vmem:[#allocation130_spill] sm:$0xff]  ;;  %v2296_v45 = vld [vmem:[%s3788_s29 + $0x7d] sm:$0xff]  ;;  %v1084_v46 = vadd.f32 %v1048_v56, %v4876_v30 }
 0x2c8   : > { %v2090_v55 = vpop.permute.xlu2 %2089  ;;  %v2040_v47 = vpop.permute.xlu1 %2039  ;;  %v1957_v21 = vadd.f32 %v1921_v52, %v1665_v40  ;;  %v1633_v59 = vmul.f32 %v4766_v58, %v6353_v14  ;;  %v1062_v10 = vmul.f32 %v4712_v57, %v6354_v32  ;;  %v6355_v52 = vld [vmem:[#allocation131_spill] sm:$0xff]  ;;  %v1387_v33 = vadd.f32 %v1351_v25, %v1095_v26  ;;  %v6360_v26 = vld [vmem:[#allocation64_spill] sm:$0xff]  ;;  %v6361_v23 = vld [vmem:[#allocation97_spill] sm:$0xff] }
 0x2c9   : > { %v2224_v27 = vmul.f32 %v4862_v34, %v2090_v55  ;;  %v2214_v51 = vmul.f32 %v4862_v34, %v2040_v47  ;;  %v2035_v6 = vpop.permute.xlu0 %2034  ;;  %v1632_v53 = vmul.f32 %v4766_v58, %v6355_v52  ;;  %v2294_v36 = vld [vmem:[%s3788_s29 + $0x6d] sm:$0xff]  ;;  %v1377_v8 = vadd.f32 %v1341_v20, %v1085_v5 }
 0x2ca   : > { %v2213_v22 = vmul.f32 %v4862_v34, %v2035_v6  ;;  %v1935_v40 = vmul.f32 %v4811_v19, %v4594_v24  ;;  %v6356_v55 = vld [vmem:[#allocation159_spill] sm:$0xff]  ;;  %v1376_v56 = vadd.f32 %v1340_v12, %v1084_v46  ;;  %v1051_v25 = vmul.f32 %v4712_v57, %v6360_v26 }
 0x2cb   : > { %v5068_v13 = vadd.f32 %v2224_v27, %v1968_v44  ;;  %v5070_v1 = vadd.f32 %v2214_v51, %v1958_v48  ;;  %v1925_v47 = vmul.f32 %v4811_v19, %v6356_v55  ;;  %v6357_v44 = vld [vmem:[#allocation63_spill] sm:$0xff]  ;;  %v6358_v48 = vld [vmem:[#allocation160_spill] sm:$0xff]  ;;  %v6359_v51 = vld [vmem:[#allocation42_spill] sm:$0xff]  ;;  %v1679_v24 = vadd.f32 %v1643_v0, %v1387_v33 }
 0x2cc   : > { %v5079_v38 = vadd.f32 %v2213_v22, %v1957_v21  ;;  %v1052_v30 = vmul.f32 %v4712_v57, %v6357_v44  ;;  %v1924_v27 = vmul.f32 %v4811_v19, %v6358_v48  ;;  %v5092_v6 = vmul.f32 %v4690_v49, %v6359_v51  ;;  %v6362_v21 = vld [vmem:[#allocation98_spill] sm:$0xff]  ;;  %v6364_v33 = vld [vmem:[#allocation132_spill] sm:$0xff]  ;;  %v6365_v55 = vld [vmem:[#allocation133_spill] sm:$0xff] }
 0x2cd   : > { %v1669_v20 = vadd.f32 %v1633_v59, %v1377_v8  ;;  %v1098_v5 = vadd.f32 %v1062_v10, %v4882_v54  ;;  %v1354_v12 = vmul.f32 %v4746_v9, %v6361_v23  ;;  %v1344_v22 = vmul.f32 %v4746_v9, %v6362_v21  ;;  %v6363_v10 = vld [vmem:[#allocation99_spill] sm:$0xff] }
 0x2ce   : > { %2381 = vperm.xlu2 %3668, %v2296_v45   ;;  %2376 = vperm.xlu1 %3667, %v2295_v7   ;;  %v1668_v2 = vadd.f32 %v1632_v53, %v1376_v56  ;;  %v1971_v7 = vadd.f32 %v1935_v40, %v1679_v24  ;;  %v1088_v54 = vadd.f32 %v1052_v30, %v4900_v17  ;;  %v2299_v56 = vld [vmem:[%s3788_s29 + $0x95] sm:$0xff]  ;;  %v2298_v48 = vld [vmem:[%s3788_s29 + $0x8d] sm:$0xff]  ;;  %v6366_v30 = vld [vmem:[#allocation65_spill] sm:$0xff] }
 0x2cf   : > { %2371 = vperm.xlu0 %3666, %v2294_v36   ;;  %v1961_v46 = vadd.f32 %v1925_v47, %v1669_v20  ;;  %v1343_v52 = vmul.f32 %v4746_v9, %v6363_v10  ;;  %v1646_v8 = vmul.f32 %v4766_v58, %v6364_v33  ;;  %v1636_v40 = vmul.f32 %v4766_v58, %v6365_v55  ;;  %v2297_v20 = vld [vmem:[%s3788_s29 + $0x85] sm:$0xff] }
 0x2d0   : > { %v2105_v14 = vpop.permute.xlu2 %2104  ;;  %v2055_v45 = vpop.permute.xlu1 %2054  ;;  %v1960_v36 = vadd.f32 %v1924_v27, %v1668_v2  ;;  %v1087_v17 = vadd.f32 %v1051_v25, %v4917_v15  ;;  %v1065_v51 = vmul.f32 %v4712_v57, %v6366_v30  ;;  %v6367_v27 = vld [vmem:[#allocation134_spill] sm:$0xff]  ;;  %v1390_v23 = vadd.f32 %v1354_v12, %v1098_v5  ;;  %v6368_v2 = vld [vmem:[#allocation161_spill] sm:$0xff]  ;;  %v6373_v5 = vld [vmem:[#allocation67_spill] sm:$0xff] }
 0x2d1   : > { %v2227_v32 = vmul.f32 %v4862_v34, %v2105_v14  ;;  %v2217_v0 = vmul.f32 %v4862_v34, %v2055_v45  ;;  %v2050_v59 = vpop.permute.xlu0 %2049  ;;  %v1635_v26 = vmul.f32 %v4766_v58, %v6367_v27  ;;  %v1380_v21 = vadd.f32 %v1344_v22, %v1088_v54  ;;  %v6369_v45 = vld [vmem:[#allocation162_spill] sm:$0xff]  ;;  %v6375_v33 = vld [vmem:[#allocation101_spill] sm:$0xff] }
 0x2d2   : > { %v2216_v53 = vmul.f32 %v4862_v34, %v2050_v59  ;;  %v1938_v14 = vmul.f32 %v4811_v19, %v6368_v2  ;;  %v1379_v25 = vadd.f32 %v1343_v52, %v1087_v17  ;;  %v6372_v59 = vld [vmem:[#allocation43_spill] sm:$0xff]  ;;  %v1054_v12 = vmul.f32 %v4712_v57, %v6373_v5 }
 0x2d3   : > { %v5111_v47 = vadd.f32 %v2227_v32, %v1971_v7  ;;  %v5113_v44 = vadd.f32 %v2217_v0, %v1961_v46  ;;  %v1928_v7 = vmul.f32 %v4811_v19, %v6369_v45  ;;  %v6370_v46 = vld [vmem:[#allocation66_spill] sm:$0xff]  ;;  %v6371_v32 = vld [vmem:[#allocation163_spill] sm:$0xff]  ;;  %v5135_v10 = vmul.f32 %v4690_v49, %v6372_v59 }
 0x2d4   : > { %v5122_v24 = vadd.f32 %v2216_v53, %v1960_v36  ;;  %v1055_v15 = vmul.f32 %v4712_v57, %v6370_v46  ;;  %v1927_v0 = vmul.f32 %v4811_v19, %v6371_v32  ;;  %v1682_v22 = vadd.f32 %v1646_v8, %v1390_v23  ;;  %v6374_v53 = vld [vmem:[#allocation100_spill] sm:$0xff]  ;;  %v2302_v32 = vld [vmem:[%s3788_s29 + $0xad] sm:$0xff]  ;;  %v2301_v59 = vld [vmem:[%s3788_s29 + $0xa5] sm:$0xff] }
 0x2d5   : > { %v1672_v54 = vadd.f32 %v1636_v40, %v1380_v21  ;;  %v1101_v36 = vadd.f32 %v1065_v51, %v4920_v18  ;;  %v1357_v52 = vmul.f32 %v4746_v9, %v6374_v53  ;;  %v1347_v55 = vmul.f32 %v4746_v9, %v6375_v33  ;;  %v6376_v51 = vld [vmem:[#allocation102_spill] sm:$0xff]  ;;  %v6377_v21 = vld [vmem:[#allocation135_spill] sm:$0xff]  ;;  %v6378_v46 = vld [vmem:[#allocation136_spill] sm:$0xff] }
 0x2d6   : > { %2396 = vperm.xlu2 %3668, %v2299_v56   ;;  %2391 = vperm.xlu1 %3667, %v2298_v48   ;;  %v1671_v56 = vadd.f32 %v1635_v26, %v1379_v25  ;;  %v1974_v30 = vadd.f32 %v1938_v14, %v1682_v22  ;;  %v1091_v18 = vadd.f32 %v1055_v15, %v4928_v50  ;;  %v6379_v15 = vld [vmem:[#allocation68_spill] sm:$0xff] }
 0x2d7   : > { %2386 = vperm.xlu0 %3666, %v2297_v20   ;;  %v1964_v27 = vadd.f32 %v1928_v7, %v1672_v54  ;;  %v1346_v20 = vmul.f32 %v4746_v9, %v6376_v51  ;;  %v1649_v45 = vmul.f32 %v4766_v58, %v6377_v21  ;;  %v1639_v14 = vmul.f32 %v4766_v58, %v6378_v46  ;;  %v2300_v53 = vld [vmem:[%s3788_s29 + $0x9d] sm:$0xff]  ;;  %v6387_v21 = vld [vmem:[#allocation103_spill] sm:$0xff] }
 0x2d8   : > { %v2120_v48 = vpop.permute.xlu2 %2119  ;;  %v2070_v17 = vpop.permute.xlu1 %2069  ;;  %v1963_v23 = vadd.f32 %v1927_v0, %v1671_v56  ;;  %v1090_v50 = vadd.f32 %v1054_v12, %v4931_v16  ;;  %v1068_v5 = vmul.f32 %v4712_v57, %v6379_v15  ;;  %v6380_v0 = vld [vmem:[#allocation137_spill] sm:$0xff]  ;;  %v1393_v33 = vadd.f32 %v1357_v52, %v1101_v36  ;;  %v6385_v51 = vld [vmem:[#allocation44_spill] sm:$0xff]  ;;  %v6386_v36 = vld [vmem:[#allocation70_spill] sm:$0xff] }
 0x2d9   : > { %v2230_v2 = vmul.f32 %v4862_v34, %v2120_v48  ;;  %v2220_v8 = vmul.f32 %v4862_v34, %v2070_v17  ;;  %v2065_v40 = vpop.permute.xlu0 %2064  ;;  %v1638_v22 = vmul.f32 %v4766_v58, %v6380_v0  ;;  %v1383_v56 = vadd.f32 %v1347_v55, %v1091_v18  ;;  %v6381_v48 = vld [vmem:[#allocation164_spill] sm:$0xff] }
 0x2da   : > { %v2219_v26 = vmul.f32 %v4862_v34, %v2065_v40  ;;  %v1941_v17 = vmul.f32 %v4811_v19, %v6381_v48  ;;  %v1382_v12 = vadd.f32 %v1346_v20, %v1090_v50  ;;  %v1057_v52 = vmul.f32 %v4712_v57, %v6386_v36  ;;  %v6388_v46 = vld [vmem:[#allocation104_spill] sm:$0xff] }
 0x2db   : > { %v5154_v7 = vadd.f32 %v2230_v2, %v1974_v30  ;;  %v5156_v25 = vadd.f32 %v2220_v8, %v1964_v27  ;;  %v6382_v30 = vld [vmem:[#allocation165_spill] sm:$0xff]  ;;  %v6384_v8 = vld [vmem:[#allocation166_spill] sm:$0xff]  ;;  %v1685_v55 = vadd.f32 %v1649_v45, %v1393_v33  ;;  %v1675_v18 = vadd.f32 %v1639_v14, %v1383_v56 }
 0x2dc   : > { %v5165_v54 = vadd.f32 %v2219_v26, %v1963_v23  ;;  %v1931_v27 = vmul.f32 %v4811_v19, %v6382_v30  ;;  %v6383_v2 = vld [vmem:[#allocation69_spill] sm:$0xff]  ;;  %v1930_v40 = vmul.f32 %v4811_v19, %v6384_v8  ;;  %v5178_v23 = vmul.f32 %v4690_v49, %v6385_v51  ;;  %v6390_v56 = vld [vmem:[#allocation138_spill] sm:$0xff] }
 0x2dd   : > { %v1058_v16 = vmul.f32 %v4712_v57, %v6383_v2  ;;  %v1104_v26 = vadd.f32 %v1068_v5, %v4936_v61  ;;  %v1360_v20 = vmul.f32 %v4746_v9, %v6387_v21  ;;  %v1350_v50 = vmul.f32 %v4746_v9, %v6388_v46  ;;  %v6389_v5 = vld [vmem:[#allocation105_spill] sm:$0xff]  ;;  %v2303_v46 = vld [vmem:[%s3788_s29 + $0xb5] sm:$0xff] }
 0x2de   : > { %2411 = vperm.xlu2 %3668, %v2302_v32   ;;  %2406 = vperm.xlu1 %3667, %v2301_v59   ;;  %v1674_v32 = vadd.f32 %v1638_v22, %v1382_v12  ;;  %v1977_v0 = vadd.f32 %v1941_v17, %v1685_v55  ;;  %v1967_v48 = vadd.f32 %v1931_v27, %v1675_v18  ;;  %v6391_v12 = vld [vmem:[#allocation139_spill] sm:$0xff]  ;;  %v2305_v51 = vld [vmem:[%s3788_s29 + $0xc5] sm:$0xff]  ;;  %v2304_v36 = vld [vmem:[%s3788_s29 + $0xbd] sm:$0xff] }
 0x2df   : > { %2401 = vperm.xlu0 %3666, %v2300_v53   ;;  %v1094_v61 = vadd.f32 %v1058_v16, %v4939_v60  ;;  %v1349_v53 = vmul.f32 %v4746_v9, %v6389_v5  ;;  %v1652_v2 = vmul.f32 %v4766_v58, %v6390_v56  ;;  %v1642_v17 = vmul.f32 %v4766_v58, %v6391_v12  ;;  %v6392_v16 = vld [vmem:[#allocation71_spill] sm:$0xff]  ;;  %v6400_v12 = vld [vmem:[#allocation106_spill] sm:$0xff] }
 0x2e0   : > { %v2135_v59 = vpop.permute.xlu2 %2134  ;;  %v2085_v15 = vpop.permute.xlu1 %2084  ;;  %v1966_v33 = vadd.f32 %v1930_v40, %v1674_v32  ;;  %v1093_v60 = vadd.f32 %v1057_v52, %v4944_v62  ;;  %v1071_v55 = vmul.f32 %v4712_v57, %v6392_v16  ;;  %v6393_v40 = vld [vmem:[#allocation140_spill] sm:$0xff]  ;;  %v1396_v32 = vadd.f32 %v1360_v20, %v1104_v26  ;;  %v6399_v26 = vld [vmem:[#allocation73_spill] sm:$0xff] }
 0x2e1   : > { %v2233_v30 = vmul.f32 %v4862_v34, %v2135_v59  ;;  %v2223_v45 = vmul.f32 %v4862_v34, %v2085_v15  ;;  %v2080_v14 = vpop.permute.xlu0 %2079  ;;  %v1641_v18 = vmul.f32 %v4766_v58, %v6393_v40  ;;  %v1386_v59 = vadd.f32 %v1350_v50, %v1094_v61  ;;  %v6394_v15 = vld [vmem:[#allocation167_spill] sm:$0xff] }
 0x2e2   : > { %v2222_v22 = vmul.f32 %v4862_v34, %v2080_v14  ;;  %v1385_v52 = vadd.f32 %v1349_v53, %v1093_v60  ;;  %v6397_v14 = vld [vmem:[#allocation169_spill] sm:$0xff]  ;;  %v1060_v20 = vmul.f32 %v4712_v57, %v6399_v26  ;;  %v1688_v50 = vadd.f32 %v1652_v2, %v1396_v32  ;;  %v6401_v60 = vld [vmem:[#allocation107_spill] sm:$0xff] }
 0x2e3   : > { %v5197_v27 = vadd.f32 %v2233_v30, %v1977_v0  ;;  %v5199_v8 = vadd.f32 %v2223_v45, %v1967_v48  ;;  %v1944_v0 = vmul.f32 %v4811_v19, %v6394_v15  ;;  %v6395_v48 = vld [vmem:[#allocation168_spill] sm:$0xff]  ;;  %v1933_v5 = vmul.f32 %v4811_v19, %v6397_v14 }
 0x2e4   : > { %v5208_v21 = vadd.f32 %v2222_v22, %v1966_v33  ;;  %v1934_v30 = vmul.f32 %v4811_v19, %v6395_v48  ;;  %v6396_v45 = vld [vmem:[#allocation72_spill] sm:$0xff]  ;;  %v6398_v33 = vld [vmem:[#allocation5_spill] sm:$0xff]  ;;  %v1678_v61 = vadd.f32 %v1642_v17, %v1386_v59  ;;  %v1107_v56 = vadd.f32 %v1071_v55, %v4947_v63 }
 0x2e5   : > { %v1061_v62 = vmul.f32 %v4712_v57, %v6396_v45  ;;  %v5221_v22 = vadd.f32 %v5092_v6, %v6398_v33  ;;  %v1363_v53 = vmul.f32 %v4746_v9, %v6400_v12  ;;  %v1353_v16 = vmul.f32 %v4746_v9, %v6401_v60  ;;  %v6402_v55 = vld [vmem:[#allocation108_spill] sm:$0xff]  ;;  %v6403_v59 = vld [vmem:[#allocation141_spill] sm:$0xff]  ;;  %v2306_v60 = vld [vmem:[%s3788_s29 + $0xcd] sm:$0xff] }
 0x2e6   : > { %2426 = vperm.xlu2 %3668, %v2305_v51   ;;  %2421 = vperm.xlu1 %3667, %v2304_v36   ;;  %v1677_v51 = vadd.f32 %v1641_v18, %v1385_v52  ;;  %v1980_v40 = vadd.f32 %v1944_v0, %v1688_v50  ;;  %v1970_v15 = vadd.f32 %v1934_v30, %v1678_v61  ;;  %v6404_v52 = vld [vmem:[#allocation142_spill] sm:$0xff]  ;;  %v2308_v33 = vld [vmem:[%s3788_s29 + $0xdd] sm:$0xff]  ;;  %v2307_v26 = vld [vmem:[%s3788_s29 + $0xd5] sm:$0xff] }
 0x2e7   : > { %2416 = vperm.xlu0 %3666, %v2303_v46   ;;  %v1097_v63 = vadd.f32 %v1061_v62, %v4952_v29  ;;  %v1352_v46 = vmul.f32 %v4746_v9, %v6402_v55  ;;  %v1655_v45 = vmul.f32 %v4766_v58, %v6403_v59  ;;  %v1645_v0 = vmul.f32 %v4766_v58, %v6404_v52  ;;  %v6405_v62 = vld [vmem:[#allocation74_spill] sm:$0xff]  ;;  %v6413_v52 = vld [vmem:[#allocation109_spill] sm:$0xff] }
 0x2e8   : > { %v2150_v36 = vpop.permute.xlu2 %2149  ;;  %v2100_v6 = vpop.permute.xlu1 %2099  ;;  %v1969_v32 = vadd.f32 %v1933_v5, %v1677_v51  ;;  %v1096_v29 = vadd.f32 %v1060_v20, %v4955_v4  ;;  %v1074_v50 = vmul.f32 %v4712_v57, %v6405_v62  ;;  %v6406_v5 = vld [vmem:[#allocation143_spill] sm:$0xff]  ;;  %v1399_v51 = vadd.f32 %v1363_v53, %v1107_v56  ;;  %v6412_v56 = vld [vmem:[#allocation76_spill] sm:$0xff] }
 0x2e9   : > { %v2236_v48 = vmul.f32 %v4862_v34, %v2150_v36  ;;  %v2226_v2 = vmul.f32 %v4862_v34, %v2100_v6  ;;  %v2095_v17 = vpop.permute.xlu0 %2094  ;;  %v1644_v61 = vmul.f32 %v4766_v58, %v6406_v5  ;;  %v1389_v36 = vadd.f32 %v1353_v16, %v1097_v63  ;;  %v6407_v6 = vld [vmem:[#allocation170_spill] sm:$0xff] }
 0x2ea   : > { %v2225_v18 = vmul.f32 %v4862_v34, %v2095_v17  ;;  %v1388_v20 = vadd.f32 %v1352_v46, %v1096_v29  ;;  %v6410_v17 = vld [vmem:[#allocation172_spill] sm:$0xff]  ;;  %v1063_v53 = vmul.f32 %v4712_v57, %v6412_v56  ;;  %v1691_v16 = vadd.f32 %v1655_v45, %v1399_v51  ;;  %v6414_v46 = vld [vmem:[#allocation110_spill] sm:$0xff] }
 0x2eb   : > { %v5240_v30 = vadd.f32 %v2236_v48, %v1980_v40  ;;  %v5242_v14 = vadd.f32 %v2226_v2, %v1970_v15  ;;  %v1947_v40 = vmul.f32 %v4811_v19, %v6407_v6  ;;  %v6408_v15 = vld [vmem:[#allocation171_spill] sm:$0xff]  ;;  %v1936_v55 = vmul.f32 %v4811_v19, %v6410_v17 }
 0x2ec   : > { %v5251_v12 = vadd.f32 %v2225_v18, %v1969_v32  ;;  %v1937_v48 = vmul.f32 %v4811_v19, %v6408_v15  ;;  %v6409_v2 = vld [vmem:[#allocation75_spill] sm:$0xff]  ;;  %v6411_v32 = vld [vmem:[#allocation6_spill] sm:$0xff]  ;;  %v1681_v63 = vadd.f32 %v1645_v0, %v1389_v36  ;;  %v1110_v59 = vadd.f32 %v1074_v50, %v4989_v43  ;;  %v6416_v36 = vld [vmem:[#allocation144_spill] sm:$0xff] }
 0x2ed   : > { %v1064_v4 = vmul.f32 %v4712_v57, %v6409_v2  ;;  %v811_v18 = vadd.f32 %v5135_v10, %v6411_v32  ;;  %v1366_v62 = vmul.f32 %v4746_v9, %v6413_v52  ;;  %v1356_v29 = vmul.f32 %v4746_v9, %v6414_v46  ;;  %v6415_v50 = vld [vmem:[#allocation111_spill] sm:$0xff]  ;;  %v2309_v46 = vld [vmem:[%s3788_s29 + $0xe5] sm:$0xff] }
 0x2ee   : > { %2441 = vperm.xlu2 %3668, %v2308_v33   ;;  %2436 = vperm.xlu1 %3667, %v2307_v26   ;;  %v1680_v5 = vadd.f32 %v1644_v61, %v1388_v20  ;;  %v1983_v10 = vadd.f32 %v1947_v40, %v1691_v16  ;;  %v1973_v6 = vadd.f32 %v1937_v48, %v1681_v63  ;;  %v6417_v20 = vld [vmem:[#allocation145_spill] sm:$0xff]  ;;  %v2311_v32 = vld [vmem:[%s3788_s29 + $0xf5] sm:$0xff]  ;;  %v2310_v56 = vld [vmem:[%s3788_s29 + $0xed] sm:$0xff] }
 0x2ef   : > { %2431 = vperm.xlu0 %3666, %v2306_v60   ;;  %v1100_v43 = vadd.f32 %v1064_v4, %v5006_v35  ;;  %v1355_v60 = vmul.f32 %v4746_v9, %v6415_v50  ;;  %v1658_v2 = vmul.f32 %v4766_v58, %v6416_v36  ;;  %v1648_v40 = vmul.f32 %v4766_v58, %v6417_v20  ;;  %v6418_v4 = vld [vmem:[#allocation77_spill] sm:$0xff]  ;;  %v6426_v20 = vld [vmem:[#allocation112_spill] sm:$0xff] }
 0x2f0   : > { %v2165_v33 = vpop.permute.xlu2 %2164  ;;  %v2115_v26 = vpop.permute.xlu1 %2114  ;;  %v1972_v51 = vadd.f32 %v1936_v55, %v1680_v5  ;;  %v1099_v35 = vadd.f32 %v1063_v53, %v5049_v41  ;;  %v1077_v16 = vmul.f32 %v4712_v57, %v6418_v4  ;;  %v6419_v55 = vld [vmem:[#allocation146_spill] sm:$0xff]  ;;  %v1402_v5 = vadd.f32 %v1366_v62, %v1110_v59  ;;  %v6425_v59 = vld [vmem:[#allocation79_spill] sm:$0xff] }
 0x2f1   : > { %v2239_v15 = vmul.f32 %v4862_v34, %v2165_v33  ;;  %v2229_v45 = vmul.f32 %v4862_v34, %v2115_v26  ;;  %v2110_v0 = vpop.permute.xlu0 %2109  ;;  %v1647_v63 = vmul.f32 %v4766_v58, %v6419_v55  ;;  %v1392_v33 = vadd.f32 %v1356_v29, %v1100_v43  ;;  %v6420_v26 = vld [vmem:[#allocation173_spill] sm:$0xff] }
 0x2f2   : > { %v2228_v61 = vmul.f32 %v4862_v34, %v2110_v0  ;;  %v1391_v53 = vadd.f32 %v1355_v60, %v1099_v35  ;;  %v6423_v0 = vld [vmem:[#allocation175_spill] sm:$0xff]  ;;  %v1066_v62 = vmul.f32 %v4712_v57, %v6425_v59  ;;  %v1694_v29 = vadd.f32 %v1658_v2, %v1402_v5  ;;  %v6427_v60 = vld [vmem:[#allocation113_spill] sm:$0xff] }
 0x2f3   : > { %v5281_v48 = vadd.f32 %v2239_v15, %v1983_v10  ;;  %v5283_v17 = vadd.f32 %v2229_v45, %v1973_v6  ;;  %v1950_v10 = vmul.f32 %v4811_v19, %v6420_v26  ;;  %v6421_v6 = vld [vmem:[#allocation174_spill] sm:$0xff]  ;;  %v1939_v50 = vmul.f32 %v4811_v19, %v6423_v0 }
 0x2f4   : > { %v5292_v52 = vadd.f32 %v2228_v61, %v1972_v51  ;;  %v1940_v15 = vmul.f32 %v4811_v19, %v6421_v6  ;;  %v6422_v45 = vld [vmem:[#allocation78_spill] sm:$0xff]  ;;  %v6424_v51 = vld [vmem:[#allocation15_spill] sm:$0xff]  ;;  %v1684_v43 = vadd.f32 %v1648_v40, %v1392_v33  ;;  %v1113_v36 = vadd.f32 %v1077_v16, %v5221_v22 }
 0x2f5   : > { %v1067_v41 = vmul.f32 %v4712_v57, %v6422_v45  ;;  %v810_v61 = vadd.f32 %v5178_v23, %v6424_v51  ;;  %v1369_v4 = vmul.f32 %v4746_v9, %v6426_v20  ;;  %v1359_v35 = vmul.f32 %v4746_v9, %v6427_v60  ;;  %v6428_v16 = vld [vmem:[#allocation114_spill] sm:$0xff]  ;;  %v2312_v60 = vld [vmem:[%s3788_s29 + $0xfd] sm:$0xff] }
 0x2f6   : > { %2456 = vperm.xlu2 %3668, %v2311_v32   ;;  %2451 = vperm.xlu1 %3667, %v2310_v56   ;;  %v1683_v55 = vadd.f32 %v1647_v63, %v1391_v53  ;;  %v1986_v23 = vadd.f32 %v1950_v10, %v1694_v29  ;;  %v1976_v26 = vadd.f32 %v1940_v15, %v1684_v43  ;;  %v6429_v63 = vld [vmem:[#allocation147_spill] sm:$0xff]  ;;  %v6430_v53 = vld [vmem:[#allocation148_spill] sm:$0xff]  ;;  %v2313_v59 = vld [vmem:[%s3788_s29 + $0x105] sm:$0xff] }
 0x2f7   : > { %2446 = vperm.xlu0 %3666, %v2309_v46   ;;  %v1103_v22 = vadd.f32 %v1067_v41, %v811_v18  ;;  %v1358_v46 = vmul.f32 %v4746_v9, %v6428_v16  ;;  %v1661_v45 = vmul.f32 %v4766_v58, %v6429_v63  ;;  %v1651_v10 = vmul.f32 %v4766_v58, %v6430_v53  ;;  %v2314_v51 = vld [vmem:[%s3788_s29 + $0x10d] sm:$0xff]  ;;  %v6431_v29 = vld [vmem:[#allocation45_spill] sm:$0xff] }
 0x2f8   : > { %v2180_v32 = vpop.permute.xlu2 %2179  ;;  %v2130_v56 = vpop.permute.xlu1 %2129  ;;  %v1975_v5 = vadd.f32 %v1939_v50, %v1683_v55  ;;  %v778_v18 = vmul.f32 %v4690_v49, %v6431_v29  ;;  %v1102_v41 = vadd.f32 %v1066_v62, %v810_v61  ;;  %v6432_v43 = vld [vmem:[#allocation149_spill] sm:$0xff]  ;;  %v1405_v55 = vadd.f32 %v1369_v4, %v1113_v36  ;;  %v6436_v63 = vld [vmem:[#allocation178_spill] sm:$0xff]  ;;  %v6437_v62 = vld [vmem:[#allocation12_spill] sm:$0xff] }
 0x2f9   : > { %v2242_v6 = vmul.f32 %v4862_v34, %v2180_v32  ;;  %v2232_v2 = vmul.f32 %v4862_v34, %v2130_v56  ;;  %v2125_v40 = vpop.permute.xlu0 %2124  ;;  %v1650_v50 = vmul.f32 %v4766_v58, %v6432_v43  ;;  %v1395_v32 = vadd.f32 %v1359_v35, %v1103_v22  ;;  %v6433_v56 = vld [vmem:[#allocation176_spill] sm:$0xff]  ;;  %v6440_v29 = vld [vmem:[#allocation81_spill] sm:$0xff] }
 0x2fa   : > { %v2231_v33 = vmul.f32 %v4862_v34, %v2125_v40  ;;  %v1394_v16 = vadd.f32 %v1358_v46, %v1102_v41  ;;  %v1942_v61 = vmul.f32 %v4811_v19, %v6436_v63  ;;  %v6438_v36 = vld [vmem:[#allocation80_spill] sm:$0xff]  ;;  %v1697_v35 = vadd.f32 %v1661_v45, %v1405_v55  ;;  %v6441_v46 = vld [vmem:[#allocation115_spill] sm:$0xff] }
 0x2fb   : > { %v5321_v15 = vadd.f32 %v2242_v6, %v1986_v23  ;;  %v5323_v0 = vadd.f32 %v2232_v2, %v1976_v26  ;;  %v1953_v23 = vmul.f32 %v4811_v19, %v6433_v56  ;;  %v6434_v6 = vld [vmem:[#allocation177_spill] sm:$0xff]  ;;  %v6435_v2 = vld [vmem:[#allocation46_spill] sm:$0xff]  ;;  %v1070_v4 = vmul.f32 %v4712_v57, %v6438_v36 }
 0x2fc   : > { %v5331_v20 = vadd.f32 %v2231_v33, %v1975_v5  ;;  %v1943_v26 = vmul.f32 %v4811_v19, %v6434_v6  ;;  %v777_v40 = vmul.f32 %v4690_v49, %v6435_v2  ;;  %v485_v5 = vmul.f32 %v4644_v28, %v6437_v62  ;;  %v6439_v33 = vld [vmem:[#allocation7_spill] sm:$0xff] }
 0x2fd   : > { %v1687_v22 = vadd.f32 %v1651_v10, %v1395_v32  ;;  %v814_v53 = vadd.f32 %v778_v18, %v6439_v33  ;;  %v1069_v43 = vmul.f32 %v4712_v57, %v6440_v29  ;;  %v1362_v41 = vmul.f32 %v4746_v9, %v6441_v46 }
 0x2fe   : > { %2471 = vperm.xlu2 %3668, %v2314_v51   ;;  %2466 = vperm.xlu1 %3667, %v2313_v59   ;;  %v1686_v56 = vadd.f32 %v1650_v50, %v1394_v16  ;;  %v1989_v6 = vadd.f32 %v1953_v23, %v1697_v35  ;;  %v813_v18 = vadd.f32 %v777_v40, %v485_v5  ;;  %v6443_v16 = vld [vmem:[#allocation152_spill] sm:$0xff]  ;;  %v6445_v5 = vld [vmem:[#allocation153_spill] sm:$0xff] }
 0x2ff   : > { %2461 = vperm.xlu0 %3666, %v2312_v60   ;;  %v1979_v2 = vadd.f32 %v1943_v26, %v1687_v22  ;;  %v6442_v60 = vld [vmem:[#allocation116_spill] sm:$0xff]  ;;  %v1106_v50 = vadd.f32 %v1070_v4, %v814_v53  ;;  %v1654_v36 = vmul.f32 %v4766_v58, %v6443_v16  ;;  %v2317_v26 = vld [vmem:[%s3788_s29 + $0x125] sm:$0xff]  ;;  %v1653_v46 = vmul.f32 %v4766_v58, %v6445_v5 }
 0x300   : > { %v2195_v51 = vpop.permute.xlu2 %2194  ;;  %v2145_v59 = vpop.permute.xlu1 %2144  ;;  %v1361_v55 = vmul.f32 %v4746_v9, %v6442_v60  ;;  %v1978_v32 = vadd.f32 %v1942_v61, %v1686_v56  ;;  %v2316_v35 = vld [vmem:[%s3788_s29 + $0x11d] sm:$0xff]  ;;  %v1105_v40 = vadd.f32 %v1069_v43, %v813_v18  ;;  %v2315_v56 = vld [vmem:[%s3788_s29 + $0x115] sm:$0xff]  ;;  %v3615_v18 = vld [vmem:[%s6097_s2 + $0x7] sm:$0x1] }
 0x301   : > { %v2245_v63 = vmul.f32 %v4862_v34, %v2195_v51  ;;  %v2235_v45 = vmul.f32 %v4862_v34, %v2145_v59  ;;  %v2140_v10 = vpop.permute.xlu0 %2139  ;;  %v6444_v22 = vld [vmem:[#allocation48_spill] sm:$0xff]  ;;  %v6447_v4 = vld [vmem:[#allocation13_spill] sm:$0xff]  ;;  %v1398_v51 = vadd.f32 %v1362_v41, %v1106_v50  ;;  %v6451_v60 = vld [vmem:[#allocation14_spill] sm:$0xff] }
 0x302   : > { %v2234_v62 = vmul.f32 %v4862_v34, %v2140_v10  ;;  %v781_v29 = vmul.f32 %v4690_v49, %v6444_v22  ;;  %v489_v53 = vmul.f32 %v4644_v28, %v6447_v4  ;;  %v6448_v59 = vld [vmem:[#allocation8_spill] sm:$0xff]  ;;  %v6450_v10 = vld [vmem:[#allocation151_spill] sm:$0xff] }
 0x303   : > { %v5358_v33 = vadd.f32 %v2245_v63, %v1989_v6  ;;  %v5360_v23 = vadd.f32 %v2235_v45, %v1979_v2  ;;  %v1946_v6 = vmul.f32 %v4811_v19, %v6448_v59  ;;  %v6449_v2 = vld [vmem:[#allocation49_spill] sm:$0xff]  ;;  %v1397_v45 = vadd.f32 %v1361_v55, %v1105_v40  ;;  %v6452_v41 = vld [vmem:[#allocation83_spill] sm:$0xff]  ;;  %v6453_v22 = vld [vmem:[#allocation84_spill] sm:$0xff] }
 0x304   : > { %v5368_v61 = vadd.f32 %v2234_v62, %v1978_v32  ;;  %v780_v63 = vmul.f32 %v4690_v49, %v6449_v2  ;;  %v1945_v43 = vmul.f32 %v4811_v19, %v6450_v10  ;;  %v488_v32 = vmul.f32 %v4644_v28, %v6451_v60  ;;  %v6454_v40 = vld [vmem:[#allocation118_spill] sm:$0xff] }
 0x305   : > { %v1073_v62 = vmul.f32 %v4712_v57, %v6452_v41  ;;  %v1690_v50 = vadd.f32 %v1654_v36, %v1398_v51  ;;  %v817_v16 = vadd.f32 %v781_v29, %v489_v53  ;;  %v1072_v55 = vmul.f32 %v4712_v57, %v6453_v22 }
 0x306   : > { %6446 = vst [vmem:[#allocation150_spill] sm:$0xff] %v5368_v61  ;;  %2486 = vperm.xlu2 %3668, %v2317_v26   ;;  %2481 = vperm.xlu1 %3667, %v2316_v35   ;;  %v1365_v26 = vmul.f32 %v4746_v9, %v6454_v40  ;;  %v1689_v35 = vadd.f32 %v1653_v46, %v1397_v45  ;;  %v2323_v36 = vunpack.c.l.bf16 %v3615_v18  ;;  %v6456_v45 = vld [vmem:[#allocation155_spill] sm:$0xff]  ;;  %v6457_v40 = vld [vmem:[#allocation9_spill] sm:$0xff] }
 0x307   : > { %2476 = vperm.xlu0 %3666, %v2315_v56   ;;  %v1982_v59 = vadd.f32 %v1946_v6, %v1690_v50  ;;  %v816_v29 = vadd.f32 %v780_v63, %v488_v32  ;;  %v6455_v56 = vld [vmem:[#allocation119_spill] sm:$0xff]  ;;  %v1109_v46 = vadd.f32 %v1073_v62, %v817_v16  ;;  %v1657_v22 = vmul.f32 %v4766_v58, %v6456_v45  ;;  %v6459_v32 = vld [vmem:[#allocation156_spill] sm:$0xff] }
 0x308   : > { %v2210_v5 = vpop.permute.xlu2 %2209  ;;  %v2160_v4 = vpop.permute.xlu1 %2159  ;;  %v1364_v53 = vmul.f32 %v4746_v9, %v6455_v56  ;;  %v1981_v51 = vadd.f32 %v1945_v43, %v1689_v35  ;;  %v6458_v61 = vld [vmem:[#allocation51_spill] sm:$0xff]  ;;  %v1656_v43 = vmul.f32 %v4766_v58, %v6459_v32  ;;  %v6461_v16 = vld [vmem:[#allocation16_spill] sm:$0xff] }
 0x309   : > { %v2248_v2 = vmul.f32 %v4862_v34, %v2210_v5  ;;  %v2238_v10 = vmul.f32 %v4862_v34, %v2160_v4  ;;  %v2155_v60 = vpop.permute.xlu0 %2154  ;;  %v2320_v5 = vld [vmem:[%s3788_s29 + $0x13d] sm:$0xff]  ;;  %v2319_v4 = vld [vmem:[%s3788_s29 + $0x135] sm:$0xff]  ;;  %v784_v63 = vmul.f32 %v4690_v49, %v6458_v61  ;;  %v1108_v18 = vadd.f32 %v1072_v55, %v816_v29  ;;  %v2318_v62 = vld [vmem:[%s3788_s29 + $0x12d] sm:$0xff] }
 0x30a   : > { %v2237_v41 = vmul.f32 %v4862_v34, %v2155_v60  ;;  %v492_v60 = vmul.f32 %v4644_v28, %v6461_v16  ;;  %v1401_v56 = vadd.f32 %v1365_v26, %v1109_v46  ;;  %v6463_v45 = vld [vmem:[#allocation52_spill] sm:$0xff]  ;;  %v6464_v55 = vld [vmem:[#allocation11_spill] sm:$0xff]  ;;  %v6466_v26 = vld [vmem:[#allocation17_spill] sm:$0xff] }
 0x30b   : > { %v5398_v6 = vadd.f32 %v2248_v2, %v6457_v40  ;;  %v5400_v50 = vadd.f32 %v2238_v10, %v1982_v59  ;;  %v6462_v2 = vld [vmem:[#allocation10_spill] sm:$0xff]  ;;  %v5415_v10 = vperm.slane %v2323_v36, 0  ;;  %v783_v40 = vmul.f32 %v4690_v49, %v6463_v45  ;;  %v6467_v36 = vld [vmem:[#allocation87_spill] sm:$0xff] }
 0x30c   : > { %v5408_v35 = vadd.f32 %v2237_v41, %v1981_v51  ;;  %v1949_v59 = vmul.f32 %v4811_v19, %v6462_v2  ;;  %v1400_v61 = vadd.f32 %v1364_v53, %v1108_v18  ;;  %v1948_v29 = vmul.f32 %v4811_v19, %v6464_v55  ;;  %v6465_v51 = vld [vmem:[#allocation86_spill] sm:$0xff]  ;;  %v6468_v18 = vld [vmem:[#allocation121_spill] sm:$0xff] }
 0x30d   : > { %v1076_v41 = vmul.f32 %v4712_v57, %v6465_v51  ;;  %v1693_v32 = vadd.f32 %v1657_v22, %v1401_v56  ;;  %v491_v46 = vmul.f32 %v4644_v28, %v6466_v26  ;;  %v820_v16 = vadd.f32 %v784_v63, %v492_v60  ;;  %v6469_v63 = vld [vmem:[#allocation122_spill] sm:$0xff] }
 0x30e   : > { %6460 = vst [vmem:[#allocation18_spill] sm:$0xff] %v5408_v35  ;;  %2501 = vperm.xlu2 %3668, %v2320_v5   ;;  %2496 = vperm.xlu1 %3667, %v2319_v4   ;;  %v1075_v2 = vmul.f32 %v4712_v57, %v6467_v36  ;;  %v1692_v35 = vadd.f32 %v1656_v43, %v1400_v61  ;;  %v6470_v61 = vld [vmem:[#allocation157_spill] sm:$0xff]  ;;  %v2578_v26 = vld [vmem:[%s3788_s29 + $0x2e] sm:$0xff] }
 0x30f   : > { %2491 = vperm.xlu0 %3666, %v2318_v62   ;;  %v1368_v5 = vmul.f32 %v4746_v9, %v6468_v18  ;;  %v1985_v4 = vadd.f32 %v1949_v59, %v1693_v32  ;;  %v819_v28 = vadd.f32 %v783_v40, %v491_v46  ;;  %v1367_v60 = vmul.f32 %v4746_v9, %v6469_v63  ;;  %v2579_v32 = vld [vmem:[%s3788_s29 + $0x36] sm:$0xff]  ;;  %v2577_v9 = vld [vmem:[%s3788_s29 + $0x26] sm:$0xff]  ;;  %v2582_v63 = vld [vmem:[%s3788_s29 + $0x4e] sm:$0xff] }
 0x310   : > { %v2337_v49 = vpop.permute.xlu2 %2336  ;;  %v2175_v53 = vpop.permute.xlu1 %2174  ;;  %v1984_v57 = vadd.f32 %v1948_v29, %v1692_v35  ;;  %v1112_v56 = vadd.f32 %v1076_v41, %v820_v16  ;;  %v1660_v55 = vmul.f32 %v4766_v58, %v6470_v61  ;;  %v1952_v29 = vmul.f32 %v4811_v19, %v4961_v39  ;;  %v6472_v16 = vld [vmem:[#allocation47_spill] sm:$0xff] }
 0x311   : > { %v2507_v45 = vmul.f32 %v5415_v10, %v2337_v49  ;;  %v2241_v22 = vmul.f32 %v4862_v34, %v2175_v53  ;;  %v2170_v62 = vpop.permute.xlu0 %2169  ;;  %v1111_v36 = vadd.f32 %v1075_v2, %v819_v28  ;;  %v6471_v49 = vld [vmem:[#allocation158_spill] sm:$0xff] }
 0x312   : > { %v2240_v43 = vmul.f32 %v4862_v34, %v2170_v62  ;;  %v1659_v40 = vmul.f32 %v4766_v58, %v6471_v49  ;;  %v1404_v35 = vadd.f32 %v1368_v5, %v1112_v56 }
 0x313   : > { %v5437_v51 = vadd.f32 %v2507_v45, %v4912_v42  ;;  %v5439_v59 = vadd.f32 %v2241_v22, %v1985_v4  ;;  %v1403_v41 = vadd.f32 %v1367_v60, %v1111_v36  ;;  %v1951_v42 = vmul.f32 %v4811_v19, %v6472_v16  ;;  %v2581_v60 = vld [vmem:[%s3788_s29 + $0x46] sm:$0xff] }
 0x314   : > { %v5445_v46 = vadd.f32 %v2240_v43, %v1984_v57  ;;  %v1696_v53 = vadd.f32 %v1660_v55, %v1404_v35  ;;  %v2580_v43 = vld [vmem:[%s3788_s29 + $0x3e] sm:$0xff] }
 0x315   : > { %v1695_v2 = vadd.f32 %v1659_v40, %v1403_v41  ;;  %v2585_v40 = vld [vmem:[%s3788_s29 + $0x66] sm:$0xff] }
 0x316   : > { %2628 = vperm.xlu2 %3668, %v2579_v32   ;;  %2623 = vperm.xlu1 %3667, %v2578_v26   ;;  %v1988_v4 = vadd.f32 %v1952_v29, %v1696_v53  ;;  %v2583_v29 = vld [vmem:[%s3788_s29 + $0x56] sm:$0xff] }
 0x317   : > { %2618 = vperm.xlu0 %3666, %v2577_v9   ;;  %v1987_v22 = vadd.f32 %v1951_v42, %v1695_v2  ;;  %v2584_v9 = vld [vmem:[%s3788_s29 + $0x5e] sm:$0xff] }
 0x318   : > { %v2352_v58 = vpop.permute.xlu2 %2351  ;;  %v2190_v18 = vpop.permute.xlu1 %2189  ;;  %v2588_v2 = vld [vmem:[%s3788_s29 + $0x7e] sm:$0xff] }
 0x319   : > { %v2510_v5 = vmul.f32 %v5415_v10, %v2352_v58  ;;  %v2244_v45 = vmul.f32 %v4862_v34, %v2190_v18  ;;  %v2185_v39 = vpop.permute.xlu0 %2184  ;;  %v2587_v58 = vld [vmem:[%s3788_s29 + $0x76] sm:$0xff] }
 0x31a   : > { %v2243_v62 = vmul.f32 %v4862_v34, %v2185_v39 }
 0x31b   : > { %v5456_v19 = vadd.f32 %v2510_v5, %v4984_v37  ;;  %v5458_v28 = vadd.f32 %v2244_v45, %v1988_v4  ;;  %v2586_v4 = vld [vmem:[%s3788_s29 + $0x6e] sm:$0xff] }
 0x31c   : > { %v5462_v57 = vadd.f32 %v2243_v62, %v1987_v22 }
 0x31e   : > { %2643 = vperm.xlu2 %3668, %v2582_v63   ;;  %2638 = vperm.xlu1 %3667, %v2581_v60   ;;  %v2591_v63 = vld [vmem:[%s3788_s29 + $0x96] sm:$0xff]  ;;  %v2590_v60 = vld [vmem:[%s3788_s29 + $0x8e] sm:$0xff] }
 0x31f   : > { %2633 = vperm.xlu0 %3666, %v2580_v43  }
 0x320   : > { %v2367_v56 = vpop.permute.xlu2 %2366  ;;  %v2205_v61 = vpop.permute.xlu1 %2204 }
 0x321   : > { %v2513_v55 = vmul.f32 %v5415_v10, %v2367_v56  ;;  %v2247_v37 = vmul.f32 %v4862_v34, %v2205_v61  ;;  %v2200_v32 = vpop.permute.xlu0 %2199  ;;  %v2589_v56 = vld [vmem:[%s3788_s29 + $0x86] sm:$0xff] }
 0x322   : > { %v2246_v26 = vmul.f32 %v4862_v34, %v2200_v32 }
 0x323   : > { %v5469_v36 = vadd.f32 %v2513_v55, %v5025_v11  ;;  %v5472_v49 = vadd.f32 %v2247_v37, %v5027_v3 }
 0x324   : > { %v5477_v35 = vadd.f32 %v2246_v26, %v5036_v31 }
 0x326   : > { %2658 = vperm.xlu2 %3668, %v2585_v40   ;;  %2653 = vperm.xlu1 %3667, %v2584_v9   ;;  %v2594_v40 = vld [vmem:[%s3788_s29 + $0xae] sm:$0xff]  ;;  %v2593_v9 = vld [vmem:[%s3788_s29 + $0xa6] sm:$0xff] }
 0x327   : > { %2648 = vperm.xlu0 %3666, %v2583_v29  }
 0x328   : > { %v2382_v41 = vpop.permute.xlu2 %2381  ;;  %v2332_v34 = vpop.permute.xlu1 %2331 }
 0x329   : > { %v2516_v11 = vmul.f32 %v5415_v10, %v2382_v41  ;;  %v2506_v16 = vmul.f32 %v5415_v10, %v2332_v34  ;;  %v2327_v3 = vpop.permute.xlu0 %2326  ;;  %v2592_v41 = vld [vmem:[%s3788_s29 + $0x9e] sm:$0xff] }
 0x32a   : > { %v2505_v42 = vmul.f32 %v5415_v10, %v2327_v3 }
 0x32b   : > { %v5484_v53 = vadd.f32 %v2516_v11, %v5068_v13  ;;  %v5487_v31 = vadd.f32 %v2506_v16, %v5070_v1 }
 0x32c   : > { %v5492_v18 = vadd.f32 %v2505_v42, %v5079_v38 }
 0x32e   : > { %2673 = vperm.xlu2 %3668, %v2588_v2   ;;  %2668 = vperm.xlu1 %3667, %v2587_v58   ;;  %v2597_v2 = vld [vmem:[%s3788_s29 + $0xc6] sm:$0xff]  ;;  %v2596_v58 = vld [vmem:[%s3788_s29 + $0xbe] sm:$0xff] }
 0x32f   : > { %2663 = vperm.xlu0 %3666, %v2586_v4  }
 0x330   : > { %v2397_v5 = vpop.permute.xlu2 %2396  ;;  %v2347_v45 = vpop.permute.xlu1 %2346 }
 0x331   : > { %v2519_v13 = vmul.f32 %v5415_v10, %v2397_v5  ;;  %v2509_v39 = vmul.f32 %v5415_v10, %v2347_v45  ;;  %v2342_v1 = vpop.permute.xlu0 %2341  ;;  %v2595_v5 = vld [vmem:[%s3788_s29 + $0xb6] sm:$0xff] }
 0x332   : > { %v2508_v22 = vmul.f32 %v5415_v10, %v2342_v1 }
 0x333   : > { %v5499_v62 = vadd.f32 %v2519_v13, %v5111_v47  ;;  %v5502_v38 = vadd.f32 %v2509_v39, %v5113_v44 }
 0x334   : > { %v5507_v43 = vadd.f32 %v2508_v22, %v5122_v24 }
 0x336   : > { %2688 = vperm.xlu2 %3668, %v2591_v63   ;;  %2683 = vperm.xlu1 %3667, %v2590_v60   ;;  %v2600_v63 = vld [vmem:[%s3788_s29 + $0xde] sm:$0xff]  ;;  %v2599_v60 = vld [vmem:[%s3788_s29 + $0xd6] sm:$0xff] }
 0x337   : > { %2678 = vperm.xlu0 %3666, %v2589_v56  }
 0x338   : > { %v2412_v61 = vpop.permute.xlu2 %2411  ;;  %v2362_v55 = vpop.permute.xlu1 %2361 }
 0x339   : > { %v2522_v47 = vmul.f32 %v5415_v10, %v2412_v61  ;;  %v2512_v37 = vmul.f32 %v5415_v10, %v2362_v55  ;;  %v2357_v44 = vpop.permute.xlu0 %2356  ;;  %v2598_v61 = vld [vmem:[%s3788_s29 + $0xce] sm:$0xff] }
 0x33a   : > { %v2511_v32 = vmul.f32 %v5415_v10, %v2357_v44 }
 0x33b   : > { %v5514_v26 = vadd.f32 %v2522_v47, %v5154_v7  ;;  %v5517_v24 = vadd.f32 %v2512_v37, %v5156_v25 }
 0x33c   : > { %v5522_v29 = vadd.f32 %v2511_v32, %v5165_v54 }
 0x33e   : > { %2703 = vperm.xlu2 %3668, %v2594_v40   ;;  %2698 = vperm.xlu1 %3667, %v2593_v9   ;;  %v2603_v40 = vld [vmem:[%s3788_s29 + $0xf6] sm:$0xff]  ;;  %v2602_v9 = vld [vmem:[%s3788_s29 + $0xee] sm:$0xff] }
 0x33f   : > { %2693 = vperm.xlu0 %3666, %v2592_v41  }
 0x340   : > { %v2427_v34 = vpop.permute.xlu2 %2426  ;;  %v2377_v11 = vpop.permute.xlu1 %2376 }
 0x341   : > { %v2525_v7 = vmul.f32 %v5415_v10, %v2427_v34  ;;  %v2515_v16 = vmul.f32 %v5415_v10, %v2377_v11  ;;  %v2372_v25 = vpop.permute.xlu0 %2371  ;;  %v2601_v34 = vld [vmem:[%s3788_s29 + $0xe6] sm:$0xff] }
 0x342   : > { %v2514_v3 = vmul.f32 %v5415_v10, %v2372_v25 }
 0x343   : > { %v5529_v42 = vadd.f32 %v2525_v7, %v5197_v27  ;;  %v5532_v54 = vadd.f32 %v2515_v16, %v5199_v8 }
 0x344   : > { %v5537_v4 = vadd.f32 %v2514_v3, %v5208_v21 }
 0x346   : > { %2718 = vperm.xlu2 %3668, %v2597_v2   ;;  %2713 = vperm.xlu1 %3667, %v2596_v58   ;;  %v2606_v2 = vld [vmem:[%s3788_s29 + $0x10e] sm:$0xff]  ;;  %v2605_v58 = vld [vmem:[%s3788_s29 + $0x106] sm:$0xff] }
 0x347   : > { %2708 = vperm.xlu0 %3666, %v2595_v5  }
 0x348   : > { %v2442_v45 = vpop.permute.xlu2 %2441  ;;  %v2392_v13 = vpop.permute.xlu1 %2391 }
 0x349   : > { %v2528_v27 = vmul.f32 %v5415_v10, %v2442_v45  ;;  %v2518_v39 = vmul.f32 %v5415_v10, %v2392_v13  ;;  %v2387_v8 = vpop.permute.xlu0 %2386  ;;  %v2604_v45 = vld [vmem:[%s3788_s29 + $0xfe] sm:$0xff] }
 0x34a   : > { %v2517_v1 = vmul.f32 %v5415_v10, %v2387_v8 }
 0x34b   : > { %v5544_v22 = vadd.f32 %v2528_v27, %v5240_v30  ;;  %v5547_v21 = vadd.f32 %v2518_v39, %v5242_v14 }
 0x34c   : > { %v5552_v56 = vadd.f32 %v2517_v1, %v5251_v12 }
 0x34e   : > { %2733 = vperm.xlu2 %3668, %v2600_v63   ;;  %2728 = vperm.xlu1 %3667, %v2599_v60   ;;  %v2609_v63 = vld [vmem:[%s3788_s29 + $0x126] sm:$0xff]  ;;  %v2608_v60 = vld [vmem:[%s3788_s29 + $0x11e] sm:$0xff] }
 0x34f   : > { %2723 = vperm.xlu0 %3666, %v2598_v61   ;;  %v6473_v61 = vld [vmem:[#allocation150_spill] sm:$0xff] }
 0x350   : > { %v2457_v55 = vpop.permute.xlu2 %2456  ;;  %v2407_v47 = vpop.permute.xlu1 %2406 }
 0x351   : > { %v2531_v30 = vmul.f32 %v5415_v10, %v2457_v55  ;;  %v2521_v37 = vmul.f32 %v5415_v10, %v2407_v47  ;;  %v2402_v14 = vpop.permute.xlu0 %2401  ;;  %v2607_v47 = vld [vmem:[%s3788_s29 + $0x116] sm:$0xff] }
 0x352   : > { %v2520_v44 = vmul.f32 %v5415_v10, %v2402_v14 }
 0x353   : > { %v5559_v32 = vadd.f32 %v2531_v30, %v5281_v48  ;;  %v5562_v12 = vadd.f32 %v2521_v37, %v5283_v17 }
 0x354   : > { %v5567_v41 = vadd.f32 %v2520_v44, %v5292_v52 }
 0x356   : > { %2748 = vperm.xlu2 %3668, %v2603_v40   ;;  %2743 = vperm.xlu1 %3667, %v2602_v9  }
 0x357   : > { %2738 = vperm.xlu0 %3666, %v2601_v34  }
 0x358   : > { %v2472_v11 = vpop.permute.xlu2 %2471  ;;  %v2422_v48 = vpop.permute.xlu1 %2421 }
 0x359   : > { %v2534_v7 = vmul.f32 %v5415_v10, %v2472_v11  ;;  %v2524_v17 = vmul.f32 %v5415_v10, %v2422_v48  ;;  %v2417_v16 = vpop.permute.xlu0 %2416  ;;  %v2612_v48 = vld [vmem:[%s3788_s29 + $0x13e] sm:$0xff] }
 0x35a   : > { %v2523_v25 = vmul.f32 %v5415_v10, %v2417_v16 }
 0x35b   : > { %v5574_v3 = vadd.f32 %v2534_v7, %v5321_v15  ;;  %v5577_v52 = vadd.f32 %v2524_v17, %v5323_v0  ;;  %v2611_v7 = vld [vmem:[%s3788_s29 + $0x136] sm:$0xff]  ;;  %v6475_v17 = vld [vmem:[#allocation18_spill] sm:$0xff] }
 0x35c   : > { %v5582_v5 = vadd.f32 %v2523_v25, %v5331_v20  ;;  %v2610_v25 = vld [vmem:[%s3788_s29 + $0x12e] sm:$0xff] }
 0x35e   : > { %2763 = vperm.xlu2 %3668, %v2606_v2   ;;  %2758 = vperm.xlu1 %3667, %v2605_v58  }
 0x35f   : > { %2753 = vperm.xlu0 %3666, %v2604_v45  }
 0x360   : > { %v2487_v15 = vpop.permute.xlu2 %2486  ;;  %v2437_v13 = vpop.permute.xlu1 %2436 }
 0x361   : > { %v2537_v0 = vmul.f32 %v5415_v10, %v2487_v15  ;;  %v2527_v27 = vmul.f32 %v5415_v10, %v2437_v13  ;;  %v2432_v39 = vpop.permute.xlu0 %2431 }
 0x362   : > { %v2526_v20 = vmul.f32 %v5415_v10, %v2432_v39 }
 0x363   : > { %v5593_v8 = vadd.f32 %v2537_v0, %v5358_v33  ;;  %v5596_v1 = vadd.f32 %v2527_v27, %v5360_v23  ;;  %v3616_v33 = vld [vmem:[%s6097_s2 + $0x8] sm:$0x1] }
 0x364   : > { %v5601_v55 = vadd.f32 %v2526_v20, %v6473_v61  ;;  %v2615_v40 = vunpack.c.l.bf16 %v3616_v33 }
 0x366   : > { %2778 = vperm.xlu2 %3668, %v2609_v63   ;;  %2773 = vperm.xlu1 %3667, %v2608_v60   ;;  %v5633_v2 = vperm.slane %v2615_v40, 0 }
 0x367   : > { %2768 = vperm.xlu0 %3666, %v2607_v47  }
 0x368   : > { %v2502_v23 = vpop.permute.xlu2 %2501  ;;  %v2452_v30 = vpop.permute.xlu1 %2451 }
 0x369   : > { %v2540_v37 = vmul.f32 %v5415_v10, %v2502_v23  ;;  %v2530_v14 = vmul.f32 %v5415_v10, %v2452_v30  ;;  %v2447_v44 = vpop.permute.xlu0 %2446 }
 0x36a   : > { %v2529_v9 = vmul.f32 %v5415_v10, %v2447_v44 }
 0x36b   : > { %v5622_v34 = vadd.f32 %v2540_v37, %v5398_v6  ;;  %v5625_v11 = vadd.f32 %v2530_v14, %v5400_v50 }
 0x36c   : > { %v5630_v16 = vadd.f32 %v2529_v9, %v6475_v17 }
 0x36e   : > { %2793 = vperm.xlu2 %3668, %v2612_v48   ;;  %2788 = vperm.xlu1 %3667, %v2611_v7  }
 0x36f   : > { %2783 = vperm.xlu0 %3666, %v2610_v25  }
 0x370   : > { %v2629_v58 = vpop.permute.xlu2 %2628  ;;  %v2467_v45 = vpop.permute.xlu1 %2466 }
 0x371   : > { %v2799_v15 = vmul.f32 %v5633_v2, %v2629_v58  ;;  %v2533_v6 = vmul.f32 %v5415_v10, %v2467_v45  ;;  %v2462_v13 = vpop.permute.xlu0 %2461 }
 0x372   : > { %v2532_v50 = vmul.f32 %v5415_v10, %v2462_v13 }
 0x373   : > { %v5639_v0 = vadd.f32 %v2799_v15, %v5437_v51  ;;  %v5642_v27 = vadd.f32 %v2533_v6, %v5439_v59 }
 0x374   : > { %v5645_v39 = vadd.f32 %v2532_v50, %v5445_v46 }
 0x378   : > { %v2644_v20 = vpop.permute.xlu2 %2643  ;;  %v2482_v63 = vpop.permute.xlu1 %2481 }
 0x379   : > { %v2802_v60 = vmul.f32 %v5633_v2, %v2644_v20  ;;  %v2536_v61 = vmul.f32 %v5415_v10, %v2482_v63  ;;  %v2477_v47 = vpop.permute.xlu0 %2476 }
 0x37a   : > { %v2535_v33 = vmul.f32 %v5415_v10, %v2477_v47 }
 0x37b   : > { %v5651_v23 = vadd.f32 %v2802_v60, %v5456_v19  ;;  %v5654_v51 = vadd.f32 %v2536_v61, %v5458_v28 }
 0x37c   : > { %v5657_v59 = vadd.f32 %v2535_v33, %v5462_v57 }
 0x380   : > { %v2659_v46 = vpop.permute.xlu2 %2658  ;;  %v2497_v30 = vpop.permute.xlu1 %2496 }
 0x381   : > { %v2805_v37 = vmul.f32 %v5633_v2, %v2659_v46  ;;  %v2539_v14 = vmul.f32 %v5415_v10, %v2497_v30  ;;  %v2492_v44 = vpop.permute.xlu0 %2491 }
 0x382   : > { %v2538_v40 = vmul.f32 %v5415_v10, %v2492_v44 }
 0x383   : > { %v5663_v9 = vadd.f32 %v2805_v37, %v5469_v36  ;;  %v5666_v19 = vadd.f32 %v2539_v14, %v5472_v49 }
 0x384   : > { %v5669_v28 = vadd.f32 %v2538_v40, %v5477_v35 }
 0x388   : > { %v2674_v57 = vpop.permute.xlu2 %2673  ;;  %v2624_v48 = vpop.permute.xlu1 %2623 }
 0x389   : > { %v2808_v7 = vmul.f32 %v5633_v2, %v2674_v57  ;;  %v2798_v17 = vmul.f32 %v5633_v2, %v2624_v48  ;;  %v2619_v25 = vpop.permute.xlu0 %2618 }
 0x38a   : > { %v2797_v58 = vmul.f32 %v5633_v2, %v2619_v25 }
 0x38b   : > { %v5675_v10 = vadd.f32 %v2808_v7, %v5484_v53  ;;  %v5678_v36 = vadd.f32 %v2798_v17, %v5487_v31 }
 0x38c   : > { %v5681_v49 = vadd.f32 %v2797_v58, %v5492_v18 }
 0x390   : > { %v2689_v35 = vpop.permute.xlu2 %2688  ;;  %v2639_v45 = vpop.permute.xlu1 %2638 }
 0x391   : > { %v2811_v15 = vmul.f32 %v5633_v2, %v2689_v35  ;;  %v2801_v6 = vmul.f32 %v5633_v2, %v2639_v45  ;;  %v2634_v13 = vpop.permute.xlu0 %2633 }
 0x392   : > { %v2800_v50 = vmul.f32 %v5633_v2, %v2634_v13 }
 0x393   : > { %v5687_v20 = vadd.f32 %v2811_v15, %v5499_v62  ;;  %v5690_v53 = vadd.f32 %v2801_v6, %v5502_v38 }
 0x394   : > { %v5693_v31 = vadd.f32 %v2800_v50, %v5507_v43 }
 0x398   : > { %v2704_v18 = vpop.permute.xlu2 %2703  ;;  %v2654_v63 = vpop.permute.xlu1 %2653 }
 0x399   : > { %v2814_v60 = vmul.f32 %v5633_v2, %v2704_v18  ;;  %v2804_v61 = vmul.f32 %v5633_v2, %v2654_v63  ;;  %v2649_v47 = vpop.permute.xlu0 %2648 }
 0x39a   : > { %v2803_v33 = vmul.f32 %v5633_v2, %v2649_v47 }
 0x39b   : > { %v5699_v46 = vadd.f32 %v2814_v60, %v5514_v26  ;;  %v5702_v62 = vadd.f32 %v2804_v61, %v5517_v24 }
 0x39c   : > { %v5705_v38 = vadd.f32 %v2803_v33, %v5522_v29 }
 0x3a0   : > { %v2719_v43 = vpop.permute.xlu2 %2718  ;;  %v2669_v30 = vpop.permute.xlu1 %2668 }
 0x3a1   : > { %v2817_v37 = vmul.f32 %v5633_v2, %v2719_v43  ;;  %v2807_v14 = vmul.f32 %v5633_v2, %v2669_v30  ;;  %v2664_v44 = vpop.permute.xlu0 %2663 }
 0x3a2   : > { %v2806_v40 = vmul.f32 %v5633_v2, %v2664_v44 }
 0x3a3   : > { %v5711_v57 = vadd.f32 %v2817_v37, %v5529_v42  ;;  %v5714_v26 = vadd.f32 %v2807_v14, %v5532_v54 }
 0x3a4   : > { %v5717_v24 = vadd.f32 %v2806_v40, %v5537_v4 }
 0x3a8   : > { %v2734_v29 = vpop.permute.xlu2 %2733  ;;  %v2684_v48 = vpop.permute.xlu1 %2683 }
 0x3a9   : > { %v2820_v7 = vmul.f32 %v5633_v2, %v2734_v29  ;;  %v2810_v17 = vmul.f32 %v5633_v2, %v2684_v48  ;;  %v2679_v25 = vpop.permute.xlu0 %2678 }
 0x3aa   : > { %v2809_v58 = vmul.f32 %v5633_v2, %v2679_v25 }
 0x3ab   : > { %v5723_v35 = vadd.f32 %v2820_v7, %v5544_v22  ;;  %v5726_v42 = vadd.f32 %v2810_v17, %v5547_v21 }
 0x3ac   : > { %v5729_v54 = vadd.f32 %v2809_v58, %v5552_v56 }
 0x3b0   : > { %v2749_v4 = vpop.permute.xlu2 %2748  ;;  %v2699_v45 = vpop.permute.xlu1 %2698 }
 0x3b1   : > { %v2823_v15 = vmul.f32 %v5633_v2, %v2749_v4  ;;  %v2813_v6 = vmul.f32 %v5633_v2, %v2699_v45  ;;  %v2694_v13 = vpop.permute.xlu0 %2693 }
 0x3b2   : > { %v2812_v50 = vmul.f32 %v5633_v2, %v2694_v13 }
 0x3b3   : > { %v5735_v18 = vadd.f32 %v2823_v15, %v5559_v32  ;;  %v5738_v22 = vadd.f32 %v2813_v6, %v5562_v12 }
 0x3b4   : > { %v5741_v21 = vadd.f32 %v2812_v50, %v5567_v41 }
 0x3b8   : > { %v2764_v56 = vpop.permute.xlu2 %2763  ;;  %v2714_v63 = vpop.permute.xlu1 %2713 }
 0x3b9   : > { %v2826_v60 = vmul.f32 %v5633_v2, %v2764_v56  ;;  %v2816_v61 = vmul.f32 %v5633_v2, %v2714_v63  ;;  %v2709_v47 = vpop.permute.xlu0 %2708 }
 0x3ba   : > { %v2815_v33 = vmul.f32 %v5633_v2, %v2709_v47 }
 0x3bb   : > { %v5747_v43 = vadd.f32 %v2826_v60, %v5574_v3  ;;  %v5750_v32 = vadd.f32 %v2816_v61, %v5577_v52 }
 0x3bc   : > { %v5753_v12 = vadd.f32 %v2815_v33, %v5582_v5 }
 0x3c0   : > { %v2779_v41 = vpop.permute.xlu2 %2778  ;;  %v2729_v30 = vpop.permute.xlu1 %2728 }
 0x3c1   : > { %v2829_v37 = vmul.f32 %v5633_v2, %v2779_v41  ;;  %v2819_v14 = vmul.f32 %v5633_v2, %v2729_v30  ;;  %v2724_v44 = vpop.permute.xlu0 %2723 }
 0x3c2   : > { %v2818_v40 = vmul.f32 %v5633_v2, %v2724_v44 }
 0x3c3   : > { %v5759_v29 = vadd.f32 %v2829_v37, %v5593_v8  ;;  %v5762_v3 = vadd.f32 %v2819_v14, %v5596_v1 }
 0x3c4   : > { %v5765_v52 = vadd.f32 %v2818_v40, %v5601_v55 }
 0x3c8   : > { %v2794_v5 = vpop.permute.xlu2 %2793  ;;  %v2744_v48 = vpop.permute.xlu1 %2743 }
 0x3c9   : > { %v2832_v7 = vmul.f32 %v5633_v2, %v2794_v5  ;;  %v2822_v17 = vmul.f32 %v5633_v2, %v2744_v48  ;;  %v2739_v25 = vpop.permute.xlu0 %2738 }
 0x3ca   : > { %v2821_v58 = vmul.f32 %v5633_v2, %v2739_v25 }
 0x3cb   : > { %v5771_v4 = vadd.f32 %v2832_v7, %v5622_v34  ;;  %v5774_v8 = vadd.f32 %v2822_v17, %v5625_v11 }
 0x3cc   : > { %v5777_v1 = vadd.f32 %v2821_v58, %v5630_v16 }
 0x3d0   : > { %v2759_v55 = vpop.permute.xlu1 %2758 }
 0x3d1   : > { %v2825_v45 = vmul.f32 %v5633_v2, %v2759_v55  ;;  %v2754_v15 = vpop.permute.xlu0 %2753 }
 0x3d2   : > { %v2824_v6 = vmul.f32 %v5633_v2, %v2754_v15 }
 0x3d3   : > { %v5782_v13 = vadd.f32 %v2825_v45, %v5642_v27 }
 0x3d4   : > { %v5785_v50 = vadd.f32 %v2824_v6, %v5645_v39 }
 0x3d8   : > { %v2774_v34 = vpop.permute.xlu1 %2773 }
 0x3d9   : > { %v2828_v56 = vmul.f32 %v5633_v2, %v2774_v34  ;;  %v2769_v11 = vpop.permute.xlu0 %2768 }
 0x3da   : > { %v2827_v63 = vmul.f32 %v5633_v2, %v2769_v11 }
 0x3db   : > { %v5790_v16 = vadd.f32 %v2828_v56, %v5654_v51 }
 0x3dc   : > { %v5793_v60 = vadd.f32 %v2827_v63, %v5657_v59 }
 0x3e0   : > { %v2789_v61 = vpop.permute.xlu1 %2788  ;;  %2874 = sbr.rel (%p5611_p9) target bundleno = 999 (0x3e7), region = 44 }
 0x3e1   : > { %v2831_v47 = vmul.f32 %v5633_v2, %v2789_v61  ;;  %v2784_v27 = vpop.permute.xlu0 %2783 }
 0x3e2   : > { %v2830_v33 = vmul.f32 %v5633_v2, %v2784_v27 }
 0x3e3   : > { %v5798_v39 = vadd.f32 %v2831_v47, %v5666_v19 }
 0x3e4   : > { %v5801_v41 = vadd.f32 %v2830_v33, %v5669_v28 }
 0x3e5   : > { %v3717_v51 = vmov 0.0  }
 0x3e6   : > { %2875 = vst [vmem:[#allocation2] sm:$0x3] %v3717_v51 }
 0x3e7 PF: > { %p3617_p10 = scmp.ne.s32.totalorder %s3702_s19, 0 }
 0x3e9   : > { %2878 = sbr.rel (%p3617_p10) target bundleno = 1237 (0x4d5), region = 48 }
 0x3ee   : > { %v2883_v59 = vld [vmem:[%s6096_s1 + $0x20] sm:$0xff]  ;;  %v2881_v2 = vld [vmem:[%s6096_s1 + $0x10] sm:$0xff]  ;;  %v3718_v28 = vmov 0   ;;  %v2884_v30 = vld [vmem:[%s6096_s1 + $0x28] sm:$0xff] }
 0x3ef   : > { %v2879_v19 = vld [vmem:[%s6096_s1] sm:$0xff]  ;;  %3671 = vset.pattern.permute.xlu2 %v3718_v28  ;;  %3670 = vset.pattern.permute.xlu1 %v3718_v28  ;;  %v2882_v37 = vld [vmem:[%s6096_s1 + $0x18] sm:$0xff]  ;;  %v2880_v14 = vld [vmem:[%s6096_s1 + $0x8] sm:$0xff] }
 0x3f0   : > { %3669 = vset.pattern.permute.xlu0 %v3718_v28  ;;  %2937 = vperm.xlu2 %3671, %v2883_v59   ;;  %v2887_v44 = vld [vmem:[%s6096_s1 + $0x40] sm:$0xff]  ;;  %v2886_v40 = vld [vmem:[%s6096_s1 + $0x38] sm:$0xff]  ;;  %v2885_v5 = vld [vmem:[%s6096_s1 + $0x30] sm:$0xff] }
 0x3f1   : > { %2927 = vperm.xlu1 %3670, %v2881_v2   ;;  %2917 = vperm.xlu0 %3669, %v2879_v19   ;;  %v2890_v48 = vld [vmem:[%s6096_s1 + $0x58] sm:$0xff]  ;;  %v2889_v7 = vld [vmem:[%s6096_s1 + $0x50] sm:$0xff]  ;;  %v2888_v17 = vld [vmem:[%s6096_s1 + $0x48] sm:$0xff] }
 0x3f2   : > { %v2893_v25 = vld [vmem:[%s6096_s1 + $0x70] sm:$0xff]  ;;  %v2892_v58 = vld [vmem:[%s6096_s1 + $0x68] sm:$0xff]  ;;  %v2891_v55 = vld [vmem:[%s6096_s1 + $0x60] sm:$0xff] }
 0x3f3   : > { %v2896_v45 = vld [vmem:[%s6096_s1 + $0x88] sm:$0xff]  ;;  %v2895_v15 = vld [vmem:[%s6096_s1 + $0x80] sm:$0xff]  ;;  %v2894_v6 = vld [vmem:[%s6096_s1 + $0x78] sm:$0xff] }
 0x3f4   : > { %v2899_v34 = vld [vmem:[%s6096_s1 + $0xa0] sm:$0xff]  ;;  %v2898_v56 = vld [vmem:[%s6096_s1 + $0x98] sm:$0xff]  ;;  %v2897_v11 = vld [vmem:[%s6096_s1 + $0x90] sm:$0xff] }
 0x3f5   : > { %v2902_v63 = vld [vmem:[%s6096_s1 + $0xb8] sm:$0xff]  ;;  %v2901_v61 = vld [vmem:[%s6096_s1 + $0xb0] sm:$0xff]  ;;  %v2900_v47 = vld [vmem:[%s6096_s1 + $0xa8] sm:$0xff] }
 0x3f6   : > { %v2905_v27 = vld [vmem:[%s6096_s1 + $0xd0] sm:$0xff]  ;;  %v2904_v33 = vld [vmem:[%s6096_s1 + $0xc8] sm:$0xff]  ;;  %v2903_v51 = vld [vmem:[%s6096_s1 + $0xc0] sm:$0xff] }
 0x3f7   : > { %v2908_v59 = vld [vmem:[%s6096_s1 + $0xe8] sm:$0xff]  ;;  %v2907_v2 = vld [vmem:[%s6096_s1 + $0xe0] sm:$0xff]  ;;  %v2906_v19 = vld [vmem:[%s6096_s1 + $0xd8] sm:$0xff] }
 0x3f8   : > { %2942 = vperm.xlu2 %3671, %v2884_v30   ;;  %v2911_v28 = vld [vmem:[%s6096_s1 + $0x100] sm:$0xff]  ;;  %v2910_v30 = vld [vmem:[%s6096_s1 + $0xf8] sm:$0xff] }
 0x3f9   : > { %2932 = vperm.xlu1 %3670, %v2882_v37   ;;  %2922 = vperm.xlu0 %3669, %v2880_v14   ;;  %v2909_v37 = vld [vmem:[%s6096_s1 + $0xf0] sm:$0xff]  ;;  %v2914_v14 = vld [vmem:[%s6096_s1 + $0x118] sm:$0xff] }
 0x400   : > { %2957 = vperm.xlu2 %3671, %v2887_v44   ;;  %v2913_v44 = vld [vmem:[%s6096_s1 + $0x110] sm:$0xff] }
 0x401   : > { %2952 = vperm.xlu1 %3670, %v2886_v40   ;;  %2947 = vperm.xlu0 %3669, %v2885_v5   ;;  %v2912_v40 = vld [vmem:[%s6096_s1 + $0x108] sm:$0xff] }
 0x408   : > { %2972 = vperm.xlu2 %3671, %v2890_v48  }
 0x409   : > { %2967 = vperm.xlu1 %3670, %v2889_v7   ;;  %2962 = vperm.xlu0 %3669, %v2888_v17  }
 0x410   : > { %2987 = vperm.xlu2 %3671, %v2893_v25  }
 0x411   : > { %2982 = vperm.xlu1 %3670, %v2892_v58   ;;  %2977 = vperm.xlu0 %3669, %v2891_v55  }
 0x418   : > { %3002 = vperm.xlu2 %3671, %v2896_v45  }
 0x419   : > { %2997 = vperm.xlu1 %3670, %v2895_v15   ;;  %2992 = vperm.xlu0 %3669, %v2894_v6  }
 0x420   : > { %3017 = vperm.xlu2 %3671, %v2899_v34  }
 0x421   : > { %3012 = vperm.xlu1 %3670, %v2898_v56   ;;  %3007 = vperm.xlu0 %3669, %v2897_v11  }
 0x428   : > { %3032 = vperm.xlu2 %3671, %v2902_v63  }
 0x429   : > { %3027 = vperm.xlu1 %3670, %v2901_v61   ;;  %3022 = vperm.xlu0 %3669, %v2900_v47  }
 0x430   : > { %3047 = vperm.xlu2 %3671, %v2905_v27  }
 0x431   : > { %3042 = vperm.xlu1 %3670, %v2904_v33   ;;  %3037 = vperm.xlu0 %3669, %v2903_v51  }
 0x438   : > { %3062 = vperm.xlu2 %3671, %v2908_v59  }
 0x439   : > { %3057 = vperm.xlu1 %3670, %v2907_v2   ;;  %3052 = vperm.xlu0 %3669, %v2906_v19  }
 0x440   : > { %3077 = vperm.xlu2 %3671, %v2911_v28  }
 0x441   : > { %3072 = vperm.xlu1 %3670, %v2910_v30   ;;  %3067 = vperm.xlu0 %3669, %v2909_v37  }
 0x448   : > { %3092 = vperm.xlu2 %3671, %v2914_v14  }
 0x449   : > { %3087 = vperm.xlu1 %3670, %v2913_v44   ;;  %3082 = vperm.xlu0 %3669, %v2912_v40  }
 0x44a   : > { %v2938_v5 = vpop.permute.xlu2 %2937 }
 0x44b   : > { %v3099_v47 = vmul.f32 %v2938_v5, %v5690_v53 }
 0x44d   : > { %v3180_v14 = vmul.f32 %v3099_v47, %v3099_v47 }
 0x452   : > { %v2943_v48 = vpop.permute.xlu2 %2942 }
 0x453   : > { %v3100_v59 = vmul.f32 %v2943_v48, %v5651_v23 }
 0x45a   : > { %v2958_v7 = vpop.permute.xlu2 %2957 }
 0x462   : > { %v2973_v58 = vpop.permute.xlu2 %2972 }
 0x463   : > { %v2928_v17 = vpop.permute.xlu1 %2927  ;;  %v2918_v25 = vpop.permute.xlu0 %2917 }
 0x464   : > { %v3095_v55 = vmul.f32 %v2918_v25, %v5681_v49  ;;  %v3097_v6 = vmul.f32 %v2928_v17, %v5639_v0 }
 0x466   : > { %v3176_v56 = vmul.f32 %v3095_v55, %v3095_v55  ;;  %v3178_v27 = vmul.f32 %v3097_v6, %v3097_v6 }
 0x46a   : > { %v2988_v44 = vpop.permute.xlu2 %2987 }
 0x46b   : > { %v2933_v45 = vpop.permute.xlu1 %2932  ;;  %v2923_v15 = vpop.permute.xlu0 %2922 }
 0x46c   : > { %v3096_v34 = vmul.f32 %v2923_v15, %v5678_v36  ;;  %v3098_v11 = vmul.f32 %v2933_v45, %v5693_v31 }
 0x46e   : > { %v3132_v63 = vadd.f32 %v3096_v34, %v3095_v55  ;;  %v3177_v61 = vmul.f32 %v3096_v34, %v3096_v34  ;;  %v3179_v2 = vmul.f32 %v3098_v11, %v3098_v11  ;;  %v3181_v55 = vmul.f32 %v3100_v59, %v3100_v59 }
 0x470   : > { %v3133_v33 = vadd.f32 %v3132_v63, %v3097_v6  ;;  %v3212_v51 = vadd.f32 %v3177_v61, %v3176_v56  ;;  %v3103_v6 = vmul.f32 %v2958_v7, %v5663_v9  ;;  %v3106_v7 = vmul.f32 %v2973_v58, %v5675_v10 }
 0x472   : > { %v3134_v19 = vadd.f32 %v3133_v33, %v3098_v11  ;;  %v3213_v28 = vadd.f32 %v3212_v51, %v3178_v27  ;;  %v3184_v27 = vmul.f32 %v3103_v6, %v3103_v6 }
 0x473   : > { %v2953_v30 = vpop.permute.xlu1 %2952  ;;  %v2948_v37 = vpop.permute.xlu0 %2947 }
 0x474   : > { %v3214_v40 = vadd.f32 %v3213_v28, %v3179_v2  ;;  %v3135_v17 = vadd.f32 %v3134_v19, %v3099_v47  ;;  %v3101_v25 = vmul.f32 %v2948_v37, %v5705_v38  ;;  %v3102_v45 = vmul.f32 %v2953_v30, %v5702_v62  ;;  %v3003_v30 = vpop.permute.xlu2 %3002 }
 0x476   : > { %v3136_v5 = vadd.f32 %v3135_v17, %v3100_v59  ;;  %v3215_v15 = vadd.f32 %v3214_v40, %v3180_v14  ;;  %v3182_v56 = vmul.f32 %v3101_v25, %v3101_v25  ;;  %v3183_v11 = vmul.f32 %v3102_v45, %v3102_v45 }
 0x478   : > { %v3216_v34 = vadd.f32 %v3215_v15, %v3181_v55  ;;  %v3137_v48 = vadd.f32 %v3136_v5, %v3101_v25  ;;  %v3187_v15 = vmul.f32 %v3106_v7, %v3106_v7 }
 0x47a   : > { %v3138_v63 = vadd.f32 %v3137_v48, %v3102_v45  ;;  %v3217_v61 = vadd.f32 %v3216_v34, %v3182_v56 }
 0x47b   : > { %v2968_v33 = vpop.permute.xlu1 %2967  ;;  %v2963_v51 = vpop.permute.xlu0 %2962 }
 0x47c   : > { %v3218_v2 = vadd.f32 %v3217_v61, %v3183_v11  ;;  %v3105_v47 = vmul.f32 %v2968_v33, %v5714_v26  ;;  %v3139_v19 = vadd.f32 %v3138_v63, %v3103_v6  ;;  %v3104_v28 = vmul.f32 %v2963_v51, %v5717_v24 }
 0x47d   : > { %v3109_v61 = vmul.f32 %v2988_v44, %v5687_v20 }
 0x47e   : > { %v3219_v59 = vadd.f32 %v3218_v2, %v3184_v27  ;;  %v3140_v37 = vadd.f32 %v3139_v19, %v3104_v28  ;;  %v3185_v14 = vmul.f32 %v3104_v28, %v3104_v28  ;;  %v3186_v40 = vmul.f32 %v3105_v47, %v3105_v47  ;;  %v3018_v27 = vpop.permute.xlu2 %3017 }
 0x47f   : > { %v3190_v28 = vmul.f32 %v3109_v61, %v3109_v61 }
 0x480   : > { %v3141_v17 = vadd.f32 %v3140_v37, %v3105_v47  ;;  %v3220_v25 = vadd.f32 %v3219_v59, %v3185_v14 }
 0x482   : > { %v3221_v55 = vadd.f32 %v3220_v25, %v3186_v40  ;;  %v3142_v48 = vadd.f32 %v3141_v17, %v3106_v7  ;;  %v3112_v25 = vmul.f32 %v3003_v30, %v5699_v46 }
 0x483   : > { %v2983_v45 = vpop.permute.xlu1 %2982  ;;  %v2978_v5 = vpop.permute.xlu0 %2977 }
 0x484   : > { %v3108_v34 = vmul.f32 %v2983_v45, %v5726_v42  ;;  %v3107_v6 = vmul.f32 %v2978_v5, %v5729_v54  ;;  %v3222_v56 = vadd.f32 %v3221_v55, %v3187_v15 }
 0x486   : > { %v3143_v11 = vadd.f32 %v3142_v48, %v3107_v6  ;;  %v3188_v63 = vmul.f32 %v3107_v6, %v3107_v6  ;;  %v3189_v33 = vmul.f32 %v3108_v34, %v3108_v34  ;;  %v3033_v5 = vpop.permute.xlu2 %3032  ;;  %v3193_v6 = vmul.f32 %v3112_v25, %v3112_v25 }
 0x488   : > { %v3144_v58 = vadd.f32 %v3143_v11, %v3108_v34  ;;  %v3223_v51 = vadd.f32 %v3222_v56, %v3188_v63 }
 0x48a   : > { %v3224_v2 = vadd.f32 %v3223_v51, %v3189_v33  ;;  %v3145_v37 = vadd.f32 %v3144_v58, %v3109_v61  ;;  %v3115_v51 = vmul.f32 %v3018_v27, %v5711_v57 }
 0x48b   : > { %v2998_v47 = vpop.permute.xlu1 %2997  ;;  %v2993_v19 = vpop.permute.xlu0 %2992 }
 0x48c   : > { %v3111_v59 = vmul.f32 %v2998_v47, %v5738_v22  ;;  %v3110_v14 = vmul.f32 %v2993_v19, %v5741_v21  ;;  %v3225_v7 = vadd.f32 %v3224_v2, %v3190_v28 }
 0x48e   : > { %v3146_v40 = vadd.f32 %v3145_v37, %v3110_v14  ;;  %v3191_v17 = vmul.f32 %v3110_v14, %v3110_v14  ;;  %v3192_v55 = vmul.f32 %v3111_v59, %v3111_v59  ;;  %v3196_v37 = vmul.f32 %v3115_v51, %v3115_v51  ;;  %v3048_v14 = vpop.permute.xlu2 %3047 }
 0x490   : > { %v3147_v44 = vadd.f32 %v3146_v40, %v3111_v59  ;;  %v3226_v45 = vadd.f32 %v3225_v7, %v3191_v17 }
 0x492   : > { %v3227_v15 = vadd.f32 %v3226_v45, %v3192_v55  ;;  %v3148_v11 = vadd.f32 %v3147_v44, %v3112_v25  ;;  %v3118_v45 = vmul.f32 %v3033_v5, %v5723_v35 }
 0x493   : > { %v3013_v34 = vpop.permute.xlu1 %3012  ;;  %v3008_v48 = vpop.permute.xlu0 %3007 }
 0x494   : > { %v3114_v56 = vmul.f32 %v3013_v34, %v5750_v32  ;;  %v3113_v63 = vmul.f32 %v3008_v48, %v5753_v12  ;;  %v3228_v61 = vadd.f32 %v3227_v15, %v3193_v6 }
 0x496   : > { %v3149_v33 = vadd.f32 %v3148_v11, %v3113_v63  ;;  %v3194_v58 = vmul.f32 %v3113_v63, %v3113_v63  ;;  %v3195_v2 = vmul.f32 %v3114_v56, %v3114_v56  ;;  %v3199_v11 = vmul.f32 %v3118_v45, %v3118_v45 }
 0x498   : > { %v3150_v30 = vadd.f32 %v3149_v33, %v3114_v56  ;;  %v3229_v47 = vadd.f32 %v3228_v61, %v3194_v58  ;;  %v3063_v58 = vpop.permute.xlu2 %3062 }
 0x49a   : > { %v3230_v19 = vadd.f32 %v3229_v47, %v3195_v2  ;;  %v3151_v40 = vadd.f32 %v3150_v30, %v3115_v51  ;;  %v3121_v47 = vmul.f32 %v3048_v14, %v5735_v18 }
 0x49b   : > { %v3028_v28 = vpop.permute.xlu1 %3027  ;;  %v3023_v59 = vpop.permute.xlu0 %3022 }
 0x49c   : > { %v3117_v7 = vmul.f32 %v3028_v28, %v5762_v3  ;;  %v3116_v17 = vmul.f32 %v3023_v59, %v5765_v52  ;;  %v3231_v25 = vadd.f32 %v3230_v19, %v3196_v37 }
 0x49e   : > { %v3152_v55 = vadd.f32 %v3151_v40, %v3116_v17  ;;  %v3197_v44 = vmul.f32 %v3116_v17, %v3116_v17  ;;  %v3198_v15 = vmul.f32 %v3117_v7, %v3117_v7  ;;  %v3202_v40 = vmul.f32 %v3121_v47, %v3121_v47 }
 0x4a0   : > { %v3153_v27 = vadd.f32 %v3152_v55, %v3117_v7  ;;  %v3232_v34 = vadd.f32 %v3231_v25, %v3197_v44 }
 0x4a2   : > { %v3233_v48 = vadd.f32 %v3232_v34, %v3198_v15  ;;  %v3154_v61 = vadd.f32 %v3153_v27, %v3118_v45  ;;  %v3124_v27 = vmul.f32 %v3063_v58, %v5747_v43  ;;  %v3078_v34 = vpop.permute.xlu2 %3077 }
 0x4a3   : > { %v3043_v6 = vpop.permute.xlu1 %3042  ;;  %v3038_v56 = vpop.permute.xlu0 %3037 }
 0x4a4   : > { %v3120_v63 = vmul.f32 %v3043_v6, %v5774_v8  ;;  %v3119_v33 = vmul.f32 %v3038_v56, %v5777_v1  ;;  %v3234_v51 = vadd.f32 %v3233_v48, %v3199_v11 }
 0x4a6   : > { %v3155_v2 = vadd.f32 %v3154_v61, %v3119_v33  ;;  %v3200_v30 = vmul.f32 %v3119_v33, %v3119_v33  ;;  %v3201_v19 = vmul.f32 %v3120_v63, %v3120_v63  ;;  %v3205_v61 = vmul.f32 %v3124_v27, %v3124_v27 }
 0x4a8   : > { %v3156_v5 = vadd.f32 %v3155_v2, %v3120_v63  ;;  %v3235_v28 = vadd.f32 %v3234_v51, %v3200_v30 }
 0x4aa   : > { %v3236_v59 = vadd.f32 %v3235_v28, %v3201_v19  ;;  %v3157_v25 = vadd.f32 %v3156_v5, %v3121_v47  ;;  %v3127_v5 = vmul.f32 %v3078_v34, %v5759_v29 }
 0x4ab   : > { %v3058_v37 = vpop.permute.xlu1 %3057  ;;  %v3053_v7 = vpop.permute.xlu0 %3052 }
 0x4ac   : > { %v3123_v17 = vmul.f32 %v3058_v37, %v5782_v13  ;;  %v3122_v55 = vmul.f32 %v3053_v7, %v5785_v50  ;;  %v3237_v44 = vadd.f32 %v3236_v59, %v3202_v40  ;;  %v3093_v37 = vpop.permute.xlu2 %3092 }
 0x4ae   : > { %v3158_v45 = vadd.f32 %v3157_v25, %v3122_v55  ;;  %v3203_v15 = vmul.f32 %v3122_v55, %v3122_v55  ;;  %v3204_v48 = vmul.f32 %v3123_v17, %v3123_v17  ;;  %v3208_v25 = vmul.f32 %v3127_v5, %v3127_v5 }
 0x4b0   : > { %v3159_v14 = vadd.f32 %v3158_v45, %v3123_v17  ;;  %v3238_v6 = vadd.f32 %v3237_v44, %v3203_v15  ;;  %v3130_v15 = vmul.f32 %v3093_v37, %v5771_v4  ;;  %v3131_v37 = vld [vmem:[#allocation2] sm:$0x1] }
 0x4b2   : > { %v3239_v56 = vadd.f32 %v3238_v6, %v3204_v48  ;;  %v3160_v51 = vadd.f32 %v3159_v14, %v3124_v27 }
 0x4b3   : > { %v3073_v11 = vpop.permute.xlu1 %3072  ;;  %v3068_v63 = vpop.permute.xlu0 %3067 }
 0x4b4   : > { %v3126_v33 = vmul.f32 %v3073_v11, %v5790_v16  ;;  %v3125_v2 = vmul.f32 %v3068_v63, %v5793_v60  ;;  %v3240_v30 = vadd.f32 %v3239_v56, %v3205_v61  ;;  %v3211_v11 = vmul.f32 %v3130_v15, %v3130_v15 }
 0x4b6   : > { %v3161_v47 = vadd.f32 %v3160_v51, %v3125_v2  ;;  %v3206_v19 = vmul.f32 %v3125_v2, %v3125_v2  ;;  %v3207_v28 = vmul.f32 %v3126_v33, %v3126_v33 }
 0x4b8   : > { %v3162_v58 = vadd.f32 %v3161_v47, %v3126_v33  ;;  %v3241_v59 = vadd.f32 %v3240_v30, %v3206_v19 }
 0x4ba   : > { %v3242_v7 = vadd.f32 %v3241_v59, %v3207_v28  ;;  %v3163_v44 = vadd.f32 %v3162_v58, %v3127_v5 }
 0x4bb   : > { %v3088_v40 = vpop.permute.xlu1 %3087  ;;  %v3083_v17 = vpop.permute.xlu0 %3082 }
 0x4bc   : > { %v3129_v55 = vmul.f32 %v3088_v40, %v5798_v39  ;;  %v3128_v45 = vmul.f32 %v3083_v17, %v5801_v41  ;;  %v3243_v27 = vadd.f32 %v3242_v7, %v3208_v25  ;;  %v3175_v17 = vld [vmem:[#allocation2 + $0x1] sm:$0x1] }
 0x4be   : > { %v3164_v48 = vadd.f32 %v3163_v44, %v3128_v45  ;;  %v3209_v14 = vmul.f32 %v3128_v45, %v3128_v45  ;;  %v3210_v6 = vmul.f32 %v3129_v55, %v3129_v55 }
 0x4c0   : > { %v3165_v34 = vadd.f32 %v3164_v48, %v3129_v55  ;;  %v3244_v56 = vadd.f32 %v3243_v27, %v3209_v14 }
 0x4c2   : > { %v3166_v63 = vadd.f32 %v3165_v34, %v3130_v15  ;;  %v3245_v61 = vadd.f32 %v3244_v56, %v3210_v6 }
 0x4c4   : > { %v3167_v33 = vrot.slane %v3166_v63, 4  ;;  %v3246_v51 = vadd.f32 %v3245_v61, %v3211_v11 }
 0x4c6   : > { %v3168_v2 = vadd.f32 %v3167_v33, %v3166_v63  ;;  %v3247_v30 = vrot.slane %v3246_v51, 4 }
 0x4c8   : > { %v3169_v47 = vrot.slane %v3168_v2, 2  ;;  %v3248_v19 = vadd.f32 %v3247_v30, %v3246_v51 }
 0x4ca   : > { %v3170_v5 = vadd.f32 %v3169_v47, %v3168_v2  ;;  %v3249_v28 = vrot.slane %v3248_v19, 2 }
 0x4cc   : > { %v3171_v58 = vrot.slane %v3170_v5, 1  ;;  %v3250_v59 = vadd.f32 %v3249_v28, %v3248_v19 }
 0x4ce   : > { %v3172_v7 = vadd.f32 %v3171_v58, %v3170_v5  ;;  %v3251_v40 = vrot.slane %v3250_v59, 1 }
 0x4d0   : > { %v3173_v25 = vadd.f32 %v3172_v7, %v3131_v37  ;;  %v3252_v55 = vadd.f32 %v3251_v40, %v3250_v59 }
 0x4d2   : > { %3174 = vst [vmem:[#allocation2] sm:$0x1] %v3173_v25  ;;  %v3253_v44 = vadd.f32 %v3252_v55, %v3175_v17 }
 0x4d4   : > { %3254 = vst [vmem:[#allocation2 + $0x1] sm:$0x1] %v3253_v44 }
 0x4d5 PF: > { %p3255_p11 = scmp.eq.s32.totalorder %s3702_s19, 1 }
 0x4d7   : > { %p3256_p12 = pnand %p3255_p11, %p2870_p8 }
 0x4d9   : > { %3259 = sbr.rel (%p3256_p12) target bundleno = 1282 (0x502), region = 52 }
 0x4de   : > { %v3260_v45 = vld [vmem:[#allocation2] sm:$0x1]  ;;  %v3262_v15 = vld [vmem:[#allocation2 + $0x1] sm:$0x1] }
 0x4df   : > { %v3261_v27 = vmul.f32 0.001953125, %v3260_v45  ;;  %v3263_v48 = vmul.f32 0.001953125, %v3262_v15  ;;  %v3267_v2 = vld [vmem:[%s6098_s3] sm:$0x1] }
 0x4e0   : > { %v3281_v5 = vld [vmem:[%s6099_s4] sm:$0x1] }
 0x4e1   : > { %v3264_v14 = vmul.f32 %v3261_v27, %v3261_v27 }
 0x4e3   : > { %v3265_v6 = vsub.f32 %v3263_v48, %v3264_v14 }
 0x4e5   : > { %v3266_v34 = vmax.f32 %v3265_v6, 0.0 }
 0x4e7   : > { %v3268_v56 = vadd.f32 1e-05, %v3266_v34 }
 0x4e9   : > { %3672 = vrsqrt.f32 %v3268_v56  ;;  %vm3275_vm0 = vweird.f32 %v3268_v56 }
 0x4ef   : > { %v3673_v11 = vpop.eup %3672 }
 0x4f0   : > { %v3270_v63 = vmul.f32 %v3673_v11, %v3268_v56  ;;  %vm3276_vm1 = vweird.f32 %v3673_v11 }
 0x4f1   : > { %vm3277_vm2 = vmor %vm3275_vm0, %vm3276_vm1 }
 0x4f2   : > { %v3271_v61 = vmul.f32 %v3673_v11, %v3270_v63 }
 0x4f4   : > { %v3272_v33 = vmul.f32 0.5, %v3271_v61 }
 0x4f6   : > { %v3273_v51 = vsub.f32 1.5, %v3272_v33 }
 0x4f8   : > { %v3274_v30 = vmul.f32 %v3673_v11, %v3273_v51 }
 0x4fa   : > { %v3278_v47 = vsel %vm3277_vm2, %v3673_v11, %v3274_v30 }
 0x4fb   : > { %v3279_v19 = vmul.f32 %v3278_v47, %v3267_v2 }
 0x4fd   : > { %3280 = vst [vmem:[#allocation3] sm:$0x1] %v3279_v19  ;;  %v3282_v28 = vmul.f32 %v3279_v19, %v3261_v27 }
 0x4ff   : > { %v3283_v58 = vsub.f32 %v3281_v5, %v3282_v28 }
 0x501   : > { %3284 = vst [vmem:[#allocation3 + $0x1] sm:$0x1] %v3283_v58 }
 0x502 PF: > { %p3618_p13 = scmp.ne.s32.totalorder %s3702_s19, 1 }
 0x504   : > { %3287 = sbr.rel (%p3618_p13) target bundleno = 1344 (0x540), region = 56 }
 0x509   : > { %v5960_v59 = vld [vmem:[#allocation3] ss:$0 sm:$0xff]  ;;  %v5962_v37 = vld [vmem:[#allocation3 + $0x1] ss:$0 sm:$0xff] }
 0x50a   : > { %v3290_v7 = vmul.f32 %v5960_v59, %v5681_v49  ;;  %v3291_v40 = vmul.f32 %v5960_v59, %v5678_v36  ;;  %v3292_v17 = vmul.f32 %v5960_v59, %v5639_v0  ;;  %v3293_v25 = vmul.f32 %v5960_v59, %v5693_v31 }
 0x50b   : > { %v3294_v55 = vmul.f32 %v5960_v59, %v5690_v53  ;;  %v3295_v44 = vmul.f32 %v5960_v59, %v5651_v23  ;;  %v3296_v45 = vmul.f32 %v5960_v59, %v5705_v38  ;;  %v3297_v49 = vmul.f32 %v5960_v59, %v5702_v62 }
 0x50c   : > { %v3328_v36 = vadd.f32 %v5962_v37, %v3290_v7  ;;  %v3329_v15 = vadd.f32 %v5962_v37, %v3291_v40  ;;  %v3330_v0 = vadd.f32 %v5962_v37, %v3292_v17  ;;  %v3331_v31 = vadd.f32 %v5962_v37, %v3293_v25 }
 0x50d   : > { %v3332_v27 = vadd.f32 %v5962_v37, %v3294_v55  ;;  %v3333_v53 = vadd.f32 %v5962_v37, %v3295_v44  ;;  %v3334_v38 = vadd.f32 %v5962_v37, %v3296_v45  ;;  %v3335_v62 = vadd.f32 %v5962_v37, %v3297_v49 }
 0x50e   : > { %v3364_v48 = vmax.f32 %v3328_v36, 0.0  ;;  %v3365_v23 = vmax.f32 %v3329_v15, 0.0  ;;  %v3366_v14 = vmax.f32 %v3330_v0, 0.0  ;;  %v3367_v6 = vmax.f32 %v3331_v31, 0.0 }
 0x50f   : > { %v3368_v34 = vmax.f32 %v3332_v27, 0.0  ;;  %v3298_v56 = vmul.f32 %v5960_v59, %v5663_v9  ;;  %v3299_v11 = vmul.f32 %v5960_v59, %v5717_v24  ;;  %v3300_v63 = vmul.f32 %v5960_v59, %v5714_v26 }
 0x510   : > { %3400 = vst [vmem:[#allocation4] sm:$0xff] %v3364_v48  ;;  %v3301_v61 = vmul.f32 %v5960_v59, %v5675_v10  ;;  %v3369_v33 = vmax.f32 %v3333_v53, 0.0  ;;  %v3302_v51 = vmul.f32 %v5960_v59, %v5729_v54  ;;  %v3303_v2 = vmul.f32 %v5960_v59, %v5726_v42 }
 0x511   : > { %3401 = vst [vmem:[#allocation4 + $0x8] sm:$0xff] %v3365_v23  ;;  %v3304_v9 = vmul.f32 %v5960_v59, %v5687_v20  ;;  %v3370_v30 = vmax.f32 %v3334_v38, 0.0  ;;  %v3336_v24 = vadd.f32 %v5962_v37, %v3298_v56  ;;  %v3337_v26 = vadd.f32 %v5962_v37, %v3299_v11 }
 0x512   : > { %3402 = vst [vmem:[#allocation4 + $0x10] sm:$0xff] %v3366_v14  ;;  %v3338_v47 = vadd.f32 %v5962_v37, %v3300_v63  ;;  %v3371_v10 = vmax.f32 %v3335_v62, 0.0  ;;  %v3339_v19 = vadd.f32 %v5962_v37, %v3301_v61  ;;  %v3305_v54 = vmul.f32 %v5960_v59, %v5741_v21 }
 0x513   : > { %3403 = vst [vmem:[#allocation4 + $0x18] sm:$0xff] %v3367_v6  ;;  %v3372_v42 = vmax.f32 %v3336_v24, 0.0  ;;  %v3340_v5 = vadd.f32 %v5962_v37, %v3302_v51  ;;  %v3373_v20 = vmax.f32 %v3337_v26, 0.0  ;;  %v3341_v28 = vadd.f32 %v5962_v37, %v3303_v2 }
 0x514   : > { %3404 = vst [vmem:[#allocation4 + $0x20] sm:$0xff] %v3368_v34  ;;  %v3342_v58 = vadd.f32 %v5962_v37, %v3304_v9  ;;  %v3374_v7 = vmax.f32 %v3338_v47, 0.0  ;;  %v3306_v40 = vmul.f32 %v5960_v59, %v5738_v22  ;;  %v3307_v17 = vmul.f32 %v5960_v59, %v5699_v46 }
 0x515   : > { %3405 = vst [vmem:[#allocation4 + $0x28] sm:$0xff] %v3369_v33  ;;  %v3308_v21 = vmul.f32 %v5960_v59, %v5753_v12  ;;  %v3375_v25 = vmax.f32 %v3339_v19, 0.0  ;;  %v3343_v55 = vadd.f32 %v5962_v37, %v3305_v54  ;;  %v3309_v44 = vmul.f32 %v5960_v59, %v5750_v32 }
 0x516   : > { %3406 = vst [vmem:[#allocation4 + $0x30] sm:$0xff] %v3370_v30  ;;  %v3376_v45 = vmax.f32 %v3340_v5, 0.0  ;;  %v3344_v49 = vadd.f32 %v5962_v37, %v3306_v40  ;;  %v3310_v22 = vmul.f32 %v5960_v59, %v5711_v57  ;;  %v3377_v36 = vmax.f32 %v3341_v28, 0.0 }
 0x517   : > { %3407 = vst [vmem:[#allocation4 + $0x38] sm:$0xff] %v3371_v10  ;;  %v3345_v46 = vadd.f32 %v5962_v37, %v3307_v17  ;;  %v3311_v12 = vmul.f32 %v5960_v59, %v5765_v52  ;;  %v3378_v15 = vmax.f32 %v3342_v58, 0.0  ;;  %v3346_v0 = vadd.f32 %v5962_v37, %v3308_v21 }
 0x518   : > { %3408 = vst [vmem:[#allocation4 + $0x40] sm:$0xff] %v3372_v42  ;;  %v3312_v32 = vmul.f32 %v5960_v59, %v5762_v3  ;;  %v3379_v31 = vmax.f32 %v3343_v55, 0.0  ;;  %v3347_v27 = vadd.f32 %v5962_v37, %v3309_v44  ;;  %v3313_v57 = vmul.f32 %v5960_v59, %v5723_v35  ;;  %v3436_v10 = vld [vmem:[#allocation4] ss:$2 sm:$0xff]  ;;  %v3438_v19 = vld [vmem:[#allocation4 + $0x1] ss:$2 sm:$0xff] }
 0x519   : > { %3409 = vst [vmem:[#allocation4 + $0x48] sm:$0xff] %v3373_v20  ;;  %v3380_v53 = vmax.f32 %v3344_v49, 0.0  ;;  %v3348_v48 = vadd.f32 %v5962_v37, %v3310_v22  ;;  %v3314_v52 = vmul.f32 %v5960_v59, %v5777_v1  ;;  %v3381_v23 = vmax.f32 %v3345_v46, 0.0 }
 0x51a   : > { %3410 = vst [vmem:[#allocation4 + $0x50] sm:$0xff] %v3374_v7  ;;  %v3349_v14 = vadd.f32 %v5962_v37, %v3311_v12  ;;  %v3315_v3 = vmul.f32 %v5960_v59, %v5774_v8  ;;  %v3382_v38 = vmax.f32 %v3346_v0, 0.0  ;;  %v3350_v6 = vadd.f32 %v5962_v37, %v3312_v32 }
 0x51b   : > { %3411 = vst [vmem:[#allocation4 + $0x58] sm:$0xff] %v3375_v25  ;;  %v3316_v35 = vmul.f32 %v5960_v59, %v5735_v18  ;;  %v3383_v34 = vmax.f32 %v3347_v27, 0.0  ;;  %v3351_v62 = vadd.f32 %v5962_v37, %v3313_v57  ;;  %v3317_v1 = vmul.f32 %v5960_v59, %v5785_v50 }
 0x51c   : > { %3412 = vst [vmem:[#allocation4 + $0x60] sm:$0xff] %v3376_v45  ;;  %v3384_v56 = vmax.f32 %v3348_v48, 0.0  ;;  %v3352_v11 = vadd.f32 %v5962_v37, %v3314_v52  ;;  %v3318_v8 = vmul.f32 %v5960_v59, %v5782_v13  ;;  %v3385_v63 = vmax.f32 %v3349_v14, 0.0  ;;  %v3444_v48 = vld [vmem:[#allocation4 + $0x13] ss:$2 sm:$0xff] }
 0x51d   : > { %3413 = vst [vmem:[#allocation4 + $0x68] sm:$0xff] %v3377_v36  ;;  %v3353_v61 = vadd.f32 %v5962_v37, %v3315_v3  ;;  %v3319_v18 = vmul.f32 %v5960_v59, %v5747_v43  ;;  %v3386_v33 = vmax.f32 %v3350_v6, 0.0  ;;  %v3354_v51 = vadd.f32 %v5962_v37, %v3316_v35  ;;  %v3448_v5 = vld [vmem:[#allocation4 + $0x24] ss:$2 sm:$0xff]  ;;  %v3450_v20 = vld [vmem:[#allocation4 + $0x25] ss:$2 sm:$0xff] }
 0x51e   : > { %3414 = vst [vmem:[#allocation4 + $0x70] sm:$0xff] %v3378_v15  ;;  %v3320_v50 = vmul.f32 %v5960_v59, %v5793_v60  ;;  %v3387_v2 = vmax.f32 %v3351_v62, 0.0  ;;  %v3355_v9 = vadd.f32 %v5962_v37, %v3317_v1  ;;  %v3321_v13 = vmul.f32 %v5960_v59, %v5790_v16  ;;  %v3441_v15 = vld [vmem:[#allocation4 + $0x12] ss:$2 sm:$0xff] }
 0x51f   : > { %3415 = vst [vmem:[#allocation4 + $0x78] sm:$0xff] %v3379_v31  ;;  %v3388_v30 = vmax.f32 %v3352_v11, 0.0  ;;  %v3356_v24 = vadd.f32 %v5962_v37, %v3318_v8  ;;  %v3322_v43 = vmul.f32 %v5960_v59, %v5759_v29  ;;  %v3389_v26 = vmax.f32 %v3353_v61, 0.0  ;;  %v3453_v27 = vld [vmem:[#allocation4 + $0x36] ss:$2 sm:$0xff] }
 0x520   : > { %3416 = vst [vmem:[#allocation4 + $0x80] sm:$0xff] %v3380_v53  ;;  %v3357_v47 = vadd.f32 %v5962_v37, %v3319_v18  ;;  %v3323_v60 = vmul.f32 %v5960_v59, %v5801_v41  ;;  %v3390_v54 = vmax.f32 %v3354_v51, 0.0  ;;  %v3358_v16 = vadd.f32 %v5962_v37, %v3320_v50 }
 0x521   : > { %3417 = vst [vmem:[#allocation4 + $0x88] sm:$0xff] %v3381_v23  ;;  %v3324_v42 = vmul.f32 %v5960_v59, %v5798_v39  ;;  %v3391_v29 = vmax.f32 %v3355_v9, 0.0  ;;  %v3359_v28 = vadd.f32 %v5962_v37, %v3321_v13  ;;  %v3325_v58 = vmul.f32 %v5960_v59, %v5771_v4  ;;  %v3460_v7 = vld [vmem:[#allocation4 + $0x48] ss:$2 sm:$0xff]  ;;  %v3462_v41 = vld [vmem:[#allocation4 + $0x49] ss:$2 sm:$0xff] }
 0x522   : > { %3418 = vst [vmem:[#allocation4 + $0x90] sm:$0xff] %v3382_v38  ;;  %v3392_v40 = vmax.f32 %v3356_v24, 0.0  ;;  %v3360_v17 = vadd.f32 %v5962_v37, %v3322_v43  ;;  %v3439_v21 = vmax.f32 %v3436_v10, %v3438_v19  ;;  %v3393_v39 = vmax.f32 %v3357_v47, 0.0 }
 0x523   : > { %3419 = vst [vmem:[#allocation4 + $0x98] sm:$0xff] %v3383_v34  ;;  %v3361_v44 = vadd.f32 %v5962_v37, %v3323_v60  ;;  %v3451_v45 = vmax.f32 %v3448_v5, %v3450_v20  ;;  %v3394_v49 = vmax.f32 %v3358_v16, 0.0  ;;  %v3362_v22 = vadd.f32 %v5962_v37, %v3324_v42 }
 0x524   : > { %3420 = vst [vmem:[#allocation4 + $0xa0] sm:$0xff] %v3384_v56  ;;  %v3463_v36 = vmax.f32 %v3460_v7, %v3462_v41  ;;  %v3395_v46 = vmax.f32 %v3359_v28, 0.0  ;;  %v3363_v12 = vadd.f32 %v5962_v37, %v3325_v58  ;;  %v3396_v32 = vmax.f32 %v3360_v17, 0.0  ;;  %v3465_v23 = vld [vmem:[#allocation4 + $0x5a] ss:$2 sm:$0xff] }
 0x525   : > { %3421 = vst [vmem:[#allocation4 + $0xa8] sm:$0xff] %v3385_v63  ;;  %v3442_v31 = vmax.f32 %v3439_v21, %v3441_v15  ;;  %v3397_v53 = vmax.f32 %v3361_v44, 0.0  ;;  %v3454_v52 = vmax.f32 %v3451_v45, %v3453_v27  ;;  %v3398_v14 = vmax.f32 %v3362_v22, 0.0  ;;  %v3456_v56 = vld [vmem:[#allocation4 + $0x37] ss:$2 sm:$0xff] }
 0x526   : > { %3422 = vst [vmem:[#allocation4 + $0xb0] sm:$0xff] %v3386_v33  ;;  %v3472_v25 = vld [vmem:[#allocation4 + $0x6c] ss:$2 sm:$0xff]  ;;  %v3474_v55 = vld [vmem:[#allocation4 + $0x6d] ss:$2 sm:$0xff]  ;;  %v3466_v3 = vmax.f32 %v3463_v36, %v3465_v23  ;;  %v3399_v35 = vmax.f32 %v3363_v12, 0.0 }
 0x527   : > { %3423 = vst [vmem:[#allocation4 + $0xb8] sm:$0xff] %v3387_v2  ;;  %v3475_v0 = vmax.f32 %v3472_v25, %v3474_v55  ;;  %v3445_v1 = vmax.f32 %v3442_v31, %v3444_v48  ;;  %v3457_v63 = vmax.f32 %v3454_v52, %v3456_v56  ;;  %v3468_v61 = vld [vmem:[#allocation4 + $0x5b] ss:$2 sm:$0xff] }
 0x528   : > { %3424 = vst [vmem:[#allocation4 + $0xc0] sm:$0xff] %v3388_v30  ;;  %v3477_v38 = vld [vmem:[#allocation4 + $0x7e] ss:$2 sm:$0xff]  ;;  %v3469_v33 = vmax.f32 %v3466_v3, %v3468_v61  ;;  %v3480_v51 = vld [vmem:[#allocation4 + $0x7f] ss:$2 sm:$0xff] }
 0x529   : > { %3425 = vst [vmem:[#allocation4 + $0xc8] sm:$0xff] %v3389_v26  ;;  %v3478_v37 = vmax.f32 %v3475_v0, %v3477_v38 }
 0x52a   : > { %3426 = vst [vmem:[#allocation4 + $0xd0] sm:$0xff] %v3390_v54  ;;  %v3484_v4 = vld [vmem:[#allocation4 + $0x90] ss:$2 sm:$0xff]  ;;  %v3486_v59 = vld [vmem:[#allocation4 + $0x91] ss:$2 sm:$0xff] }
 0x52b   : > { %3427 = vst [vmem:[#allocation4 + $0xd8] sm:$0xff] %v3391_v29  ;;  %v3487_v57 = vmax.f32 %v3484_v4, %v3486_v59  ;;  %v3481_v9 = vmax.f32 %v3478_v37, %v3480_v51 }
 0x52c   : > { %3428 = vst [vmem:[#allocation4 + $0xe0] sm:$0xff] %v3392_v40 }
 0x52d   : > { %3429 = vst [vmem:[#allocation4 + $0xe8] sm:$0xff] %v3393_v39  ;;  %v3489_v6 = vld [vmem:[#allocation4 + $0xa2] ss:$2 sm:$0xff]  ;;  %v3492_v50 = vld [vmem:[#allocation4 + $0xa3] ss:$2 sm:$0xff] }
 0x52e   : > { %3430 = vst [vmem:[#allocation4 + $0xf0] sm:$0xff] %v3394_v49  ;;  %v3490_v11 = vmax.f32 %v3487_v57, %v3489_v6 }
 0x52f   : > { %3431 = vst [vmem:[#allocation4 + $0xf8] sm:$0xff] %v3395_v46  ;;  %v3496_v34 = vld [vmem:[#allocation4 + $0xb4] ss:$2 sm:$0xff]  ;;  %v3498_v62 = vld [vmem:[#allocation4 + $0xb5] ss:$2 sm:$0xff] }
 0x530   : > { %3432 = vst [vmem:[#allocation4 + $0x100] sm:$0xff] %v3396_v32  ;;  %v3499_v8 = vmax.f32 %v3496_v34, %v3498_v62  ;;  %v3493_v24 = vmax.f32 %v3490_v11, %v3492_v50 }
 0x531   : > { %3433 = vst [vmem:[#allocation4 + $0x108] sm:$0xff] %v3397_v53  ;;  %v3501_v18 = vld [vmem:[#allocation4 + $0xc6] ss:$2 sm:$0xff]  ;;  %v3504_v43 = vld [vmem:[#allocation4 + $0xc7] ss:$2 sm:$0xff] }
 0x532   : > { %3434 = vst [vmem:[#allocation4 + $0x110] sm:$0xff] %v3398_v14  ;;  %v3502_v2 = vmax.f32 %v3499_v8, %v3501_v18 }
 0x533   : > { %3435 = vst [vmem:[#allocation4 + $0x118] sm:$0xff] %v3399_v35  ;;  %v3508_v13 = vld [vmem:[#allocation4 + $0xd8] ss:$2 sm:$0xff]  ;;  %v3510_v30 = vld [vmem:[#allocation4 + $0xd9] ss:$2 sm:$0xff] }
 0x534   : > { %3446 = vst [vmem:[%s5607_s8] sm:$0xff] %v3445_v1  ;;  %v3511_v26 = vmax.f32 %v3508_v13, %v3510_v30  ;;  %v3505_v47 = vmax.f32 %v3502_v2, %v3504_v43 }
 0x535   : > { %3458 = vst [vmem:[%s5607_s8 + $0x8] sm:$0xff] %v3457_v63 }
 0x536   : > { %3470 = vst [vmem:[%s5607_s8 + $0x10] sm:$0xff] %v3469_v33  ;;  %v3513_v60 = vld [vmem:[#allocation4 + $0xea] ss:$2 sm:$0xff]  ;;  %v3516_v19 = vld [vmem:[#allocation4 + $0xeb] ss:$2 sm:$0xff] }
 0x537   : > { %3482 = vst [vmem:[%s5607_s8 + $0x18] sm:$0xff] %v3481_v9  ;;  %v3514_v10 = vmax.f32 %v3511_v26, %v3513_v60 }
 0x538   : > { %3494 = vst [vmem:[%s5607_s8 + $0x20] sm:$0xff] %v3493_v24  ;;  %v3520_v54 = vld [vmem:[#allocation4 + $0xfc] ss:$2 sm:$0xff]  ;;  %v3522_v16 = vld [vmem:[#allocation4 + $0xfd] ss:$2 sm:$0xff] }
 0x539   : > { %3506 = vst [vmem:[%s5607_s8 + $0x28] sm:$0xff] %v3505_v47  ;;  %v3517_v42 = vmax.f32 %v3514_v10, %v3516_v19  ;;  %v3523_v5 = vmax.f32 %v3520_v54, %v3522_v16 }
 0x53a   : > { %v3525_v20 = vld [vmem:[#allocation4 + $0x10e] ss:$2 sm:$0xff]  ;;  %v3528_v28 = vld [vmem:[#allocation4 + $0x10f] ss:$2 sm:$0xff] }
 0x53b   : > { %3518 = vst [vmem:[%s5607_s8 + $0x30] sm:$0xff] %v3517_v42  ;;  %v3526_v29 = vmax.f32 %v3523_v5, %v3525_v20 }
 0x53d   : > { %v3529_v58 = vmax.f32 %v3526_v29, %v3528_v28 }
 0x53f   : > { %3530 = vst [vmem:[%s5607_s8 + $0x38] sm:$0xff] %v3529_v58 }
 0x540 PF: > { %s15_s22 = sadd.s32 1, %s3714_s22   ;;  %s6476_s18 = smov %s3706_s20 }
 0x541   : > { %p12_p0 = scmp.ge.s32.totalorder %s15_s22, 6   ;;  %s6477_s19 = smov %s3710_s21 }
 0x542   : > { %s6478_s20 = smov %s6481_s23  ;;  %s6479_s21 = smov %s6485_s24 }
 0x543   :  { %14 = sbr.rel (!%p12_p0) target bundleno = 3 (0x3), region = 125 }

</bundles_post_ra>
